<compile_context>
chip_gen: v7x
topology: tpu7x:2x2x1
jax: 0.10.0
libtpu: 0.0.40
codegen_flags: <defaults>
</compile_context>

<pallas_src>
import functools
import math

import jax
import jax.numpy as jnp
from jax.experimental import pallas as pl
from jax.experimental.pallas import tpu as pltpu

_EPS = float(jnp.finfo(jnp.float32).eps)      # nn.RMSNorm(eps=None) default for f32
MATMUL_DTYPE = jnp.bfloat16                   # MXU operands; accumulation stays f32
_VMEM_LIMIT = 64 * 1024 * 1024                # scoped-VMEM cap, safe on v5e/v6e/v7x


# ----------------------------------------------------------------------------
# Small helpers
# ----------------------------------------------------------------------------
def _round_up(n, m):
    return ((n + m - 1) // m) * m


def _kv_tile(sk, cap):
    """Largest multiple-of-8 divisor of sk that is <= cap (full extent if it fits)."""
    if sk <= cap:
        return sk
    for t in range(cap - cap % 8, 7, -8):
        if sk % t == 0:
            return t
    # TODO(synk): pad + mask the key axis when no 8-aligned divisor exists.
    return sk


def _rotate_half(x):
    """[x2, x1] along the last (head) dim; the RoPE sign lives in the sin table."""
    half = x.shape[-1] // 2
    if x.shape[-1] % 128 == 0:
        # Lane-aligned head dim: pure XLU rotate, overlaps with MXU work.
        return pltpu.roll(x, half, x.ndim - 1)
    # Small / unaligned head dims (e.g. this test's Dh=8): static-slice concat.
    return jnp.concatenate([x[..., half:], x[..., :half]], axis=-1)


# ----------------------------------------------------------------------------
# Kernels
# ----------------------------------------------------------------------------
def _norm_proj_kernel(x_ref, nw_ref, w_ref, b_ref, o_ref, xn_sc, *, eps):
    """Fused RMSNorm prologue + linear projection: o = RMSNorm(x) @ W + b.

    The normalized activations are cached in bf16 VMEM scratch so the norm is
    computed once per row tile, not once per output-column tile.
    """
    @pl.when(pl.program_id(2) == 0)
    def _():
        x = x_ref[0].astype(jnp.float32)                               # (tm, D)
        inv = jax.lax.rsqrt(jnp.mean(x * x, axis=-1, keepdims=True) + eps)
        xn_sc[...] = (x * inv * nw_ref[0].astype(jnp.float32)).astype(xn_sc.dtype)

    y = jnp.dot(xn_sc[...], w_ref[0].astype(MATMUL_DTYPE),
                preferred_element_type=jnp.float32)                    # (tm, tn) f32
    y = y + b_ref[0].astype(jnp.float32)
    o_ref[0] = y.astype(o_ref.dtype)


def _attn_kernel(q_ref, k_ref, v_ref, *rest, num_heads, scale, has_rope):
    """Head-major MHA with flash-style key tiling, optional RoPE on keys, fused
    output projection + bias + residual add.

    Blocks: q (1,1,H,M,Dh), k/v (1,1,H,tk,Dh), cos/sin (tk,Dh), wo (1,H,Dh,D),
            bo (1,1,D), residual/out (1,1,M,D). Scratch: m/l (H,M,1), acc (H,M,Dh).
    """
    if has_rope:
        cos_ref, sin_ref, wo_ref, bo_ref, res_ref, o_ref, m_sc, l_sc, acc_sc = rest
    else:
        cos_ref = sin_ref = None
        wo_ref, bo_ref, res_ref, o_ref, m_sc, l_sc, acc_sc = rest

    ki = pl.program_id(2)

    @pl.when(ki == 0)
    def _():
        m_sc[...] = jnp.full_like(m_sc, -jnp.inf)
        l_sc[...] = jnp.zeros_like(l_sc)
        acc_sc[...] = jnp.zeros_like(acc_sc)

    q = q_ref[0, 0].astype(MATMUL_DTYPE)                               # (H, M, Dh)
    k = k_ref[0, 0].astype(jnp.float32)                                # (H, tk, Dh)
    v = v_ref[0, 0].astype(MATMUL_DTYPE)                               # (H, tk, Dh)

    if has_rope:
        cos = cos_ref[...]                                             # (tk, Dh) f32
        sin = sin_ref[...]                                             # sign pre-folded
        k = k * cos[None] + _rotate_half(k) * sin[None]
    k = k.astype(MATMUL_DTYPE)

    # Batched over heads (leading axis) -- no lane slicing, no concat.
    s = jnp.einsum('hqd,hkd->hqk', q, k,
                   preferred_element_type=jnp.float32) * scale          # (H, M, tk)

    m_prev = m_sc[...]                                                  # (H, M, 1)
    m_new = jnp.maximum(m_prev, jnp.max(s, axis=-1, keepdims=True))
    alpha = jnp.exp(m_prev - m_new)
    p = jnp.exp(s - m_new)
    l_sc[...] = alpha * l_sc[...] + jnp.sum(p, axis=-1, keepdims=True)
    acc_sc[...] = alpha * acc_sc[...] + jnp.einsum(
        'hqk,hkd->hqd', p.astype(MATMUL_DTYPE), v,
        preferred_element_type=jnp.float32)                             # (H, M, Dh)
    m_sc[...] = m_new

    @pl.when(ki == pl.num_programs(2) - 1)
    def _():
        ctx = acc_sc[...] / l_sc[...]                                   # exact normalize
        out = res_ref[0, 0].astype(jnp.float32) + bo_ref[0].astype(jnp.float32)
        for h in range(num_heads):                                      # static unroll,
            out = out + jnp.dot(ctx[h].astype(MATMUL_DTYPE),            # leading-axis slices
                                wo_ref[0, h].astype(MATMUL_DTYPE),
                                preferred_element_type=jnp.float32)
        o_ref[0, 0] = out.astype(o_ref.dtype)


# ----------------------------------------------------------------------------
# Pallas wrappers
# ----------------------------------------------------------------------------
def norm_proj(x, norm_w, w, b, *, eps=_EPS, row_cap=256, col_cap=512,
              out_dtype=MATMUL_DTYPE):
    """y[l] = RMSNorm(x[lx]; norm_w[ln]) @ w[l] + b[l]   (size-1 lx/ln broadcast).

    x: (Lx, M, D); norm_w: (Ln, 1, D); w: (L, D, N); b: (L, 1, N) -> (L, M, N).
    Grid (L, M/tm, N/tn); column axis innermost & "arbitrary" so the normed rows
    can be cached in scratch. Oversized M/N are zero-padded to aligned tile
    multiples (no silent full-extent fallback) and sliced after the call.
    """
    L, D, N = w.shape
    Lx, M = x.shape[0], x.shape[1]
    Ln = norm_w.shape[0]

    if M <= row_cap:
        tm, Mp = M, M
    else:
        tm = row_cap                               # multiple of 8
        Mp = _round_up(M, tm)
    if N <= col_cap:
        tn, Np = N, N
    else:
        tn = col_cap                               # multiple of 128
        Np = _round_up(N, tn)
    if Mp != M:
        x = jnp.pad(x, ((0, 0), (0, Mp - M), (0, 0)))
    if Np != N:
        w = jnp.pad(w, ((0, 0), (0, 0), (0, Np - N)))
        b = jnp.pad(b, ((0, 0), (0, 0), (0, Np - N)))

    x_map = (lambda l, i, j: (l, i, 0)) if Lx == L else (lambda l, i, j: (0, i, 0))
    n_map = (lambda l, i, j: (l, 0, 0)) if Ln == L else (lambda l, i, j: (0, 0, 0))

    out = pl.pallas_call(
        functools.partial(_norm_proj_kernel, eps=eps),
        out_shape=jax.ShapeDtypeStruct((L, Mp, Np), out_dtype),
        grid=(L, Mp // tm, Np // tn),
        in_specs=[
            pl.BlockSpec((1, tm, D), x_map),
            pl.BlockSpec((1, 1, D), n_map),
            pl.BlockSpec((1, D, tn), lambda l, i, j: (l, 0, j)),
            pl.BlockSpec((1, 1, tn), lambda l, i, j: (l, 0, j)),
        ],
        out_specs=pl.BlockSpec((1, tm, tn), lambda l, i, j: (l, i, j)),
        scratch_shapes=[pltpu.VMEM((tm, D), MATMUL_DTYPE)],
        compiler_params=pltpu.CompilerParams(
            dimension_semantics=("parallel", "parallel", "arbitrary"),
            vmem_limit_bytes=_VMEM_LIMIT),
    )(x, norm_w, w, b)

    if Mp != M or Np != N:
        out = out[:, :M, :N]
    return out


def fused_attention(q, k, v, wo_hm, bo, residual, *, batch, rope=None,
                    kv_cap=512, out_dtype=jnp.float32):
    """out[l,b] = residual + bo[l] + sum_h softmax(q_h k_h^T / sqrt(Dh)) v_h @ wo[l,h].

    q:  (L, Bq, H, M, Dh)   (Bq in {1, batch}; size-1 broadcast via index maps)
    k,v:(L, Bk, H, Sk, Dh)  (Bk in {1, batch})
    wo_hm: (L, H, Dh, D); bo: (L, 1, D); residual: (L, Br, M, D) -> out (L, batch, M, D).
    Grid (L, batch, Sk/tk) with the key axis innermost/"arbitrary" (online softmax).
    `rope` = (cos, sin_signed) of shape (Sk, Dh) applies rotate-half RoPE to keys.
    """
    L, Bq, H, M, Dh = q.shape
    Bk, Sk = k.shape[1], k.shape[3]
    Br = residual.shape[1]
    D = wo_hm.shape[-1]
    scale = 1.0 / math.sqrt(Dh)

    tk = _kv_tile(Sk, kv_cap)
    n_kv = Sk // tk

    def map5(bdim):
        if bdim == 1:
            return lambda l, b, ki: (l, 0, 0, ki, 0)
        return lambda l, b, ki: (l, b, 0, ki, 0)

    q_map = (lambda l, b, ki: (l, 0, 0, 0, 0)) if Bq == 1 else (lambda l, b, ki: (l, b, 0, 0, 0))
    r_map = (lambda l, b, ki: (l, 0, 0, 0)) if Br == 1 else (lambda l, b, ki: (l, b, 0, 0))

    in_specs = [
        pl.BlockSpec((1, 1, H, M, Dh), q_map),
        pl.BlockSpec((1, 1, H, tk, Dh), map5(Bk)),
        pl.BlockSpec((1, 1, H, tk, Dh), map5(Bk)),
    ]
    args = [q, k, v]
    if rope is not None:
        cos, sin = rope
        in_specs += [
            pl.BlockSpec((tk, Dh), lambda l, b, ki: (ki, 0)),
            pl.BlockSpec((tk, Dh), lambda l, b, ki: (ki, 0)),
        ]
        args += [cos, sin]
    in_specs += [
        pl.BlockSpec((1, H, Dh, D), lambda l, b, ki: (l, 0, 0, 0)),
        pl.BlockSpec((1, 1, D), lambda l, b, ki: (l, 0, 0)),
        pl.BlockSpec((1, 1, M, D), r_map),
    ]
    args += [wo_hm, bo, residual]

    kernel = functools.partial(_attn_kernel, num_heads=H, scale=scale,
                               has_rope=rope is not None)

    return pl.pallas_call(
        kernel,
        out_shape=jax.ShapeDtypeStruct((L, batch, M, D), out_dtype),
        grid=(L, batch, n_kv),
        in_specs=in_specs,
        out_specs=pl.BlockSpec((1, 1, M, D), lambda l, b, ki: (l, b, 0, 0)),
        scratch_shapes=[
            pltpu.VMEM((H, M, 1), jnp.float32),     # running max
            pltpu.VMEM((H, M, 1), jnp.float32),     # running denom
            pltpu.VMEM((H, M, Dh), jnp.float32),    # running PV accumulator
        ],
        compiler_params=pltpu.CompilerParams(
            dimension_semantics=("parallel", "parallel", "arbitrary"),
            vmem_limit_bytes=_VMEM_LIMIT),
    )(*args)


# ----------------------------------------------------------------------------
# RoPE tables (rotate-half, keys only) and head-layout plumbing
# ----------------------------------------------------------------------------
def rope_tables(seq_len, head_dim, base=10000.0):
    """cos and sign-folded sin, shape (seq_len, head_dim): x_rot = x*cos + roll_half(x)*sin."""
    half = head_dim // 2
    pos = jnp.arange(seq_len, dtype=jnp.float32)
    inv_freq = 1.0 / (base ** (jnp.arange(0, head_dim, 2, dtype=jnp.float32) / head_dim))
    freqs = pos[:, None] * inv_freq[None, :]                           # (S, half)
    cos = jnp.concatenate([jnp.cos(freqs), jnp.cos(freqs)], axis=-1)   # (S, Dh)
    sin = jnp.sin(freqs)
    sin_signed = jnp.concatenate([-sin, sin], axis=-1)                 # sign folded in
    return cos, sin_signed


def _heads_q(y, batch, num_heads):
    """(L, B*M, D) -> (L, B, H, M, Dh).  Layout plumbing between pallas calls."""
    L, BM, D = y.shape
    M, Dh = BM // batch, D // num_heads
    return y.reshape(L, batch, M, num_heads, Dh).transpose(0, 1, 3, 2, 4)


def _heads_kv(y, batch, num_heads):
    """(L, B*M, 2D) fused K|V -> k, v each (L, B, H, M, Dh)."""
    L, BM, D2 = y.shape
    M, D = BM // batch, D2 // 2
    Dh = D // num_heads
    y = y.reshape(L, batch, M, 2, num_heads, Dh)
    k = y[:, :, :, 0].transpose(0, 1, 3, 2, 4)
    v = y[:, :, :, 1].transpose(0, 1, 3, 2, 4)
    return k, v


# ----------------------------------------------------------------------------
# Forward pass
# ----------------------------------------------------------------------------
def forward(params, stm_memory, x, *, num_heads):
    """InterlayerStmMemoryAttention forward.

    stm_memory: [L, 1, S_mem, D], x: [L, B, T, D] -> updated STM [L, B, S_mem, D].
    """
    L, B, T, D = x.shape
    S_mem = stm_memory.shape[2]
    H = num_heads
    Dh = D // H
    a, ma = params["attn"], params["mean_attn"]

    stm_base = stm_memory.reshape(L, S_mem, D)          # batch-invariant per-layer STM
    # Interlayer K/V source: mean over layers of the PRE-update memory (computed once,
    # before any per-layer update), shared by all layers and batches.
    mean_stm = jnp.mean(stm_memory, axis=0)             # (1, S_mem, D)

    # --- first attention: Q from layer STM (batch-invariant, computed once),
    #     K/V from the encoded layer data, RoPE on keys. Residual = layer STM. ---
    q1 = norm_proj(stm_base, params["mem_norm_w"], a["wq"], a["bq"])            # (L, S_mem, D)
    kv1 = norm_proj(x.reshape(L, B * T, D), params["in_norm_w"], a["wkv"], a["bkv"])
    q1h = _heads_q(q1, 1, H)                                                    # (L,1,H,S_mem,Dh)
    k1h, v1h = _heads_kv(kv1, B, H)                                             # (L,B,H,T,Dh)
    cos, sin = rope_tables(T, Dh)
    wo1 = a["wo"].reshape(L, H, Dh, D)                                          # head-major rows
    layer_stm = fused_attention(q1h, k1h, v1h, wo1, a["bo"], stm_base[:, None],
                                batch=B, rope=(cos, sin))                       # (L, B, S_mem, D)

    # --- interlayer mean attention: Q per-(layer,batch) from the updated STM; K/V from the
    #     normalized mean STM (batch-invariant) -> fold batch into the query rows and run
    #     one attention per layer. ---
    q2 = norm_proj(layer_stm.reshape(L, B * S_mem, D), params["mean_mem_norm_w"],
                   ma["wq"], ma["bq"])                                          # (L, B*S_mem, D)
    kv2 = norm_proj(mean_stm, params["mean_stm_norm_w"], ma["wkv"], ma["bkv"])  # (L, S_mem, 2D)
    q2h = _heads_q(q2, 1, H)                                                    # (L,1,H,B*S_mem,Dh)
    k2h, v2h = _heads_kv(kv2, 1, H)                                             # (L,1,H,S_mem,Dh)
    wo2 = ma["wo"].reshape(L, H, Dh, D)
    new_stm = fused_attention(q2h, k2h, v2h, wo2, ma["bo"],
                              layer_stm.reshape(L, 1, B * S_mem, D),
                              batch=1)                                          # (L,1,B*S_mem,D)
    return new_stm.reshape(L, B, S_mem, D)


# ----------------------------------------------------------------------------
# Deterministic parameter init (synthetic; mirrors module shapes, weights stacked [L, ...])
# ----------------------------------------------------------------------------
def init_params(key, num_layers, embed_dim, scale=0.02):
    def linear(k, d_in, d_out):
        w = (jax.random.normal(k, (num_layers, d_in, d_out), jnp.float32) * scale)
        return w.astype(MATMUL_DTYPE), jnp.zeros((num_layers, 1, d_out), jnp.float32)

    ks = jax.random.split(key, 6)
    wq, bq = linear(ks[0], embed_dim, embed_dim)
    wkv, bkv = linear(ks[1], embed_dim, 2 * embed_dim)        # fused K|V projection
    wo, bo = linear(ks[2], embed_dim, embed_dim)
    wq2, bq2 = linear(ks[3], embed_dim, embed_dim)
    wkv2, bkv2 = linear(ks[4], embed_dim, 2 * embed_dim)
    wo2, bo2 = linear(ks[5], embed_dim, embed_dim)
    ones = lambda: jnp.ones((num_layers, 1, embed_dim), jnp.float32)
    return dict(
        mem_norm_w=ones(), in_norm_w=ones(), mean_mem_norm_w=ones(),
        mean_stm_norm_w=jnp.ones((1, 1, embed_dim), jnp.float32),
        attn=dict(wq=wq, bq=bq, wkv=wkv, bkv=bkv, wo=wo, bo=bo),
        mean_attn=dict(wq=wq2, bq=bq2, wkv=wkv2, bkv=bkv2, wo=wo2, bo=bo2),
    )


# ----------------------------------------------------------------------------
if __name__ == "__main__":
    NUM_LAYERS, BATCH, SEQ_LEN, EMBED_DIM, HEADS, STM_SIZE = 2, 2, 8, 32, 4, 8

    key = jax.random.PRNGKey(0)
    k_x, k_stm, k_p = jax.random.split(key, 3)
    x = jax.random.normal(k_x, (NUM_LAYERS, BATCH, SEQ_LEN, EMBED_DIM), jnp.float32)
    stm = jax.random.normal(k_stm, (NUM_LAYERS, 1, STM_SIZE, EMBED_DIM), jnp.float32) * 0.02
    params = init_params(k_p, NUM_LAYERS, EMBED_DIM)

    fwd = jax.jit(functools.partial(forward, num_heads=HEADS))
    out = jax.block_until_ready(fwd(params, stm, x))

    assert out.shape == (NUM_LAYERS, BATCH, STM_SIZE, EMBED_DIM), out.shape
    assert bool(jnp.all(jnp.isfinite(out)))
    print("KERNEL_OK")
</pallas_src>

<mosaic_0001>
module attributes {stable_mosaic.version = 11 : i64} {
  func.func @_norm_proj_kernel(%arg0: i32, %arg1: i32, %arg2: i32, %arg3: memref<1x16x32xf32, #tpu.memory_space<vmem>>, %arg4: memref<1x1x32xf32, #tpu.memory_space<vmem>>, %arg5: memref<1x32x64xbf16, #tpu.memory_space<vmem>>, %arg6: memref<1x1x64xf32, #tpu.memory_space<vmem>>, %arg7: memref<1x16x64xbf16, #tpu.memory_space<vmem>>, %arg8: memref<16x32xbf16, #tpu.memory_space<vmem>>) attributes {dimension_semantics = [#tpu.dimension_semantics<parallel>, #tpu.dimension_semantics<parallel>, #tpu.dimension_semantics<arbitrary>], iteration_bounds = array<i64: 2, 1, 1>, scalar_prefetch = 0 : i64, scratch_operands = 1 : i64, tpu.core_type = #tpu.core_type<tc>, window_params = [{transform_indices = @transform_0, window_bounds = array<i64: 1, 16, 32>}, {transform_indices = @transform_1, window_bounds = array<i64: 1, 1, 32>}, {transform_indices = @transform_2, window_bounds = array<i64: 1, 32, 64>}, {transform_indices = @transform_3, window_bounds = array<i64: 1, 1, 64>}, {transform_indices = @transform_4, window_bounds = array<i64: 1, 16, 64>}]} {
    %c0_i32 = arith.constant 0 : i32
    %0 = arith.cmpi eq, %arg2, %c0_i32 : i32
    %1 = arith.extui %0 : i1 to i32
    %c0_i32_0 = arith.constant 0 : i32
    %2 = arith.cmpi ne, %1, %c0_i32_0 : i32
    scf.if %2 {
      %c0_11 = arith.constant 0 : index
      %c0_12 = arith.constant 0 : index
      %c0_13 = arith.constant 0 : index
      %15 = vector.load %arg3[%c0_11, %c0_12, %c0_13] : memref<1x16x32xf32, #tpu.memory_space<vmem>>, vector<1x16x32xf32>
      %16 = vector.shape_cast %15 : vector<1x16x32xf32> to vector<16x32xf32>
      %17 = arith.mulf %16, %16 : vector<16x32xf32>
      %cst_14 = arith.constant dense<0.000000e+00> : vector<16xf32>
      %18 = vector.multi_reduction <add>, %17, %cst_14 [1] : vector<16x32xf32> to vector<16xf32>
      %19 = vector.shape_cast %18 : vector<16xf32> to vector<16x1xf32>
      %cst_15 = arith.constant 3.200000e+01 : f32
      %20 = vector.broadcast %cst_15 : f32 to vector<16x1xf32>
      %21 = arith.divf %19, %20 : vector<16x1xf32>
      %cst_16 = arith.constant 1.1920929E-7 : f32
      %22 = vector.broadcast %cst_16 : f32 to vector<16x1xf32>
      %23 = arith.addf %21, %22 : vector<16x1xf32>
      %24 = math.rsqrt %23 : vector<16x1xf32>
      %25 = vector.broadcast %24 : vector<16x1xf32> to vector<16x32xf32>
      %26 = arith.mulf %16, %25 : vector<16x32xf32>
      %c0_17 = arith.constant 0 : index
      %c0_18 = arith.constant 0 : index
      %c0_19 = arith.constant 0 : index
      %27 = vector.load %arg4[%c0_17, %c0_18, %c0_19] : memref<1x1x32xf32, #tpu.memory_space<vmem>>, vector<1x1x32xf32>
      %28 = vector.shape_cast %27 : vector<1x1x32xf32> to vector<1x32xf32>
      %29 = vector.broadcast %28 : vector<1x32xf32> to vector<16x32xf32>
      %30 = arith.mulf %26, %29 : vector<16x32xf32>
      %31 = arith.truncf %30 : vector<16x32xf32> to vector<16x32xbf16>
      %c0_20 = arith.constant 0 : index
      %c0_21 = arith.constant 0 : index
      %32 = vector.load %arg8[%c0_20, %c0_21] : memref<16x32xbf16, #tpu.memory_space<vmem>>, vector<16x32xbf16>
      tpu.vector_store %arg8[%c0_20, %c0_21], %31 {strides = array<i32>} : memref<16x32xbf16, #tpu.memory_space<vmem>>, vector<16x32xbf16>,
    } else {
    }
    %c0 = arith.constant 0 : index
    %c0_1 = arith.constant 0 : index
    %3 = vector.load %arg8[%c0, %c0_1] : memref<16x32xbf16, #tpu.memory_space<vmem>>, vector<16x32xbf16>
    %c0_2 = arith.constant 0 : index
    %c0_3 = arith.constant 0 : index
    %c0_4 = arith.constant 0 : index
    %4 = vector.load %arg5[%c0_2, %c0_3, %c0_4] : memref<1x32x64xbf16, #tpu.memory_space<vmem>>, vector<1x32x64xbf16>
    %5 = vector.shape_cast %4 : vector<1x32x64xbf16> to vector<32x64xbf16>
    %cst = arith.constant dense<0.000000e+00> : vector<16x64xf32>
    %6 = tpu.matmul %3, %5, %cst {dimension_numbers = #tpu.dot_dimension_numbers<[1], [0], [0], [1], [0, 0, 1, 1], [], []>} : vector<16x32xbf16>, vector<32x64xbf16>, vector<16x64xf32> -> vector<16x64xf32>
    %c0_5 = arith.constant 0 : index
    %c0_6 = arith.constant 0 : index
    %c0_7 = arith.constant 0 : index
    %7 = vector.load %arg6[%c0_5, %c0_6, %c0_7] : memref<1x1x64xf32, #tpu.memory_space<vmem>>, vector<1x1x64xf32>
    %8 = vector.shape_cast %7 : vector<1x1x64xf32> to vector<1x64xf32>
    %9 = vector.broadcast %8 : vector<1x64xf32> to vector<16x64xf32>
    %10 = arith.addf %6, %9 : vector<16x64xf32>
    %11 = arith.truncf %10 : vector<16x64xf32> to vector<16x64xbf16>
    %c0_8 = arith.constant 0 : index
    %c0_9 = arith.constant 0 : index
    %c0_10 = arith.constant 0 : index
    %12 = vector.load %arg7[%c0_8, %c0_9, %c0_10] : memref<1x16x64xbf16, #tpu.memory_space<vmem>>, vector<1x16x64xbf16>
    %13 = vector.shape_cast %12 : vector<1x16x64xbf16> to vector<16x64xbf16>
    %14 = vector.shape_cast %11 : vector<16x64xbf16> to vector<1x16x64xbf16>
    tpu.vector_store %arg7[%c0_8, %c0_9, %c0_10], %14 {strides = array<i32>} : memref<1x16x64xbf16, #tpu.memory_space<vmem>>, vector<1x16x64xbf16>,
    return
  }
  func.func @transform_0(%arg0: i32, %arg1: i32, %arg2: i32) -> (i32, i32, i32) {
    %c0_i32 = arith.constant 0 : i32
    %c0_i32_0 = arith.constant 0 : i32
    return %arg0, %arg1, %c0_i32 : i32, i32, i32
  }
  func.func @transform_1(%arg0: i32, %arg1: i32, %arg2: i32) -> (i32, i32, i32) {
    %c0_i32 = arith.constant 0 : i32
    %c0_i32_0 = arith.constant 0 : i32
    %c0_i32_1 = arith.constant 0 : i32
    return %arg0, %c0_i32, %c0_i32_0 : i32, i32, i32
  }
  func.func @transform_2(%arg0: i32, %arg1: i32, %arg2: i32) -> (i32, i32, i32) {
    %c0_i32 = arith.constant 0 : i32
    %c0_i32_0 = arith.constant 0 : i32
    return %arg0, %c0_i32, %arg2 : i32, i32, i32
  }
  func.func @transform_3(%arg0: i32, %arg1: i32, %arg2: i32) -> (i32, i32, i32) {
    %c0_i32 = arith.constant 0 : i32
    %c0_i32_0 = arith.constant 0 : i32
    return %arg0, %c0_i32, %arg2 : i32, i32, i32
  }
  func.func @transform_4(%arg0: i32, %arg1: i32, %arg2: i32) -> (i32, i32, i32) {
    %c0_i32 = arith.constant 0 : i32
    return %arg0, %arg1, %arg2 : i32, i32, i32
  }
}

module attributes {stable_mosaic.version = 11 : i64} {
  func.func @_norm_proj_kernel(%arg0: i32, %arg1: i32, %arg2: i32, %arg3: memref<1x8x32xf32, #tpu.memory_space<vmem>>, %arg4: memref<1x1x32xf32, #tpu.memory_space<vmem>>, %arg5: memref<1x32x32xbf16, #tpu.memory_space<vmem>>, %arg6: memref<1x1x32xf32, #tpu.memory_space<vmem>>, %arg7: memref<1x8x32xbf16, #tpu.memory_space<vmem>>, %arg8: memref<8x32xbf16, #tpu.memory_space<vmem>>) attributes {dimension_semantics = [#tpu.dimension_semantics<parallel>, #tpu.dimension_semantics<parallel>, #tpu.dimension_semantics<arbitrary>], iteration_bounds = array<i64: 2, 1, 1>, scalar_prefetch = 0 : i64, scratch_operands = 1 : i64, tpu.core_type = #tpu.core_type<tc>, window_params = [{transform_indices = @transform_0, window_bounds = array<i64: 1, 8, 32>}, {transform_indices = @transform_1, window_bounds = array<i64: 1, 1, 32>}, {transform_indices = @transform_2, window_bounds = array<i64: 1, 32, 32>}, {transform_indices = @transform_3, window_bounds = array<i64: 1, 1, 32>}, {transform_indices = @transform_4, window_bounds = array<i64: 1, 8, 32>}]} {
    %c0_i32 = arith.constant 0 : i32
    %0 = arith.cmpi eq, %arg2, %c0_i32 : i32
    %1 = arith.extui %0 : i1 to i32
    %c0_i32_0 = arith.constant 0 : i32
    %2 = arith.cmpi ne, %1, %c0_i32_0 : i32
    scf.if %2 {
      %c0_11 = arith.constant 0 : index
      %c0_12 = arith.constant 0 : index
      %c0_13 = arith.constant 0 : index
      %15 = vector.load %arg3[%c0_11, %c0_12, %c0_13] : memref<1x8x32xf32, #tpu.memory_space<vmem>>, vector<1x8x32xf32>
      %16 = vector.shape_cast %15 : vector<1x8x32xf32> to vector<8x32xf32>
      %17 = arith.mulf %16, %16 : vector<8x32xf32>
      %cst_14 = arith.constant dense<0.000000e+00> : vector<8xf32>
      %18 = vector.multi_reduction <add>, %17, %cst_14 [1] : vector<8x32xf32> to vector<8xf32>
      %19 = vector.shape_cast %18 : vector<8xf32> to vector<8x1xf32>
      %cst_15 = arith.constant 3.200000e+01 : f32
      %20 = vector.broadcast %cst_15 : f32 to vector<8x1xf32>
      %21 = arith.divf %19, %20 : vector<8x1xf32>
      %cst_16 = arith.constant 1.1920929E-7 : f32
      %22 = vector.broadcast %cst_16 : f32 to vector<8x1xf32>
      %23 = arith.addf %21, %22 : vector<8x1xf32>
      %24 = math.rsqrt %23 : vector<8x1xf32>
      %25 = vector.broadcast %24 : vector<8x1xf32> to vector<8x32xf32>
      %26 = arith.mulf %16, %25 : vector<8x32xf32>
      %c0_17 = arith.constant 0 : index
      %c0_18 = arith.constant 0 : index
      %c0_19 = arith.constant 0 : index
      %27 = vector.load %arg4[%c0_17, %c0_18, %c0_19] : memref<1x1x32xf32, #tpu.memory_space<vmem>>, vector<1x1x32xf32>
      %28 = vector.shape_cast %27 : vector<1x1x32xf32> to vector<1x32xf32>
      %29 = vector.broadcast %28 : vector<1x32xf32> to vector<8x32xf32>
      %30 = arith.mulf %26, %29 : vector<8x32xf32>
      %31 = arith.truncf %30 : vector<8x32xf32> to vector<8x32xbf16>
      %c0_20 = arith.constant 0 : index
      %c0_21 = arith.constant 0 : index
      %32 = vector.load %arg8[%c0_20, %c0_21] : memref<8x32xbf16, #tpu.memory_space<vmem>>, vector<8x32xbf16>
      tpu.vector_store %arg8[%c0_20, %c0_21], %31 {strides = array<i32>} : memref<8x32xbf16, #tpu.memory_space<vmem>>, vector<8x32xbf16>,
    } else {
    }
    %c0 = arith.constant 0 : index
    %c0_1 = arith.constant 0 : index
    %3 = vector.load %arg8[%c0, %c0_1] : memref<8x32xbf16, #tpu.memory_space<vmem>>, vector<8x32xbf16>
    %c0_2 = arith.constant 0 : index
    %c0_3 = arith.constant 0 : index
    %c0_4 = arith.constant 0 : index
    %4 = vector.load %arg5[%c0_2, %c0_3, %c0_4] : memref<1x32x32xbf16, #tpu.memory_space<vmem>>, vector<1x32x32xbf16>
    %5 = vector.shape_cast %4 : vector<1x32x32xbf16> to vector<32x32xbf16>
    %cst = arith.constant dense<0.000000e+00> : vector<8x32xf32>
    %6 = tpu.matmul %3, %5, %cst {dimension_numbers = #tpu.dot_dimension_numbers<[1], [0], [0], [1], [0, 0, 1, 1], [], []>} : vector<8x32xbf16>, vector<32x32xbf16>, vector<8x32xf32> -> vector<8x32xf32>
    %c0_5 = arith.constant 0 : index
    %c0_6 = arith.constant 0 : index
    %c0_7 = arith.constant 0 : index
    %7 = vector.load %arg6[%c0_5, %c0_6, %c0_7] : memref<1x1x32xf32, #tpu.memory_space<vmem>>, vector<1x1x32xf32>
    %8 = vector.shape_cast %7 : vector<1x1x32xf32> to vector<1x32xf32>
    %9 = vector.broadcast %8 : vector<1x32xf32> to vector<8x32xf32>
    %10 = arith.addf %6, %9 : vector<8x32xf32>
    %11 = arith.truncf %10 : vector<8x32xf32> to vector<8x32xbf16>
    %c0_8 = arith.constant 0 : index
    %c0_9 = arith.constant 0 : index
    %c0_10 = arith.constant 0 : index
    %12 = vector.load %arg7[%c0_8, %c0_9, %c0_10] : memref<1x8x32xbf16, #tpu.memory_space<vmem>>, vector<1x8x32xbf16>
    %13 = vector.shape_cast %12 : vector<1x8x32xbf16> to vector<8x32xbf16>
    %14 = vector.shape_cast %11 : vector<8x32xbf16> to vector<1x8x32xbf16>
    tpu.vector_store %arg7[%c0_8, %c0_9, %c0_10], %14 {strides = array<i32>} : memref<1x8x32xbf16, #tpu.memory_space<vmem>>, vector<1x8x32xbf16>,
    return
  }
  func.func @transform_0(%arg0: i32, %arg1: i32, %arg2: i32) -> (i32, i32, i32) {
    %c0_i32 = arith.constant 0 : i32
    %c0_i32_0 = arith.constant 0 : i32
    return %arg0, %arg1, %c0_i32 : i32, i32, i32
  }
  func.func @transform_1(%arg0: i32, %arg1: i32, %arg2: i32) -> (i32, i32, i32) {
    %c0_i32 = arith.constant 0 : i32
    %c0_i32_0 = arith.constant 0 : i32
    %c0_i32_1 = arith.constant 0 : i32
    return %arg0, %c0_i32, %c0_i32_0 : i32, i32, i32
  }
  func.func @transform_2(%arg0: i32, %arg1: i32, %arg2: i32) -> (i32, i32, i32) {
    %c0_i32 = arith.constant 0 : i32
    %c0_i32_0 = arith.constant 0 : i32
    return %arg0, %c0_i32, %arg2 : i32, i32, i32
  }
  func.func @transform_3(%arg0: i32, %arg1: i32, %arg2: i32) -> (i32, i32, i32) {
    %c0_i32 = arith.constant 0 : i32
    %c0_i32_0 = arith.constant 0 : i32
    return %arg0, %c0_i32, %arg2 : i32, i32, i32
  }
  func.func @transform_4(%arg0: i32, %arg1: i32, %arg2: i32) -> (i32, i32, i32) {
    %c0_i32 = arith.constant 0 : i32
    return %arg0, %arg1, %arg2 : i32, i32, i32
  }
}

module attributes {stable_mosaic.version = 11 : i64} {
  func.func @_attn_kernel(%arg0: i32, %arg1: i32, %arg2: i32, %arg3: memref<1x1x4x8x8xbf16, #tpu.memory_space<vmem>>, %arg4: memref<1x1x4x8x8xbf16, #tpu.memory_space<vmem>>, %arg5: memref<1x1x4x8x8xbf16, #tpu.memory_space<vmem>>, %arg6: memref<8x8xf32, #tpu.memory_space<vmem>>, %arg7: memref<8x8xf32, #tpu.memory_space<vmem>>, %arg8: memref<1x4x8x32xbf16, #tpu.memory_space<vmem>>, %arg9: memref<1x1x32xf32, #tpu.memory_space<vmem>>, %arg10: memref<1x1x8x32xf32, #tpu.memory_space<vmem>>, %arg11: memref<1x1x8x32xf32, #tpu.memory_space<vmem>>, %arg12: memref<4x8x1xf32, #tpu.memory_space<vmem>>, %arg13: memref<4x8x1xf32, #tpu.memory_space<vmem>>, %arg14: memref<4x8x8xf32, #tpu.memory_space<vmem>>) attributes {dimension_semantics = [#tpu.dimension_semantics<parallel>, #tpu.dimension_semantics<parallel>, #tpu.dimension_semantics<arbitrary>], iteration_bounds = array<i64: 2, 2, 1>, scalar_prefetch = 0 : i64, scratch_operands = 3 : i64, tpu.core_type = #tpu.core_type<tc>, window_params = [{transform_indices = @transform_0, window_bounds = array<i64: 1, 1, 4, 8, 8>}, {transform_indices = @transform_1, window_bounds = array<i64: 1, 1, 4, 8, 8>}, {transform_indices = @transform_2, window_bounds = array<i64: 1, 1, 4, 8, 8>}, {transform_indices = @transform_3, window_bounds = array<i64: 8, 8>}, {transform_indices = @transform_4, window_bounds = array<i64: 8, 8>}, {transform_indices = @transform_5, window_bounds = array<i64: 1, 4, 8, 32>}, {transform_indices = @transform_6, window_bounds = array<i64: 1, 1, 32>}, {transform_indices = @transform_7, window_bounds = array<i64: 1, 1, 8, 32>}, {transform_indices = @transform_8, window_bounds = array<i64: 1, 1, 8, 32>}]} {
    %c0_i32 = arith.constant 0 : i32
    %0 = arith.cmpi eq, %arg2, %c0_i32 : i32
    %1 = arith.extui %0 : i1 to i32
    %c0_i32_0 = arith.constant 0 : i32
    %2 = arith.cmpi ne, %1, %c0_i32_0 : i32
    scf.if %2 {
      %cst_43 = arith.constant 0xFF800000 : f32
      %52 = vector.broadcast %cst_43 : f32 to vector<4x8x1xf32>
      %c0_44 = arith.constant 0 : index
      %c0_45 = arith.constant 0 : index
      %c0_46 = arith.constant 0 : index
      %53 = vector.load %arg12[%c0_44, %c0_45, %c0_46] : memref<4x8x1xf32, #tpu.memory_space<vmem>>, vector<4x8x1xf32>
      tpu.vector_store %arg12[%c0_44, %c0_45, %c0_46], %52 {strides = array<i32>} : memref<4x8x1xf32, #tpu.memory_space<vmem>>, vector<4x8x1xf32>,
      %cst_47 = arith.constant 0.000000e+00 : f32
      %54 = vector.broadcast %cst_47 : f32 to vector<4x8x1xf32>
      %c0_48 = arith.constant 0 : index
      %c0_49 = arith.constant 0 : index
      %c0_50 = arith.constant 0 : index
      %55 = vector.load %arg13[%c0_48, %c0_49, %c0_50] : memref<4x8x1xf32, #tpu.memory_space<vmem>>, vector<4x8x1xf32>
      tpu.vector_store %arg13[%c0_48, %c0_49, %c0_50], %54 {strides = array<i32>} : memref<4x8x1xf32, #tpu.memory_space<vmem>>, vector<4x8x1xf32>,
      %cst_51 = arith.constant 0.000000e+00 : f32
      %56 = vector.broadcast %cst_51 : f32 to vector<4x8x8xf32>
      %c0_52 = arith.constant 0 : index
      %c0_53 = arith.constant 0 : index
      %c0_54 = arith.constant 0 : index
      %57 = vector.load %arg14[%c0_52, %c0_53, %c0_54] : memref<4x8x8xf32, #tpu.memory_space<vmem>>, vector<4x8x8xf32>
      tpu.vector_store %arg14[%c0_52, %c0_53, %c0_54], %56 {strides = array<i32>} : memref<4x8x8xf32, #tpu.memory_space<vmem>>, vector<4x8x8xf32>,
    } else {
    }
    %c0 = arith.constant 0 : index
    %c0_1 = arith.constant 0 : index
    %c0_2 = arith.constant 0 : index
    %c0_3 = arith.constant 0 : index
    %c0_4 = arith.constant 0 : index
    %3 = vector.load %arg3[%c0, %c0_1, %c0_2, %c0_3, %c0_4] : memref<1x1x4x8x8xbf16, #tpu.memory_space<vmem>>, vector<1x1x4x8x8xbf16>
    %4 = vector.shape_cast %3 : vector<1x1x4x8x8xbf16> to vector<4x8x8xbf16>
    %c0_5 = arith.constant 0 : index
    %c0_6 = arith.constant 0 : index
    %c0_7 = arith.constant 0 : index
    %c0_8 = arith.constant 0 : index
    %c0_9 = arith.constant 0 : index
    %5 = vector.load %arg4[%c0_5, %c0_6, %c0_7, %c0_8, %c0_9] : memref<1x1x4x8x8xbf16, #tpu.memory_space<vmem>>, vector<1x1x4x8x8xbf16>
    %6 = vector.shape_cast %5 : vector<1x1x4x8x8xbf16> to vector<4x8x8xbf16>
    %7 = arith.extf %6 : vector<4x8x8xbf16> to vector<4x8x8xf32>
    %c0_10 = arith.constant 0 : index
    %c0_11 = arith.constant 0 : index
    %c0_12 = arith.constant 0 : index
    %c0_13 = arith.constant 0 : index
    %c0_14 = arith.constant 0 : index
    %8 = vector.load %arg5[%c0_10, %c0_11, %c0_12, %c0_13, %c0_14] : memref<1x1x4x8x8xbf16, #tpu.memory_space<vmem>>, vector<1x1x4x8x8xbf16>
    %9 = vector.shape_cast %8 : vector<1x1x4x8x8xbf16> to vector<4x8x8xbf16>
    %c0_15 = arith.constant 0 : index
    %c0_16 = arith.constant 0 : index
    %10 = vector.load %arg6[%c0_15, %c0_16] : memref<8x8xf32, #tpu.memory_space<vmem>>, vector<8x8xf32>
    %c0_17 = arith.constant 0 : index
    %c0_18 = arith.constant 0 : index
    %11 = vector.load %arg7[%c0_17, %c0_18] : memref<8x8xf32, #tpu.memory_space<vmem>>, vector<8x8xf32>
    %12 = vector.shape_cast %10 : vector<8x8xf32> to vector<1x8x8xf32>
    %13 = vector.broadcast %12 : vector<1x8x8xf32> to vector<4x8x8xf32>
    %14 = arith.mulf %7, %13 : vector<4x8x8xf32>
    %15 = vector.extract_strided_slice %7 {offsets = [0, 0, 4], sizes = [4, 8, 4], strides = [1, 1, 1]} : vector<4x8x8xf32> to vector<4x8x4xf32>
    %16 = vector.extract_strided_slice %7 {offsets = [0, 0, 0], sizes = [4, 8, 4], strides = [1, 1, 1]} : vector<4x8x8xf32> to vector<4x8x4xf32>
    %17 = tpu.concatenate %15, %16 in 2 : vector<4x8x4xf32>, vector<4x8x4xf32> -> vector<4x8x8xf32>
    %18 = vector.shape_cast %11 : vector<8x8xf32> to vector<1x8x8xf32>
    %19 = vector.broadcast %18 : vector<1x8x8xf32> to vector<4x8x8xf32>
    %20 = arith.mulf %17, %19 : vector<4x8x8xf32>
    %21 = arith.addf %14, %20 : vector<4x8x8xf32>
    %22 = arith.truncf %21 : vector<4x8x8xf32> to vector<4x8x8xbf16>
    "tpu.trace_start"() <{level = 10 : i32, message = "hqd,hkd->hqk"}> : () -> ()
    %cst = arith.constant dense<0.000000e+00> : vector<4x8x8xf32>
    %23 = tpu.matmul %4, %22, %cst {dimension_numbers = #tpu.dot_dimension_numbers<[2], [2], [1], [1], [0, 0, 0, 1, 1, 1], [0], [0]>} : vector<4x8x8xbf16>, vector<4x8x8xbf16>, vector<4x8x8xf32> -> vector<4x8x8xf32>
    "tpu.trace_stop"() : () -> ()
    %cst_19 = arith.constant 0.353553385 : f32
    %24 = vector.broadcast %cst_19 : f32 to vector<4x8x8xf32>
    %25 = arith.mulf %23, %24 : vector<4x8x8xf32>
    %c0_20 = arith.constant 0 : index
    %c0_21 = arith.constant 0 : index
    %c0_22 = arith.constant 0 : index
    %26 = vector.load %arg12[%c0_20, %c0_21, %c0_22] : memref<4x8x1xf32, #tpu.memory_space<vmem>>, vector<4x8x1xf32>
    %cst_23 = arith.constant dense<0xFF800000> : vector<4x8xf32>
    %27 = vector.multi_reduction <maximumf>, %25, %cst_23 [2] : vector<4x8x8xf32> to vector<4x8xf32>
    %28 = vector.shape_cast %27 : vector<4x8xf32> to vector<4x8x1xf32>
    %29 = arith.maximumf %26, %28 : vector<4x8x1xf32>
    %30 = arith.subf %26, %29 : vector<4x8x1xf32>
    %31 = math.exp %30 : vector<4x8x1xf32>
    %32 = vector.broadcast %29 : vector<4x8x1xf32> to vector<4x8x8xf32>
    %33 = arith.subf %25, %32 : vector<4x8x8xf32>
    %34 = math.exp %33 : vector<4x8x8xf32>
    %c0_24 = arith.constant 0 : index
    %c0_25 = arith.constant 0 : index
    %c0_26 = arith.constant 0 : index
    %35 = vector.load %arg13[%c0_24, %c0_25, %c0_26] : memref<4x8x1xf32, #tpu.memory_space<vmem>>, vector<4x8x1xf32>
    %36 = arith.mulf %31, %35 : vector<4x8x1xf32>
    %cst_27 = arith.constant dense<0.000000e+00> : vector<4x8xf32>
    %37 = vector.multi_reduction <add>, %34, %cst_27 [2] : vector<4x8x8xf32> to vector<4x8xf32>
    %38 = vector.shape_cast %37 : vector<4x8xf32> to vector<4x8x1xf32>
    %39 = arith.addf %36, %38 : vector<4x8x1xf32>
    %c0_28 = arith.constant 0 : index
    %c0_29 = arith.constant 0 : index
    %c0_30 = arith.constant 0 : index
    %40 = vector.load %arg13[%c0_28, %c0_29, %c0_30] : memref<4x8x1xf32, #tpu.memory_space<vmem>>, vector<4x8x1xf32>
    tpu.vector_store %arg13[%c0_28, %c0_29, %c0_30], %39 {strides = array<i32>} : memref<4x8x1xf32, #tpu.memory_space<vmem>>, vector<4x8x1xf32>,
    %c0_31 = arith.constant 0 : index
    %c0_32 = arith.constant 0 : index
    %c0_33 = arith.constant 0 : index
    %41 = vector.load %arg14[%c0_31, %c0_32, %c0_33] : memref<4x8x8xf32, #tpu.memory_space<vmem>>, vector<4x8x8xf32>
    %42 = vector.broadcast %31 : vector<4x8x1xf32> to vector<4x8x8xf32>
    %43 = arith.mulf %42, %41 : vector<4x8x8xf32>
    %44 = arith.truncf %34 : vector<4x8x8xf32> to vector<4x8x8xbf16>
    "tpu.trace_start"() <{level = 10 : i32, message = "hqk,hkd->hqd"}> : () -> ()
    %cst_34 = arith.constant dense<0.000000e+00> : vector<4x8x8xf32>
    %45 = tpu.matmul %44, %9, %cst_34 {dimension_numbers = #tpu.dot_dimension_numbers<[2], [1], [1], [2], [0, 0, 0, 1, 1, 2], [0], [0]>} : vector<4x8x8xbf16>, vector<4x8x8xbf16>, vector<4x8x8xf32> -> vector<4x8x8xf32>
    "tpu.trace_stop"() : () -> ()
    %46 = arith.addf %43, %45 : vector<4x8x8xf32>
    %c0_35 = arith.constant 0 : index
    %c0_36 = arith.constant 0 : index
    %c0_37 = arith.constant 0 : index
    %47 = vector.load %arg14[%c0_35, %c0_36, %c0_37] : memref<4x8x8xf32, #tpu.memory_space<vmem>>, vector<4x8x8xf32>
    tpu.vector_store %arg14[%c0_35, %c0_36, %c0_37], %46 {strides = array<i32>} : memref<4x8x8xf32, #tpu.memory_space<vmem>>, vector<4x8x8xf32>,
    %c0_38 = arith.constant 0 : index
    %c0_39 = arith.constant 0 : index
    %c0_40 = arith.constant 0 : index
    %48 = vector.load %arg12[%c0_38, %c0_39, %c0_40] : memref<4x8x1xf32, #tpu.memory_space<vmem>>, vector<4x8x1xf32>
    tpu.vector_store %arg12[%c0_38, %c0_39, %c0_40], %29 {strides = array<i32>} : memref<4x8x1xf32, #tpu.memory_space<vmem>>, vector<4x8x1xf32>,
    %c0_i32_41 = arith.constant 0 : i32
    %49 = arith.cmpi eq, %arg2, %c0_i32_41 : i32
    %50 = arith.extui %49 : i1 to i32
    %c0_i32_42 = arith.constant 0 : i32
    %51 = arith.cmpi ne, %50, %c0_i32_42 : i32
    scf.if %51 {
      %c0_43 = arith.constant 0 : index
      %c0_44 = arith.constant 0 : index
      %c0_45 = arith.constant 0 : index
      %52 = vector.load %arg14[%c0_43, %c0_44, %c0_45] : memref<4x8x8xf32, #tpu.memory_space<vmem>>, vector<4x8x8xf32>
      %c0_46 = arith.constant 0 : index
      %c0_47 = arith.constant 0 : index
      %c0_48 = arith.constant 0 : index
      %53 = vector.load %arg13[%c0_46, %c0_47, %c0_48] : memref<4x8x1xf32, #tpu.memory_space<vmem>>, vector<4x8x1xf32>
      %54 = vector.broadcast %53 : vector<4x8x1xf32> to vector<4x8x8xf32>
      %55 = arith.divf %52, %54 : vector<4x8x8xf32>
      %c0_49 = arith.constant 0 : index
      %c0_50 = arith.constant 0 : index
      %c0_51 = arith.constant 0 : index
      %c0_52 = arith.constant 0 : index
      %56 = vector.load %arg10[%c0_49, %c0_50, %c0_51, %c0_52] : memref<1x1x8x32xf32, #tpu.memory_space<vmem>>, vector<1x1x8x32xf32>
      %57 = vector.shape_cast %56 : vector<1x1x8x32xf32> to vector<8x32xf32>
      %c0_53 = arith.constant 0 : index
      %c0_54 = arith.constant 0 : index
      %c0_55 = arith.constant 0 : index
      %58 = vector.load %arg9[%c0_53, %c0_54, %c0_55] : memref<1x1x32xf32, #tpu.memory_space<vmem>>, vector<1x1x32xf32>
      %59 = vector.shape_cast %58 : vector<1x1x32xf32> to vector<1x32xf32>
      %60 = vector.broadcast %59 : vector<1x32xf32> to vector<8x32xf32>
      %61 = arith.addf %57, %60 : vector<8x32xf32>
      %62 = vector.extract_strided_slice %55 {offsets = [0, 0, 0], sizes = [1, 8, 8], strides = [1, 1, 1]} : vector<4x8x8xf32> to vector<1x8x8xf32>
      %63 = vector.shape_cast %62 : vector<1x8x8xf32> to vector<8x8xf32>
      %64 = arith.truncf %63 : vector<8x8xf32> to vector<8x8xbf16>
      %c0_56 = arith.constant 0 : index
      %c0_57 = arith.constant 0 : index
      %c0_58 = arith.constant 0 : index
      %c0_59 = arith.constant 0 : index
      %65 = vector.load %arg8[%c0_56, %c0_57, %c0_58, %c0_59] : memref<1x4x8x32xbf16, #tpu.memory_space<vmem>>, vector<1x1x8x32xbf16>
      %66 = vector.shape_cast %65 : vector<1x1x8x32xbf16> to vector<8x32xbf16>
      %cst_60 = arith.constant dense<0.000000e+00> : vector<8x32xf32>
      %67 = tpu.matmul %64, %66, %cst_60 {dimension_numbers = #tpu.dot_dimension_numbers<[1], [0], [0], [1], [0, 0, 1, 1], [], []>} : vector<8x8xbf16>, vector<8x32xbf16>, vector<8x32xf32> -> vector<8x32xf32>
      %68 = arith.addf %61, %67 : vector<8x32xf32>
      %69 = vector.extract_strided_slice %55 {offsets = [1, 0, 0], sizes = [1, 8, 8], strides = [1, 1, 1]} : vector<4x8x8xf32> to vector<1x8x8xf32>
      %70 = vector.shape_cast %69 : vector<1x8x8xf32> to vector<8x8xf32>
      %71 = arith.truncf %70 : vector<8x8xf32> to vector<8x8xbf16>
      %c0_61 = arith.constant 0 : index
      %c1 = arith.constant 1 : index
      %c0_62 = arith.constant 0 : index
      %c0_63 = arith.constant 0 : index
      %72 = vector.load %arg8[%c0_61, %c1, %c0_62, %c0_63] : memref<1x4x8x32xbf16, #tpu.memory_space<vmem>>, vector<1x1x8x32xbf16>
      %73 = vector.shape_cast %72 : vector<1x1x8x32xbf16> to vector<8x32xbf16>
      %cst_64 = arith.constant dense<0.000000e+00> : vector<8x32xf32>
      %74 = tpu.matmul %71, %73, %cst_64 {dimension_numbers = #tpu.dot_dimension_numbers<[1], [0], [0], [1], [0, 0, 1, 1], [], []>} : vector<8x8xbf16>, vector<8x32xbf16>, vector<8x32xf32> -> vector<8x32xf32>
      %75 = arith.addf %68, %74 : vector<8x32xf32>
      %76 = vector.extract_strided_slice %55 {offsets = [2, 0, 0], sizes = [1, 8, 8], strides = [1, 1, 1]} : vector<4x8x8xf32> to vector<1x8x8xf32>
      %77 = vector.shape_cast %76 : vector<1x8x8xf32> to vector<8x8xf32>
      %78 = arith.truncf %77 : vector<8x8xf32> to vector<8x8xbf16>
      %c0_65 = arith.constant 0 : index
      %c2 = arith.constant 2 : index
      %c0_66 = arith.constant 0 : index
      %c0_67 = arith.constant 0 : index
      %79 = vector.load %arg8[%c0_65, %c2, %c0_66, %c0_67] : memref<1x4x8x32xbf16, #tpu.memory_space<vmem>>, vector<1x1x8x32xbf16>
      %80 = vector.shape_cast %79 : vector<1x1x8x32xbf16> to vector<8x32xbf16>
      %cst_68 = arith.constant dense<0.000000e+00> : vector<8x32xf32>
      %81 = tpu.matmul %78, %80, %cst_68 {dimension_numbers = #tpu.dot_dimension_numbers<[1], [0], [0], [1], [0, 0, 1, 1], [], []>} : vector<8x8xbf16>, vector<8x32xbf16>, vector<8x32xf32> -> vector<8x32xf32>
      %82 = arith.addf %75, %81 : vector<8x32xf32>
      %83 = vector.extract_strided_slice %55 {offsets = [3, 0, 0], sizes = [1, 8, 8], strides = [1, 1, 1]} : vector<4x8x8xf32> to vector<1x8x8xf32>
      %84 = vector.shape_cast %83 : vector<1x8x8xf32> to vector<8x8xf32>
      %85 = arith.truncf %84 : vector<8x8xf32> to vector<8x8xbf16>
      %c0_69 = arith.constant 0 : index
      %c3 = arith.constant 3 : index
      %c0_70 = arith.constant 0 : index
      %c0_71 = arith.constant 0 : index
      %86 = vector.load %arg8[%c0_69, %c3, %c0_70, %c0_71] : memref<1x4x8x32xbf16, #tpu.memory_space<vmem>>, vector<1x1x8x32xbf16>
      %87 = vector.shape_cast %86 : vector<1x1x8x32xbf16> to vector<8x32xbf16>
      %cst_72 = arith.constant dense<0.000000e+00> : vector<8x32xf32>
      %88 = tpu.matmul %85, %87, %cst_72 {dimension_numbers = #tpu.dot_dimension_numbers<[1], [0], [0], [1], [0, 0, 1, 1], [], []>} : vector<8x8xbf16>, vector<8x32xbf16>, vector<8x32xf32> -> vector<8x32xf32>
      %89 = arith.addf %82, %88 : vector<8x32xf32>
      %c0_73 = arith.constant 0 : index
      %c0_74 = arith.constant 0 : index
      %c0_75 = arith.constant 0 : index
      %c0_76 = arith.constant 0 : index
      %90 = vector.load %arg11[%c0_73, %c0_74, %c0_75, %c0_76] : memref<1x1x8x32xf32, #tpu.memory_space<vmem>>, vector<1x1x8x32xf32>
      %91 = vector.shape_cast %90 : vector<1x1x8x32xf32> to vector<8x32xf32>
      %92 = vector.shape_cast %89 : vector<8x32xf32> to vector<1x1x8x32xf32>
      tpu.vector_store %arg11[%c0_73, %c0_74, %c0_75, %c0_76], %92 {strides = array<i32>} : memref<1x1x8x32xf32, #tpu.memory_space<vmem>>, vector<1x1x8x32xf32>,
    } else {
    }
    return
  }
  func.func @transform_0(%arg0: i32, %arg1: i32, %arg2: i32) -> (i32, i32, i32, i32, i32) {
    %c0_i32 = arith.constant 0 : i32
    %c0_i32_0 = arith.constant 0 : i32
    %c0_i32_1 = arith.constant 0 : i32
    %c0_i32_2 = arith.constant 0 : i32
    %c0_i32_3 = arith.constant 0 : i32
    return %arg0, %c0_i32, %c0_i32_0, %c0_i32_1, %c0_i32_2 : i32, i32, i32, i32, i32
  }
  func.func @transform_1(%arg0: i32, %arg1: i32, %arg2: i32) -> (i32, i32, i32, i32, i32) {
    %c0_i32 = arith.constant 0 : i32
    %c0_i32_0 = arith.constant 0 : i32
    %c0_i32_1 = arith.constant 0 : i32
    return %arg0, %arg1, %c0_i32, %arg2, %c0_i32_0 : i32, i32, i32, i32, i32
  }
  func.func @transform_2(%arg0: i32, %arg1: i32, %arg2: i32) -> (i32, i32, i32, i32, i32) {
    %c0_i32 = arith.constant 0 : i32
    %c0_i32_0 = arith.constant 0 : i32
    %c0_i32_1 = arith.constant 0 : i32
    return %arg0, %arg1, %c0_i32, %arg2, %c0_i32_0 : i32, i32, i32, i32, i32
  }
  func.func @transform_3(%arg0: i32, %arg1: i32, %arg2: i32) -> (i32, i32) {
    %c0_i32 = arith.constant 0 : i32
    %c0_i32_0 = arith.constant 0 : i32
    return %arg2, %c0_i32 : i32, i32
  }
  func.func @transform_4(%arg0: i32, %arg1: i32, %arg2: i32) -> (i32, i32) {
    %c0_i32 = arith.constant 0 : i32
    %c0_i32_0 = arith.constant 0 : i32
    return %arg2, %c0_i32 : i32, i32
  }
  func.func @transform_5(%arg0: i32, %arg1: i32, %arg2: i32) -> (i32, i32, i32, i32) {
    %c0_i32 = arith.constant 0 : i32
    %c0_i32_0 = arith.constant 0 : i32
    %c0_i32_1 = arith.constant 0 : i32
    %c0_i32_2 = arith.constant 0 : i32
    return %arg0, %c0_i32, %c0_i32_0, %c0_i32_1 : i32, i32, i32, i32
  }
  func.func @transform_6(%arg0: i32, %arg1: i32, %arg2: i32) -> (i32, i32, i32) {
    %c0_i32 = arith.constant 0 : i32
    %c0_i32_0 = arith.constant 0 : i32
    %c0_i32_1 = arith.constant 0 : i32
    return %arg0, %c0_i32, %c0_i32_0 : i32, i32, i32
  }
  func.func @transform_7(%arg0: i32, %arg1: i32, %arg2: i32) -> (i32, i32, i32, i32) {
    %c0_i32 = arith.constant 0 : i32
    %c0_i32_0 = arith.constant 0 : i32
    %c0_i32_1 = arith.constant 0 : i32
    %c0_i32_2 = arith.constant 0 : i32
    return %arg0, %c0_i32, %c0_i32_0, %c0_i32_1 : i32, i32, i32, i32
  }
  func.func @transform_8(%arg0: i32, %arg1: i32, %arg2: i32) -> (i32, i32, i32, i32) {
    %c0_i32 = arith.constant 0 : i32
    %c0_i32_0 = arith.constant 0 : i32
    %c0_i32_1 = arith.constant 0 : i32
    return %arg0, %arg1, %c0_i32, %c0_i32_0 : i32, i32, i32, i32
  }
}

module attributes {stable_mosaic.version = 11 : i64} {
  func.func @_norm_proj_kernel(%arg0: i32, %arg1: i32, %arg2: i32, %arg3: memref<1x16x32xf32, #tpu.memory_space<vmem>>, %arg4: memref<1x1x32xf32, #tpu.memory_space<vmem>>, %arg5: memref<1x32x32xbf16, #tpu.memory_space<vmem>>, %arg6: memref<1x1x32xf32, #tpu.memory_space<vmem>>, %arg7: memref<1x16x32xbf16, #tpu.memory_space<vmem>>, %arg8: memref<16x32xbf16, #tpu.memory_space<vmem>>) attributes {dimension_semantics = [#tpu.dimension_semantics<parallel>, #tpu.dimension_semantics<parallel>, #tpu.dimension_semantics<arbitrary>], iteration_bounds = array<i64: 2, 1, 1>, scalar_prefetch = 0 : i64, scratch_operands = 1 : i64, tpu.core_type = #tpu.core_type<tc>, window_params = [{transform_indices = @transform_0, window_bounds = array<i64: 1, 16, 32>}, {transform_indices = @transform_1, window_bounds = array<i64: 1, 1, 32>}, {transform_indices = @transform_2, window_bounds = array<i64: 1, 32, 32>}, {transform_indices = @transform_3, window_bounds = array<i64: 1, 1, 32>}, {transform_indices = @transform_4, window_bounds = array<i64: 1, 16, 32>}]} {
    %c0_i32 = arith.constant 0 : i32
    %0 = arith.cmpi eq, %arg2, %c0_i32 : i32
    %1 = arith.extui %0 : i1 to i32
    %c0_i32_0 = arith.constant 0 : i32
    %2 = arith.cmpi ne, %1, %c0_i32_0 : i32
    scf.if %2 {
      %c0_11 = arith.constant 0 : index
      %c0_12 = arith.constant 0 : index
      %c0_13 = arith.constant 0 : index
      %15 = vector.load %arg3[%c0_11, %c0_12, %c0_13] : memref<1x16x32xf32, #tpu.memory_space<vmem>>, vector<1x16x32xf32>
      %16 = vector.shape_cast %15 : vector<1x16x32xf32> to vector<16x32xf32>
      %17 = arith.mulf %16, %16 : vector<16x32xf32>
      %cst_14 = arith.constant dense<0.000000e+00> : vector<16xf32>
      %18 = vector.multi_reduction <add>, %17, %cst_14 [1] : vector<16x32xf32> to vector<16xf32>
      %19 = vector.shape_cast %18 : vector<16xf32> to vector<16x1xf32>
      %cst_15 = arith.constant 3.200000e+01 : f32
      %20 = vector.broadcast %cst_15 : f32 to vector<16x1xf32>
      %21 = arith.divf %19, %20 : vector<16x1xf32>
      %cst_16 = arith.constant 1.1920929E-7 : f32
      %22 = vector.broadcast %cst_16 : f32 to vector<16x1xf32>
      %23 = arith.addf %21, %22 : vector<16x1xf32>
      %24 = math.rsqrt %23 : vector<16x1xf32>
      %25 = vector.broadcast %24 : vector<16x1xf32> to vector<16x32xf32>
      %26 = arith.mulf %16, %25 : vector<16x32xf32>
      %c0_17 = arith.constant 0 : index
      %c0_18 = arith.constant 0 : index
      %c0_19 = arith.constant 0 : index
      %27 = vector.load %arg4[%c0_17, %c0_18, %c0_19] : memref<1x1x32xf32, #tpu.memory_space<vmem>>, vector<1x1x32xf32>
      %28 = vector.shape_cast %27 : vector<1x1x32xf32> to vector<1x32xf32>
      %29 = vector.broadcast %28 : vector<1x32xf32> to vector<16x32xf32>
      %30 = arith.mulf %26, %29 : vector<16x32xf32>
      %31 = arith.truncf %30 : vector<16x32xf32> to vector<16x32xbf16>
      %c0_20 = arith.constant 0 : index
      %c0_21 = arith.constant 0 : index
      %32 = vector.load %arg8[%c0_20, %c0_21] : memref<16x32xbf16, #tpu.memory_space<vmem>>, vector<16x32xbf16>
      tpu.vector_store %arg8[%c0_20, %c0_21], %31 {strides = array<i32>} : memref<16x32xbf16, #tpu.memory_space<vmem>>, vector<16x32xbf16>,
    } else {
    }
    %c0 = arith.constant 0 : index
    %c0_1 = arith.constant 0 : index
    %3 = vector.load %arg8[%c0, %c0_1] : memref<16x32xbf16, #tpu.memory_space<vmem>>, vector<16x32xbf16>
    %c0_2 = arith.constant 0 : index
    %c0_3 = arith.constant 0 : index
    %c0_4 = arith.constant 0 : index
    %4 = vector.load %arg5[%c0_2, %c0_3, %c0_4] : memref<1x32x32xbf16, #tpu.memory_space<vmem>>, vector<1x32x32xbf16>
    %5 = vector.shape_cast %4 : vector<1x32x32xbf16> to vector<32x32xbf16>
    %cst = arith.constant dense<0.000000e+00> : vector<16x32xf32>
    %6 = tpu.matmul %3, %5, %cst {dimension_numbers = #tpu.dot_dimension_numbers<[1], [0], [0], [1], [0, 0, 1, 1], [], []>} : vector<16x32xbf16>, vector<32x32xbf16>, vector<16x32xf32> -> vector<16x32xf32>
    %c0_5 = arith.constant 0 : index
    %c0_6 = arith.constant 0 : index
    %c0_7 = arith.constant 0 : index
    %7 = vector.load %arg6[%c0_5, %c0_6, %c0_7] : memref<1x1x32xf32, #tpu.memory_space<vmem>>, vector<1x1x32xf32>
    %8 = vector.shape_cast %7 : vector<1x1x32xf32> to vector<1x32xf32>
    %9 = vector.broadcast %8 : vector<1x32xf32> to vector<16x32xf32>
    %10 = arith.addf %6, %9 : vector<16x32xf32>
    %11 = arith.truncf %10 : vector<16x32xf32> to vector<16x32xbf16>
    %c0_8 = arith.constant 0 : index
    %c0_9 = arith.constant 0 : index
    %c0_10 = arith.constant 0 : index
    %12 = vector.load %arg7[%c0_8, %c0_9, %c0_10] : memref<1x16x32xbf16, #tpu.memory_space<vmem>>, vector<1x16x32xbf16>
    %13 = vector.shape_cast %12 : vector<1x16x32xbf16> to vector<16x32xbf16>
    %14 = vector.shape_cast %11 : vector<16x32xbf16> to vector<1x16x32xbf16>
    tpu.vector_store %arg7[%c0_8, %c0_9, %c0_10], %14 {strides = array<i32>} : memref<1x16x32xbf16, #tpu.memory_space<vmem>>, vector<1x16x32xbf16>,
    return
  }
  func.func @transform_0(%arg0: i32, %arg1: i32, %arg2: i32) -> (i32, i32, i32) {
    %c0_i32 = arith.constant 0 : i32
    %c0_i32_0 = arith.constant 0 : i32
    return %arg0, %arg1, %c0_i32 : i32, i32, i32
  }
  func.func @transform_1(%arg0: i32, %arg1: i32, %arg2: i32) -> (i32, i32, i32) {
    %c0_i32 = arith.constant 0 : i32
    %c0_i32_0 = arith.constant 0 : i32
    %c0_i32_1 = arith.constant 0 : i32
    return %arg0, %c0_i32, %c0_i32_0 : i32, i32, i32
  }
  func.func @transform_2(%arg0: i32, %arg1: i32, %arg2: i32) -> (i32, i32, i32) {
    %c0_i32 = arith.constant 0 : i32
    %c0_i32_0 = arith.constant 0 : i32
    return %arg0, %c0_i32, %arg2 : i32, i32, i32
  }
  func.func @transform_3(%arg0: i32, %arg1: i32, %arg2: i32) -> (i32, i32, i32) {
    %c0_i32 = arith.constant 0 : i32
    %c0_i32_0 = arith.constant 0 : i32
    return %arg0, %c0_i32, %arg2 : i32, i32, i32
  }
  func.func @transform_4(%arg0: i32, %arg1: i32, %arg2: i32) -> (i32, i32, i32) {
    %c0_i32 = arith.constant 0 : i32
    return %arg0, %arg1, %arg2 : i32, i32, i32
  }
}

module attributes {stable_mosaic.version = 11 : i64} {
  func.func @_norm_proj_kernel(%arg0: i32, %arg1: i32, %arg2: i32, %arg3: memref<1x8x32xf32, #tpu.memory_space<vmem>>, %arg4: memref<1x1x32xf32, #tpu.memory_space<vmem>>, %arg5: memref<1x32x64xbf16, #tpu.memory_space<vmem>>, %arg6: memref<1x1x64xf32, #tpu.memory_space<vmem>>, %arg7: memref<1x8x64xbf16, #tpu.memory_space<vmem>>, %arg8: memref<8x32xbf16, #tpu.memory_space<vmem>>) attributes {dimension_semantics = [#tpu.dimension_semantics<parallel>, #tpu.dimension_semantics<parallel>, #tpu.dimension_semantics<arbitrary>], iteration_bounds = array<i64: 2, 1, 1>, scalar_prefetch = 0 : i64, scratch_operands = 1 : i64, tpu.core_type = #tpu.core_type<tc>, window_params = [{transform_indices = @transform_0, window_bounds = array<i64: 1, 8, 32>}, {pipeline_mode = #tpu.pipeline_mode<synchronous>, transform_indices = @transform_1, window_bounds = array<i64: 1, 1, 32>}, {transform_indices = @transform_2, window_bounds = array<i64: 1, 32, 64>}, {transform_indices = @transform_3, window_bounds = array<i64: 1, 1, 64>}, {transform_indices = @transform_4, window_bounds = array<i64: 1, 8, 64>}]} {
    %c0_i32 = arith.constant 0 : i32
    %0 = arith.cmpi eq, %arg2, %c0_i32 : i32
    %1 = arith.extui %0 : i1 to i32
    %c0_i32_0 = arith.constant 0 : i32
    %2 = arith.cmpi ne, %1, %c0_i32_0 : i32
    scf.if %2 {
      %c0_11 = arith.constant 0 : index
      %c0_12 = arith.constant 0 : index
      %c0_13 = arith.constant 0 : index
      %15 = vector.load %arg3[%c0_11, %c0_12, %c0_13] : memref<1x8x32xf32, #tpu.memory_space<vmem>>, vector<1x8x32xf32>
      %16 = vector.shape_cast %15 : vector<1x8x32xf32> to vector<8x32xf32>
      %17 = arith.mulf %16, %16 : vector<8x32xf32>
      %cst_14 = arith.constant dense<0.000000e+00> : vector<8xf32>
      %18 = vector.multi_reduction <add>, %17, %cst_14 [1] : vector<8x32xf32> to vector<8xf32>
      %19 = vector.shape_cast %18 : vector<8xf32> to vector<8x1xf32>
      %cst_15 = arith.constant 3.200000e+01 : f32
      %20 = vector.broadcast %cst_15 : f32 to vector<8x1xf32>
      %21 = arith.divf %19, %20 : vector<8x1xf32>
      %cst_16 = arith.constant 1.1920929E-7 : f32
      %22 = vector.broadcast %cst_16 : f32 to vector<8x1xf32>
      %23 = arith.addf %21, %22 : vector<8x1xf32>
      %24 = math.rsqrt %23 : vector<8x1xf32>
      %25 = vector.broadcast %24 : vector<8x1xf32> to vector<8x32xf32>
      %26 = arith.mulf %16, %25 : vector<8x32xf32>
      %c0_17 = arith.constant 0 : index
      %c0_18 = arith.constant 0 : index
      %c0_19 = arith.constant 0 : index
      %27 = vector.load %arg4[%c0_17, %c0_18, %c0_19] : memref<1x1x32xf32, #tpu.memory_space<vmem>>, vector<1x1x32xf32>
      %28 = vector.shape_cast %27 : vector<1x1x32xf32> to vector<1x32xf32>
      %29 = vector.broadcast %28 : vector<1x32xf32> to vector<8x32xf32>
      %30 = arith.mulf %26, %29 : vector<8x32xf32>
      %31 = arith.truncf %30 : vector<8x32xf32> to vector<8x32xbf16>
      %c0_20 = arith.constant 0 : index
      %c0_21 = arith.constant 0 : index
      %32 = vector.load %arg8[%c0_20, %c0_21] : memref<8x32xbf16, #tpu.memory_space<vmem>>, vector<8x32xbf16>
      tpu.vector_store %arg8[%c0_20, %c0_21], %31 {strides = array<i32>} : memref<8x32xbf16, #tpu.memory_space<vmem>>, vector<8x32xbf16>,
    } else {
    }
    %c0 = arith.constant 0 : index
    %c0_1 = arith.constant 0 : index
    %3 = vector.load %arg8[%c0, %c0_1] : memref<8x32xbf16, #tpu.memory_space<vmem>>, vector<8x32xbf16>
    %c0_2 = arith.constant 0 : index
    %c0_3 = arith.constant 0 : index
    %c0_4 = arith.constant 0 : index
    %4 = vector.load %arg5[%c0_2, %c0_3, %c0_4] : memref<1x32x64xbf16, #tpu.memory_space<vmem>>, vector<1x32x64xbf16>
    %5 = vector.shape_cast %4 : vector<1x32x64xbf16> to vector<32x64xbf16>
    %cst = arith.constant dense<0.000000e+00> : vector<8x64xf32>
    %6 = tpu.matmul %3, %5, %cst {dimension_numbers = #tpu.dot_dimension_numbers<[1], [0], [0], [1], [0, 0, 1, 1], [], []>} : vector<8x32xbf16>, vector<32x64xbf16>, vector<8x64xf32> -> vector<8x64xf32>
    %c0_5 = arith.constant 0 : index
    %c0_6 = arith.constant 0 : index
    %c0_7 = arith.constant 0 : index
    %7 = vector.load %arg6[%c0_5, %c0_6, %c0_7] : memref<1x1x64xf32, #tpu.memory_space<vmem>>, vector<1x1x64xf32>
    %8 = vector.shape_cast %7 : vector<1x1x64xf32> to vector<1x64xf32>
    %9 = vector.broadcast %8 : vector<1x64xf32> to vector<8x64xf32>
    %10 = arith.addf %6, %9 : vector<8x64xf32>
    %11 = arith.truncf %10 : vector<8x64xf32> to vector<8x64xbf16>
    %c0_8 = arith.constant 0 : index
    %c0_9 = arith.constant 0 : index
    %c0_10 = arith.constant 0 : index
    %12 = vector.load %arg7[%c0_8, %c0_9, %c0_10] : memref<1x8x64xbf16, #tpu.memory_space<vmem>>, vector<1x8x64xbf16>
    %13 = vector.shape_cast %12 : vector<1x8x64xbf16> to vector<8x64xbf16>
    %14 = vector.shape_cast %11 : vector<8x64xbf16> to vector<1x8x64xbf16>
    tpu.vector_store %arg7[%c0_8, %c0_9, %c0_10], %14 {strides = array<i32>} : memref<1x8x64xbf16, #tpu.memory_space<vmem>>, vector<1x8x64xbf16>,
    return
  }
  func.func @transform_0(%arg0: i32, %arg1: i32, %arg2: i32) -> (i32, i32, i32) {
    %c0_i32 = arith.constant 0 : i32
    %c0_i32_0 = arith.constant 0 : i32
    %c0_i32_1 = arith.constant 0 : i32
    return %c0_i32, %arg1, %c0_i32_0 : i32, i32, i32
  }
  func.func @transform_1(%arg0: i32, %arg1: i32, %arg2: i32) -> (i32, i32, i32) {
    %c0_i32 = arith.constant 0 : i32
    %c0_i32_0 = arith.constant 0 : i32
    %c0_i32_1 = arith.constant 0 : i32
    %c0_i32_2 = arith.constant 0 : i32
    return %c0_i32, %c0_i32_0, %c0_i32_1 : i32, i32, i32
  }
  func.func @transform_2(%arg0: i32, %arg1: i32, %arg2: i32) -> (i32, i32, i32) {
    %c0_i32 = arith.constant 0 : i32
    %c0_i32_0 = arith.constant 0 : i32
    return %arg0, %c0_i32, %arg2 : i32, i32, i32
  }
  func.func @transform_3(%arg0: i32, %arg1: i32, %arg2: i32) -> (i32, i32, i32) {
    %c0_i32 = arith.constant 0 : i32
    %c0_i32_0 = arith.constant 0 : i32
    return %arg0, %c0_i32, %arg2 : i32, i32, i32
  }
  func.func @transform_4(%arg0: i32, %arg1: i32, %arg2: i32) -> (i32, i32, i32) {
    %c0_i32 = arith.constant 0 : i32
    return %arg0, %arg1, %arg2 : i32, i32, i32
  }
}

module attributes {stable_mosaic.version = 11 : i64} {
  func.func @_attn_kernel(%arg0: i32, %arg1: i32, %arg2: i32, %arg3: memref<1x1x4x16x8xbf16, #tpu.memory_space<vmem>>, %arg4: memref<1x1x4x8x8xbf16, #tpu.memory_space<vmem>>, %arg5: memref<1x1x4x8x8xbf16, #tpu.memory_space<vmem>>, %arg6: memref<1x4x8x32xbf16, #tpu.memory_space<vmem>>, %arg7: memref<1x1x32xf32, #tpu.memory_space<vmem>>, %arg8: memref<1x1x16x32xf32, #tpu.memory_space<vmem>>, %arg9: memref<1x1x16x32xf32, #tpu.memory_space<vmem>>, %arg10: memref<4x16x1xf32, #tpu.memory_space<vmem>>, %arg11: memref<4x16x1xf32, #tpu.memory_space<vmem>>, %arg12: memref<4x16x8xf32, #tpu.memory_space<vmem>>) attributes {dimension_semantics = [#tpu.dimension_semantics<parallel>, #tpu.dimension_semantics<parallel>, #tpu.dimension_semantics<arbitrary>], iteration_bounds = array<i64: 2, 1, 1>, scalar_prefetch = 0 : i64, scratch_operands = 3 : i64, tpu.core_type = #tpu.core_type<tc>, window_params = [{transform_indices = @transform_0, window_bounds = array<i64: 1, 1, 4, 16, 8>}, {transform_indices = @transform_1, window_bounds = array<i64: 1, 1, 4, 8, 8>}, {transform_indices = @transform_2, window_bounds = array<i64: 1, 1, 4, 8, 8>}, {transform_indices = @transform_3, window_bounds = array<i64: 1, 4, 8, 32>}, {transform_indices = @transform_4, window_bounds = array<i64: 1, 1, 32>}, {transform_indices = @transform_5, window_bounds = array<i64: 1, 1, 16, 32>}, {transform_indices = @transform_6, window_bounds = array<i64: 1, 1, 16, 32>}]} {
    %c0_i32 = arith.constant 0 : i32
    %0 = arith.cmpi eq, %arg2, %c0_i32 : i32
    %1 = arith.extui %0 : i1 to i32
    %c0_i32_0 = arith.constant 0 : i32
    %2 = arith.cmpi ne, %1, %c0_i32_0 : i32
    scf.if %2 {
      %cst_39 = arith.constant 0xFF800000 : f32
      %40 = vector.broadcast %cst_39 : f32 to vector<4x16x1xf32>
      %c0_40 = arith.constant 0 : index
      %c0_41 = arith.constant 0 : index
      %c0_42 = arith.constant 0 : index
      %41 = vector.load %arg10[%c0_40, %c0_41, %c0_42] : memref<4x16x1xf32, #tpu.memory_space<vmem>>, vector<4x16x1xf32>
      tpu.vector_store %arg10[%c0_40, %c0_41, %c0_42], %40 {strides = array<i32>} : memref<4x16x1xf32, #tpu.memory_space<vmem>>, vector<4x16x1xf32>,
      %cst_43 = arith.constant 0.000000e+00 : f32
      %42 = vector.broadcast %cst_43 : f32 to vector<4x16x1xf32>
      %c0_44 = arith.constant 0 : index
      %c0_45 = arith.constant 0 : index
      %c0_46 = arith.constant 0 : index
      %43 = vector.load %arg11[%c0_44, %c0_45, %c0_46] : memref<4x16x1xf32, #tpu.memory_space<vmem>>, vector<4x16x1xf32>
      tpu.vector_store %arg11[%c0_44, %c0_45, %c0_46], %42 {strides = array<i32>} : memref<4x16x1xf32, #tpu.memory_space<vmem>>, vector<4x16x1xf32>,
      %cst_47 = arith.constant 0.000000e+00 : f32
      %44 = vector.broadcast %cst_47 : f32 to vector<4x16x8xf32>
      %c0_48 = arith.constant 0 : index
      %c0_49 = arith.constant 0 : index
      %c0_50 = arith.constant 0 : index
      %45 = vector.load %arg12[%c0_48, %c0_49, %c0_50] : memref<4x16x8xf32, #tpu.memory_space<vmem>>, vector<4x16x8xf32>
      tpu.vector_store %arg12[%c0_48, %c0_49, %c0_50], %44 {strides = array<i32>} : memref<4x16x8xf32, #tpu.memory_space<vmem>>, vector<4x16x8xf32>,
    } else {
    }
    %c0 = arith.constant 0 : index
    %c0_1 = arith.constant 0 : index
    %c0_2 = arith.constant 0 : index
    %c0_3 = arith.constant 0 : index
    %c0_4 = arith.constant 0 : index
    %3 = vector.load %arg3[%c0, %c0_1, %c0_2, %c0_3, %c0_4] : memref<1x1x4x16x8xbf16, #tpu.memory_space<vmem>>, vector<1x1x4x16x8xbf16>
    %4 = vector.shape_cast %3 : vector<1x1x4x16x8xbf16> to vector<4x16x8xbf16>
    %c0_5 = arith.constant 0 : index
    %c0_6 = arith.constant 0 : index
    %c0_7 = arith.constant 0 : index
    %c0_8 = arith.constant 0 : index
    %c0_9 = arith.constant 0 : index
    %5 = vector.load %arg4[%c0_5, %c0_6, %c0_7, %c0_8, %c0_9] : memref<1x1x4x8x8xbf16, #tpu.memory_space<vmem>>, vector<1x1x4x8x8xbf16>
    %6 = vector.shape_cast %5 : vector<1x1x4x8x8xbf16> to vector<4x8x8xbf16>
    %7 = arith.extf %6 : vector<4x8x8xbf16> to vector<4x8x8xf32>
    %c0_10 = arith.constant 0 : index
    %c0_11 = arith.constant 0 : index
    %c0_12 = arith.constant 0 : index
    %c0_13 = arith.constant 0 : index
    %c0_14 = arith.constant 0 : index
    %8 = vector.load %arg5[%c0_10, %c0_11, %c0_12, %c0_13, %c0_14] : memref<1x1x4x8x8xbf16, #tpu.memory_space<vmem>>, vector<1x1x4x8x8xbf16>
    %9 = vector.shape_cast %8 : vector<1x1x4x8x8xbf16> to vector<4x8x8xbf16>
    %10 = arith.truncf %7 : vector<4x8x8xf32> to vector<4x8x8xbf16>
    "tpu.trace_start"() <{level = 10 : i32, message = "hqd,hkd->hqk"}> : () -> ()
    %cst = arith.constant dense<0.000000e+00> : vector<4x16x8xf32>
    %11 = tpu.matmul %4, %10, %cst {dimension_numbers = #tpu.dot_dimension_numbers<[2], [2], [1], [1], [0, 0, 0, 1, 1, 1], [0], [0]>} : vector<4x16x8xbf16>, vector<4x8x8xbf16>, vector<4x16x8xf32> -> vector<4x16x8xf32>
    "tpu.trace_stop"() : () -> ()
    %cst_15 = arith.constant 0.353553385 : f32
    %12 = vector.broadcast %cst_15 : f32 to vector<4x16x8xf32>
    %13 = arith.mulf %11, %12 : vector<4x16x8xf32>
    %c0_16 = arith.constant 0 : index
    %c0_17 = arith.constant 0 : index
    %c0_18 = arith.constant 0 : index
    %14 = vector.load %arg10[%c0_16, %c0_17, %c0_18] : memref<4x16x1xf32, #tpu.memory_space<vmem>>, vector<4x16x1xf32>
    %cst_19 = arith.constant dense<0xFF800000> : vector<4x16xf32>
    %15 = vector.multi_reduction <maximumf>, %13, %cst_19 [2] : vector<4x16x8xf32> to vector<4x16xf32>
    %16 = vector.shape_cast %15 : vector<4x16xf32> to vector<4x16x1xf32>
    %17 = arith.maximumf %14, %16 : vector<4x16x1xf32>
    %18 = arith.subf %14, %17 : vector<4x16x1xf32>
    %19 = math.exp %18 : vector<4x16x1xf32>
    %20 = vector.broadcast %17 : vector<4x16x1xf32> to vector<4x16x8xf32>
    %21 = arith.subf %13, %20 : vector<4x16x8xf32>
    %22 = math.exp %21 : vector<4x16x8xf32>
    %c0_20 = arith.constant 0 : index
    %c0_21 = arith.constant 0 : index
    %c0_22 = arith.constant 0 : index
    %23 = vector.load %arg11[%c0_20, %c0_21, %c0_22] : memref<4x16x1xf32, #tpu.memory_space<vmem>>, vector<4x16x1xf32>
    %24 = arith.mulf %19, %23 : vector<4x16x1xf32>
    %cst_23 = arith.constant dense<0.000000e+00> : vector<4x16xf32>
    %25 = vector.multi_reduction <add>, %22, %cst_23 [2] : vector<4x16x8xf32> to vector<4x16xf32>
    %26 = vector.shape_cast %25 : vector<4x16xf32> to vector<4x16x1xf32>
    %27 = arith.addf %24, %26 : vector<4x16x1xf32>
    %c0_24 = arith.constant 0 : index
    %c0_25 = arith.constant 0 : index
    %c0_26 = arith.constant 0 : index
    %28 = vector.load %arg11[%c0_24, %c0_25, %c0_26] : memref<4x16x1xf32, #tpu.memory_space<vmem>>, vector<4x16x1xf32>
    tpu.vector_store %arg11[%c0_24, %c0_25, %c0_26], %27 {strides = array<i32>} : memref<4x16x1xf32, #tpu.memory_space<vmem>>, vector<4x16x1xf32>,
    %c0_27 = arith.constant 0 : index
    %c0_28 = arith.constant 0 : index
    %c0_29 = arith.constant 0 : index
    %29 = vector.load %arg12[%c0_27, %c0_28, %c0_29] : memref<4x16x8xf32, #tpu.memory_space<vmem>>, vector<4x16x8xf32>
    %30 = vector.broadcast %19 : vector<4x16x1xf32> to vector<4x16x8xf32>
    %31 = arith.mulf %30, %29 : vector<4x16x8xf32>
    %32 = arith.truncf %22 : vector<4x16x8xf32> to vector<4x16x8xbf16>
    "tpu.trace_start"() <{level = 10 : i32, message = "hqk,hkd->hqd"}> : () -> ()
    %cst_30 = arith.constant dense<0.000000e+00> : vector<4x16x8xf32>
    %33 = tpu.matmul %32, %9, %cst_30 {dimension_numbers = #tpu.dot_dimension_numbers<[2], [1], [1], [2], [0, 0, 0, 1, 1, 2], [0], [0]>} : vector<4x16x8xbf16>, vector<4x8x8xbf16>, vector<4x16x8xf32> -> vector<4x16x8xf32>
    "tpu.trace_stop"() : () -> ()
    %34 = arith.addf %31, %33 : vector<4x16x8xf32>
    %c0_31 = arith.constant 0 : index
    %c0_32 = arith.constant 0 : index
    %c0_33 = arith.constant 0 : index
    %35 = vector.load %arg12[%c0_31, %c0_32, %c0_33] : memref<4x16x8xf32, #tpu.memory_space<vmem>>, vector<4x16x8xf32>
    tpu.vector_store %arg12[%c0_31, %c0_32, %c0_33], %34 {strides = array<i32>} : memref<4x16x8xf32, #tpu.memory_space<vmem>>, vector<4x16x8xf32>,
    %c0_34 = arith.constant 0 : index
    %c0_35 = arith.constant 0 : index
    %c0_36 = arith.constant 0 : index
    %36 = vector.load %arg10[%c0_34, %c0_35, %c0_36] : memref<4x16x1xf32, #tpu.memory_space<vmem>>, vector<4x16x1xf32>
    tpu.vector_store %arg10[%c0_34, %c0_35, %c0_36], %17 {strides = array<i32>} : memref<4x16x1xf32, #tpu.memory_space<vmem>>, vector<4x16x1xf32>,
    %c0_i32_37 = arith.constant 0 : i32
    %37 = arith.cmpi eq, %arg2, %c0_i32_37 : i32
    %38 = arith.extui %37 : i1 to i32
    %c0_i32_38 = arith.constant 0 : i32
    %39 = arith.cmpi ne, %38, %c0_i32_38 : i32
    scf.if %39 {
      %c0_39 = arith.constant 0 : index
      %c0_40 = arith.constant 0 : index
      %c0_41 = arith.constant 0 : index
      %40 = vector.load %arg12[%c0_39, %c0_40, %c0_41] : memref<4x16x8xf32, #tpu.memory_space<vmem>>, vector<4x16x8xf32>
      %c0_42 = arith.constant 0 : index
      %c0_43 = arith.constant 0 : index
      %c0_44 = arith.constant 0 : index
      %41 = vector.load %arg11[%c0_42, %c0_43, %c0_44] : memref<4x16x1xf32, #tpu.memory_space<vmem>>, vector<4x16x1xf32>
      %42 = vector.broadcast %41 : vector<4x16x1xf32> to vector<4x16x8xf32>
      %43 = arith.divf %40, %42 : vector<4x16x8xf32>
      %c0_45 = arith.constant 0 : index
      %c0_46 = arith.constant 0 : index
      %c0_47 = arith.constant 0 : index
      %c0_48 = arith.constant 0 : index
      %44 = vector.load %arg8[%c0_45, %c0_46, %c0_47, %c0_48] : memref<1x1x16x32xf32, #tpu.memory_space<vmem>>, vector<1x1x16x32xf32>
      %45 = vector.shape_cast %44 : vector<1x1x16x32xf32> to vector<16x32xf32>
      %c0_49 = arith.constant 0 : index
      %c0_50 = arith.constant 0 : index
      %c0_51 = arith.constant 0 : index
      %46 = vector.load %arg7[%c0_49, %c0_50, %c0_51] : memref<1x1x32xf32, #tpu.memory_space<vmem>>, vector<1x1x32xf32>
      %47 = vector.shape_cast %46 : vector<1x1x32xf32> to vector<1x32xf32>
      %48 = vector.broadcast %47 : vector<1x32xf32> to vector<16x32xf32>
      %49 = arith.addf %45, %48 : vector<16x32xf32>
      %50 = vector.extract_strided_slice %43 {offsets = [0, 0, 0], sizes = [1, 16, 8], strides = [1, 1, 1]} : vector<4x16x8xf32> to vector<1x16x8xf32>
      %51 = vector.shape_cast %50 : vector<1x16x8xf32> to vector<16x8xf32>
      %52 = arith.truncf %51 : vector<16x8xf32> to vector<16x8xbf16>
      %c0_52 = arith.constant 0 : index
      %c0_53 = arith.constant 0 : index
      %c0_54 = arith.constant 0 : index
      %c0_55 = arith.constant 0 : index
      %53 = vector.load %arg6[%c0_52, %c0_53, %c0_54, %c0_55] : memref<1x4x8x32xbf16, #tpu.memory_space<vmem>>, vector<1x1x8x32xbf16>
      %54 = vector.shape_cast %53 : vector<1x1x8x32xbf16> to vector<8x32xbf16>
      %cst_56 = arith.constant dense<0.000000e+00> : vector<16x32xf32>
      %55 = tpu.matmul %52, %54, %cst_56 {dimension_numbers = #tpu.dot_dimension_numbers<[1], [0], [0], [1], [0, 0, 1, 1], [], []>} : vector<16x8xbf16>, vector<8x32xbf16>, vector<16x32xf32> -> vector<16x32xf32>
      %56 = arith.addf %49, %55 : vector<16x32xf32>
      %57 = vector.extract_strided_slice %43 {offsets = [1, 0, 0], sizes = [1, 16, 8], strides = [1, 1, 1]} : vector<4x16x8xf32> to vector<1x16x8xf32>
      %58 = vector.shape_cast %57 : vector<1x16x8xf32> to vector<16x8xf32>
      %59 = arith.truncf %58 : vector<16x8xf32> to vector<16x8xbf16>
      %c0_57 = arith.constant 0 : index
      %c1 = arith.constant 1 : index
      %c0_58 = arith.constant 0 : index
      %c0_59 = arith.constant 0 : index
      %60 = vector.load %arg6[%c0_57, %c1, %c0_58, %c0_59] : memref<1x4x8x32xbf16, #tpu.memory_space<vmem>>, vector<1x1x8x32xbf16>
      %61 = vector.shape_cast %60 : vector<1x1x8x32xbf16> to vector<8x32xbf16>
      %cst_60 = arith.constant dense<0.000000e+00> : vector<16x32xf32>
      %62 = tpu.matmul %59, %61, %cst_60 {dimension_numbers = #tpu.dot_dimension_numbers<[1], [0], [0], [1], [0, 0, 1, 1], [], []>} : vector<16x8xbf16>, vector<8x32xbf16>, vector<16x32xf32> -> vector<16x32xf32>
      %63 = arith.addf %56, %62 : vector<16x32xf32>
      %64 = vector.extract_strided_slice %43 {offsets = [2, 0, 0], sizes = [1, 16, 8], strides = [1, 1, 1]} : vector<4x16x8xf32> to vector<1x16x8xf32>
      %65 = vector.shape_cast %64 : vector<1x16x8xf32> to vector<16x8xf32>
      %66 = arith.truncf %65 : vector<16x8xf32> to vector<16x8xbf16>
      %c0_61 = arith.constant 0 : index
      %c2 = arith.constant 2 : index
      %c0_62 = arith.constant 0 : index
      %c0_63 = arith.constant 0 : index
      %67 = vector.load %arg6[%c0_61, %c2, %c0_62, %c0_63] : memref<1x4x8x32xbf16, #tpu.memory_space<vmem>>, vector<1x1x8x32xbf16>
      %68 = vector.shape_cast %67 : vector<1x1x8x32xbf16> to vector<8x32xbf16>
      %cst_64 = arith.constant dense<0.000000e+00> : vector<16x32xf32>
      %69 = tpu.matmul %66, %68, %cst_64 {dimension_numbers = #tpu.dot_dimension_numbers<[1], [0], [0], [1], [0, 0, 1, 1], [], []>} : vector<16x8xbf16>, vector<8x32xbf16>, vector<16x32xf32> -> vector<16x32xf32>
      %70 = arith.addf %63, %69 : vector<16x32xf32>
      %71 = vector.extract_strided_slice %43 {offsets = [3, 0, 0], sizes = [1, 16, 8], strides = [1, 1, 1]} : vector<4x16x8xf32> to vector<1x16x8xf32>
      %72 = vector.shape_cast %71 : vector<1x16x8xf32> to vector<16x8xf32>
      %73 = arith.truncf %72 : vector<16x8xf32> to vector<16x8xbf16>
      %c0_65 = arith.constant 0 : index
      %c3 = arith.constant 3 : index
      %c0_66 = arith.constant 0 : index
      %c0_67 = arith.constant 0 : index
      %74 = vector.load %arg6[%c0_65, %c3, %c0_66, %c0_67] : memref<1x4x8x32xbf16, #tpu.memory_space<vmem>>, vector<1x1x8x32xbf16>
      %75 = vector.shape_cast %74 : vector<1x1x8x32xbf16> to vector<8x32xbf16>
      %cst_68 = arith.constant dense<0.000000e+00> : vector<16x32xf32>
      %76 = tpu.matmul %73, %75, %cst_68 {dimension_numbers = #tpu.dot_dimension_numbers<[1], [0], [0], [1], [0, 0, 1, 1], [], []>} : vector<16x8xbf16>, vector<8x32xbf16>, vector<16x32xf32> -> vector<16x32xf32>
      %77 = arith.addf %70, %76 : vector<16x32xf32>
      %c0_69 = arith.constant 0 : index
      %c0_70 = arith.constant 0 : index
      %c0_71 = arith.constant 0 : index
      %c0_72 = arith.constant 0 : index
      %78 = vector.load %arg9[%c0_69, %c0_70, %c0_71, %c0_72] : memref<1x1x16x32xf32, #tpu.memory_space<vmem>>, vector<1x1x16x32xf32>
      %79 = vector.shape_cast %78 : vector<1x1x16x32xf32> to vector<16x32xf32>
      %80 = vector.shape_cast %77 : vector<16x32xf32> to vector<1x1x16x32xf32>
      tpu.vector_store %arg9[%c0_69, %c0_70, %c0_71, %c0_72], %80 {strides = array<i32>} : memref<1x1x16x32xf32, #tpu.memory_space<vmem>>, vector<1x1x16x32xf32>,
    } else {
    }
    return
  }
  func.func @transform_0(%arg0: i32, %arg1: i32, %arg2: i32) -> (i32, i32, i32, i32, i32) {
    %c0_i32 = arith.constant 0 : i32
    %c0_i32_0 = arith.constant 0 : i32
    %c0_i32_1 = arith.constant 0 : i32
    %c0_i32_2 = arith.constant 0 : i32
    %c0_i32_3 = arith.constant 0 : i32
    return %arg0, %c0_i32, %c0_i32_0, %c0_i32_1, %c0_i32_2 : i32, i32, i32, i32, i32
  }
  func.func @transform_1(%arg0: i32, %arg1: i32, %arg2: i32) -> (i32, i32, i32, i32, i32) {
    %c0_i32 = arith.constant 0 : i32
    %c0_i32_0 = arith.constant 0 : i32
    %c0_i32_1 = arith.constant 0 : i32
    %c0_i32_2 = arith.constant 0 : i32
    return %arg0, %c0_i32, %c0_i32_0, %arg2, %c0_i32_1 : i32, i32, i32, i32, i32
  }
  func.func @transform_2(%arg0: i32, %arg1: i32, %arg2: i32) -> (i32, i32, i32, i32, i32) {
    %c0_i32 = arith.constant 0 : i32
    %c0_i32_0 = arith.constant 0 : i32
    %c0_i32_1 = arith.constant 0 : i32
    %c0_i32_2 = arith.constant 0 : i32
    return %arg0, %c0_i32, %c0_i32_0, %arg2, %c0_i32_1 : i32, i32, i32, i32, i32
  }
  func.func @transform_3(%arg0: i32, %arg1: i32, %arg2: i32) -> (i32, i32, i32, i32) {
    %c0_i32 = arith.constant 0 : i32
    %c0_i32_0 = arith.constant 0 : i32
    %c0_i32_1 = arith.constant 0 : i32
    %c0_i32_2 = arith.constant 0 : i32
    return %arg0, %c0_i32, %c0_i32_0, %c0_i32_1 : i32, i32, i32, i32
  }
  func.func @transform_4(%arg0: i32, %arg1: i32, %arg2: i32) -> (i32, i32, i32) {
    %c0_i32 = arith.constant 0 : i32
    %c0_i32_0 = arith.constant 0 : i32
    %c0_i32_1 = arith.constant 0 : i32
    return %arg0, %c0_i32, %c0_i32_0 : i32, i32, i32
  }
  func.func @transform_5(%arg0: i32, %arg1: i32, %arg2: i32) -> (i32, i32, i32, i32) {
    %c0_i32 = arith.constant 0 : i32
    %c0_i32_0 = arith.constant 0 : i32
    %c0_i32_1 = arith.constant 0 : i32
    %c0_i32_2 = arith.constant 0 : i32
    return %arg0, %c0_i32, %c0_i32_0, %c0_i32_1 : i32, i32, i32, i32
  }
  func.func @transform_6(%arg0: i32, %arg1: i32, %arg2: i32) -> (i32, i32, i32, i32) {
    %c0_i32 = arith.constant 0 : i32
    %c0_i32_0 = arith.constant 0 : i32
    %c0_i32_1 = arith.constant 0 : i32
    return %arg0, %arg1, %c0_i32, %c0_i32_0 : i32, i32, i32, i32
  }
}

</mosaic_0001>

<bundles_post_ra>
// kernel: forward.7
= control target key start
LH: loop header
LB: loop body
LE: loop exit
PB: predicated region body
PF: predicated region fallthrough
CT: control target
= control target key end

     0   :  { %s1338_s0 = inlined_call_operand.hbm [shape: f32[2,16,32], index: 0, kind: input, shape index: {}]   ;;  %s1339_s1 = inlined_call_operand.hbm [shape: f32[2,1,32], index: 1, kind: input, shape index: {}]   ;;  %s1340_s2 = inlined_call_operand.hbm [shape: bf16[2,32,64], index: 2, kind: input, shape index: {}]   ;;  %s1341_s3 = inlined_call_operand.hbm [shape: f32[2,1,64], index: 3, kind: input, shape index: {}]   ;;  %s1342_s4 = inlined_call_operand.hbm [shape: bf16[2,16,64], index: 4, kind: output, shape index: {}]  }
   0x1   :  { %1350 = sst [smem:[#allocation18_spill]] %s1338_s0 }
   0x2   :  { %1351 = sst [smem:[#allocation19_spill]] %s1339_s1 }
   0x3   :  { %9 = vsyncpa [#allocation4], 0 }
   0x4   :  { %11 = vsyncpa [#allocation4 + $0x1], 0 }
   0x5   :  { %12 = vsyncpa [#allocation7], 0 }
   0x6   :  { %14 = vsyncpa [#allocation7 + $0x1], 0 }
   0x7   :  { %15 = vsyncpa [#allocation10], 0 }
   0x8   :  { %17 = vsyncpa [#allocation10 + $0x1], 0 }
   0x9   :  { %18 = vsyncpa [#allocation5], 0 }
   0xa   :  { %20 = vsyncpa [#allocation5 + $0x1], 0  ;;  %s1028_s15 = smov 0   ;;  %s1030_s16 = smov 0  }
   0xb   :  { %s1032_s17 = smov 0   ;;  %s1034_s18 = smov 0  }
   0xc   :  { %s1036_s19 = smov 0   ;;  %s1038_s20 = smov 0  }
   0xd LB: > { %s1059_s21 = sadd.s32 4294967295, %s988_s20   ;;  %s644_s22 = sadd.s32 4294967294, %s988_s20   ;;  %s988_s20 = sphi %s1038_s20, %s26_s20   ;;  %s984_s19 = sphi %s1036_s19, %s1379_s19   ;;  %s980_s18 = sphi %s1034_s18, %s1378_s18   ;;  %s976_s17 = sphi %s1032_s17, %s1377_s17   ;;  %s972_s16 = sphi %s1030_s16, %s1376_s16   ;;  %s968_s15 = sphi %s1028_s15, %s1375_s15  }
   0xe   : > { %s45_s23 = sadd.s32 1, %s984_s19  ;;  %s54_s24 = sadd.s32 1, %s976_s17 }
   0xf   : > { %p47_p0 = scmp.ge.s32.totalorder %s45_s23, 2  ;;  %p61_p1 = scmp.ne.s32.totalorder %s976_s17, %s972_s16 }
  0x10   : > { %p62_p2 = scmp.eq.s32.totalorder %s988_s20, 0  ;;  %p67_p3 = scmp.ne.s32.totalorder %s972_s16, %s968_s15 }
  0x11   : > { %s1381_s23 = smov (%p47_p0, %s45_s23), 0  ;;  %p68_p5 = scmp.eq.s32.totalorder %s1059_s21, 0 }
  0x12   : > { %1352 = sst [smem:[#allocation16_spill]] %s1381_s23  ;;  %p1071_p4 = por %p62_p2, %p61_p1 }
  0x13   : > { %s49_s26 = ssub.s32 %s984_s19, %s1381_s23  ;;  %p177_p6 = scmp.eq.s32.totalorder %s1059_s21, 1 }
  0x14   : > { %p52_p7 = scmp.eq.s32.totalorder %s49_s26, 0  ;;  %p1079_p8 = por %p68_p5, %p67_p3 }
  0x15   : > { %p1083_p9 = por %p177_p6, %p61_p1  ;;  %p183_p10 = scmp.eq.s32.totalorder %s644_s22, 1 }
  0x16   : > { %s1354_s27 = scalar_select %p1079_p8, 1, 0 }
  0x17   : > { %s1355_s28 = scalar_select %p1083_p9, 1, 0 }
  0x18   : > { %s1088_s29 = scalar_select %p52_p7, %s976_s17, %s54_s24  }
  0x19   : > { %p1090_p11 = por %p183_p10, %p67_p3  ;;  %p714_p13 = scmp.lt.s32.totalorder %s988_s20, 2 }
  0x1a   : > { %1356 = sst [smem:[#allocation17_spill]] %s1088_s29  ;;  %s1097_s5 = sand.u32 1, %s976_s17  }
  0x1b   : > { %s1357_s30 = scalar_select %p1090_p11, 1, 0 }
  0x1c   : > { %s226_s6 = sand.u32 1, %s988_s20   ;;  %p1102_p0 = pnand %p714_p13, %p1071_p4 }
  0x1d   : > { %s1345_s8 = sshll.u32 %s984_s19, 4  ;;  %s229_s9 = scalar_lea.vmem [#allocation6], %s1097_s5 }
  0x1e   : > { %s1358_s7 = scalar_select %p1102_p0, 1, 0 }
  0x1f   : > { %s236_s10 = sshll.u32 %s229_s9, 4  ;;  %s1359_s1 = sld [smem:[#allocation19_spill]]  ;;  %s1115_s10 = int_to_ptr.vmem [resolvable:$true] %s236_s10 }
  0x20   : > { %s1118_s14 = scalar_lea.sflag [#allocation7], %s226_s6  ;;  %p1124_p3 = pneg %p1102_p0 }
  0x25   : > { %s1113_s13 = scalar_lea.hbm %s1359_s1, %s1345_s8  ;;  %s783_s9 = scalar_lea.hbm %s1359_s1, 32 }
  0x26   : > { %s778_s22 = scalar_lea.hbm %s1113_s13, 16  ;;  %p784_p6 = scmp.lt.u32.totalorder %s1113_s13, %s1359_s1 }
  0x27   : > { %p779_p2 = scmp.ne.s32.totalorder %s1113_s13, %s778_s22  ;;  %p785_p7 = scmp.lt.u32.totalorder %s783_s9, %s778_s22 }
  0x28   : > { %p787_p13 = scmp.lt.u32.totalorder %s778_s22, %s1113_s13 }
  0x29   : > { %p781_p4 = pnand %p1124_p3, %p779_p2  ;;  %p786_p10 = por %p785_p7, %p784_p6 }
  0x2b   : > { %p782_p5 = pneg %p781_p4  ;;  %p788_p12 = por %p787_p13, %p786_p10 }
  0x2d   : > { %p789_p1 = pnand %p788_p12, %p782_p5 }
  0x2f   : > { %792 = shalt.err (!%p789_p1)
}
  0x30   : > { %s793_s6 = scalar_lea.vmem %s1115_s10, 16  ;;  %s990_s25 = smov [#allocation6]  }
  0x31   : > { %p794_p2 = scmp.ne.s32.totalorder %s1115_s10, %s793_s6  ;;  %s798_s26 = sshll.u32 %s990_s25, 4  ;;  %s799_s26 = int_to_ptr.vmem [resolvable:$false] %s798_s26 }
  0x32   : > { %s800_s11 = scalar_lea.vmem %s799_s26, 32  ;;  %p801_p9 = scmp.lt.s32.totalorder %s1115_s10, %s799_s26 }
  0x33   : > { %p796_p4 = pnand %p794_p2, %p1124_p3  ;;  %p802_p8 = scmp.lt.s32.totalorder %s800_s11, %s793_s6 }
  0x35   : > { %p797_p11 = pneg %p796_p4  ;;  %p803_p6 = por %p802_p8, %p801_p9 }
  0x37   : > { %p804_p7 = pnand %p803_p6, %p797_p11 }
  0x39   : > { %807 = shalt.err (!%p804_p7)
}
  0x3a   : > { %703 = dma.hbm_to_vmem [thread:$0]  (!%p1102_p0), %s1113_s13, 16, %s1115_s10, %s1118_s14  }
  0x3b   : > { %p281_p12 = scmp.lt.s32.totalorder %s988_s20, 3  ;;  %p1361_p1 = scmp.ge.s32.totalorder %s988_s20, 1 }
  0x3c   : > { %s1348_s9 = sshll.u32 %s1097_s5, 4  ;;  %s1347_s12 = sshll.u32 %s984_s19, 8 }
  0x3d   : > { %p1151_p5 = pnand %p1361_p1, %p281_p12  ;;  %s1363_s0 = sld [smem:[#allocation18_spill]] }
  0x3e   : > { %s207_s10 = scalar_lea.vmem [#allocation3], %s1348_s9  ;;  %s204_s11 = scalar_lea.sflag [#allocation4], %s1097_s5 }
  0x3f   : > { %s1362_s22 = scalar_select %p1151_p5, 1, 0 }
  0x40   : > { %s216_s13 = sshll.u32 %s207_s10, 4  ;;  %s1166_s13 = int_to_ptr.vmem [resolvable:$true] %s216_s13 }
  0x43   : > { %s1162_s26 = scalar_lea.hbm %s1363_s0, %s1347_s12  ;;  %s813_s6 = scalar_lea.hbm %s1363_s0, 512 }
  0x44   : > { %s808_s8 = scalar_lea.hbm %s1162_s26, 256  ;;  %p814_p10 = scmp.lt.u32.totalorder %s1162_s26, %s1363_s0 }
  0x45   : > { %p809_p8 = scmp.ne.s32.totalorder %s1162_s26, %s808_s8  ;;  %p815_p13 = scmp.lt.u32.totalorder %s813_s6, %s808_s8 }
  0x46   : > { %p817_p4 = scmp.lt.u32.totalorder %s808_s8, %s1162_s26 }
  0x47   : > { %p811_p9 = pnand %p809_p8, %p1124_p3  ;;  %p816_p2 = por %p815_p13, %p814_p10 }
  0x49   : > { %p812_p11 = pneg %p811_p9  ;;  %p818_p6 = por %p817_p4, %p816_p2 }
  0x4b   : > { %p819_p7 = pnand %p818_p6, %p812_p11 }
  0x4d   : > { %822 = shalt.err (!%p819_p7)
}
  0x4e   : > { %s823_s10 = scalar_lea.vmem %s1166_s13, 256  ;;  %s991_s1 = smov [#allocation3]  }
  0x4f   : > { %p824_p12 = scmp.ne.s32.totalorder %s1166_s13, %s823_s10  ;;  %s828_s23 = sshll.u32 %s991_s1, 4  ;;  %s829_s23 = int_to_ptr.vmem [resolvable:$false] %s828_s23 }
  0x50   : > { %s830_s12 = scalar_lea.vmem %s829_s23, 512  ;;  %p831_p9 = scmp.lt.s32.totalorder %s1166_s13, %s829_s23 }
  0x51   : > { %p826_p1 = pnand %p824_p12, %p1124_p3  ;;  %p832_p5 = scmp.lt.s32.totalorder %s830_s12, %s823_s10 }
  0x53   : > { %p827_p8 = pneg %p826_p1  ;;  %p833_p10 = por %p832_p5, %p831_p9 }
  0x55   : > { %p834_p13 = pnand %p833_p10, %p827_p8 }
  0x57   : > { %837 = shalt.err (!%p834_p13)
}
  0x58   : > { %s992_s8 = smov 128   ;;  %s993_s6 = smov 8  }
  0x59   : > { %700 = dma.hbm_to_vmem [thread:$0]  (!%p1102_p0), %s1162_s26, 256, %s1166_s13, %s204_s11, %s992_s8, %s992_s8, %s993_s6  }
  0x5a   : > { %s1364_s25 = sshll.u32 %s984_s19, 8  ;;  %s1365_s23 = sshll.u32 %s1097_s5, 4 }
  0x5b   : > { %s1197_s10 = scalar_lea.hbm %s1340_s2, %s1364_s25  ;;  %s247_s12 = scalar_lea.vmem [#allocation8], %s1365_s23 }
  0x5c   : > { %s255_s0 = sshll.u32 %s247_s12, 4  ;;  %s838_s29 = scalar_lea.hbm %s1197_s10, 256  ;;  %s1201_s0 = int_to_ptr.vmem [resolvable:$true] %s255_s0 }
  0x5d   : > { %p839_p5 = scmp.ne.s32.totalorder %s1197_s10, %s838_s29  ;;  %s843_s9 = scalar_lea.hbm %s1340_s2, 512 }
  0x5e   : > { %p844_p4 = scmp.lt.u32.totalorder %s1197_s10, %s1340_s2  ;;  %p845_p6 = scmp.lt.u32.totalorder %s843_s9, %s838_s29 }
  0x5f   : > { %p841_p11 = pnand %p839_p5, %p1124_p3  ;;  %p847_p12 = scmp.lt.u32.totalorder %s838_s29, %s1197_s10 }
  0x60   : > { %p846_p7 = por %p845_p6, %p844_p4 }
  0x61   : > { %p842_p2 = pneg %p841_p11 }
  0x62   : > { %p848_p1 = por %p847_p12, %p846_p7 }
  0x64   : > { %p849_p8 = pnand %p848_p1, %p842_p2 }
  0x66   : > { %852 = shalt.err (!%p849_p8)
}
  0x67   : > { %s853_s6 = scalar_lea.vmem %s1201_s0, 256  ;;  %s994_s25 = smov [#allocation8]  }
  0x68   : > { %p854_p9 = scmp.ne.s32.totalorder %s1201_s0, %s853_s6  ;;  %s858_s1 = sshll.u32 %s994_s25, 4  ;;  %s859_s1 = int_to_ptr.vmem [resolvable:$false] %s858_s1 }
  0x69   : > { %s860_s23 = scalar_lea.vmem %s859_s1, 512  ;;  %p861_p5 = scmp.lt.s32.totalorder %s1201_s0, %s859_s1 }
  0x6a   : > { %p856_p10 = pnand %p854_p9, %p1124_p3  ;;  %p862_p11 = scmp.lt.s32.totalorder %s860_s23, %s853_s6 }
  0x6c   : > { %p857_p13 = pneg %p856_p10  ;;  %p863_p4 = por %p862_p11, %p861_p5 }
  0x6e   : > { %p864_p6 = pnand %p863_p4, %p857_p13 }
  0x70   : > { %867 = shalt.err (!%p864_p6)
}
  0x71   : > { %s995_s29 = smov 64   ;;  %s996_s12 = smov 4  }
  0x72   : > { %706 = dma.hbm_to_vmem [thread:$0]  (!%p1102_p0), %s1197_s10, 256, %s1201_s0, %s1118_s14, %s995_s29, %s995_s29, %s996_s12  }
  0x73   : > { %s1366_s26 = sshll.u32 %s984_s19, 4  ;;  %s268_s8 = scalar_lea.vmem [#allocation9], %s1097_s5 }
  0x74   : > { %s1230_s11 = scalar_lea.hbm %s1341_s3, %s1366_s26  ;;  %s276_s6 = sshll.u32 %s268_s8, 4  ;;  %s277_s6 = int_to_ptr.vmem [resolvable:$true] %s276_s6 }
  0x75   : > { %s266_s25 = scalar_lea.sflag [#allocation10], %s1097_s5  ;;  %s868_s1 = scalar_lea.hbm %s1230_s11, 16 }
  0x76   : > { %p869_p2 = scmp.ne.s32.totalorder %s1230_s11, %s868_s1  ;;  %s873_s10 = scalar_lea.hbm %s1341_s3, 32 }
  0x77   : > { %p874_p1 = scmp.lt.u32.totalorder %s1230_s11, %s1341_s3  ;;  %p875_p8 = scmp.lt.u32.totalorder %s873_s10, %s868_s1 }
  0x78   : > { %p871_p7 = pnand %p869_p2, %p1124_p3  ;;  %p877_p10 = scmp.lt.u32.totalorder %s868_s1, %s1230_s11 }
  0x79   : > { %p876_p9 = por %p875_p8, %p874_p1 }
  0x7a   : > { %p872_p12 = pneg %p871_p7 }
  0x7b   : > { %p878_p13 = por %p877_p10, %p876_p9 }
  0x7d   : > { %p879_p5 = pnand %p878_p13, %p872_p12 }
  0x7f   : > { %882 = shalt.err (!%p879_p5)
}
  0x80   : > { %s883_s5 = scalar_lea.vmem %s277_s6, 16  ;;  %s997_s12 = smov [#allocation9]  }
  0x81   : > { %p884_p11 = scmp.ne.s32.totalorder %s277_s6, %s883_s5  ;;  %s888_s26 = sshll.u32 %s997_s12, 4  ;;  %s889_s26 = int_to_ptr.vmem [resolvable:$false] %s888_s26 }
  0x82   : > { %s890_s13 = scalar_lea.vmem %s889_s26, 32  ;;  %p891_p2 = scmp.lt.s32.totalorder %s277_s6, %s889_s26 }
  0x83   : > { %p886_p4 = pnand %p884_p11, %p1124_p3  ;;  %p892_p7 = scmp.lt.s32.totalorder %s890_s13, %s883_s5 }
  0x85   : > { %p887_p6 = pneg %p886_p4  ;;  %p893_p0 = por %p892_p7, %p891_p2 }
  0x87   : > { %p894_p1 = pnand %p893_p0, %p887_p6 }
  0x89   : > { %897 = shalt.err (!%p894_p1)
}
  0x8a   : > { %p1367_p8 = scmp.ne.s32.totalorder %s1358_s7, 0  ;;  %p1368_p12 = scmp.ne.s32.totalorder %s1362_s22, 0 }
  0x8b   : > { %s1254_s24 = sand.u32 (!%p1368_p12), 1, %s972_s16   ;;  %p1369_p3 = scmp.ne.s32.totalorder (!%p1368_p12), %s1354_s27, 0 }
  0x8c   : > { %709 = dma.hbm_to_vmem [thread:$0]  (!%p1367_p8), %s1230_s11, 16, %s277_s6, %s266_s25  }
  0x8d   : > { %285 = sbr.rel (%p1368_p12) target bundleno = 567 (0x237), region = 36  ;;  %s656_s9 = sshll.u32 (!%p1368_p12), %s1254_s24, 4 }
  0x8e   : > { %s288_s8 = scalar_lea.sflag (!%p1368_p12), [#allocation4], %s1254_s24  ;;  %s291_s1 = scalar_lea.vmem (!%p1368_p12), [#allocation3], %s656_s9 }
  0x94   : > { %951 = dma.done.wait (%p1369_p3), %s288_s8, 256  }
  0x95   : > { %953 = vsyncadd (%p1369_p3), %s288_s8, 4294967040  ;;  %s296_s7 = sand.u32 1, %s1059_s21   ;;  %s299_s11 = scalar_lea.vmem [#allocation6], %s1254_s24 }
  0x96   : > { %s297_s22 = scalar_lea.sflag [#allocation7], %s296_s7 }
  0x97   : > { %955 = dma.done.wait (%p1369_p3), %s297_s22, 272  }
  0x98   : > { %957 = vsyncadd (%p1369_p3), %s297_s22, 4294967024  ;;  %s308_s6 = scalar_lea.vmem [#allocation8], %s656_s9  ;;  %s314_s25 = scalar_lea.sflag [#allocation10], %s1254_s24 }
  0x99   : > { %s316_s0 = scalar_lea.vmem [#allocation9], %s1254_s24 }
  0x9a   : > { %959 = dma.done.wait (%p1369_p3), %s314_s25, 16  }
  0x9b   : > { %961 = vsyncadd (%p1369_p3), %s314_s25, 4294967280  ;;  %v361_v0 = vld [vmem:[%s291_s1] sm:$0xff]  ;;  %vm365_vm0 = vcmask 261120   ;;  %v362_v1 = vld [vmem:[%s291_s1 + $0x8] sm:$0xff]  ;;  %v998_v7 = vmov 0.0   ;;  %vm999_vm1 = vmmov 0  }
  0x9c   : > { %v363_v2 = vmul.f32 %v361_v0, %v361_v0  ;;  %v364_v3 = vmul.f32 %v362_v1, %v362_v1  ;;  %v772_v6 = vld [vmem:[%s308_s6] sm:$0xff]   ;;  %679 = vmatprep.subr.bf16.mxu0 %v998_v7  ;;  %v773_v8 = vld [vmem:[%s308_s6 + $0x8] sm:$0xff]   ;;  %683 = vmatprep.mubr.msk.bf16.mxu0 %vm999_vm1, %v998_v7  ;;  %s658_s21 = sshll.u32 %s1254_s24, 3  ;;  %s675_s10 = sshll.u32 %s980_s18, 7  ;;  %vm469_vm2 = vcmask 519168  }
  0x9d   : > { %680 = vmatpush3.bf16.msra.mxu0 %v772_v6  ;;  %v659_v18 = vld [vmem:[%s299_s11] ss:$0 sm:$0xff]  ;;  %s353_s27 = scalar_lea.vmem [#allocation11], %s658_s21  ;;  %s1287_s5 = scalar_lea.hbm %s1342_s4, %s675_s10 }
  0x9e   : > { %v366_v4 = vsel %vm365_vm0, %v363_v2, 0.0  ;;  %v369_v5 = vsel %vm365_vm0, %v364_v3, 0.0  ;;  %681 = vmatprep.subr.bf16.mxu0 %v998_v7  ;;  %v660_v24 = vld [vmem:[%s316_s0] ss:$0 sm:$0xff]  ;;  %s489_s14 = sshll.u32 %s353_s27, 4  ;;  %s473_s12 = scalar_lea.sflag [#allocation5], %s1254_s24  ;;  %s1289_s14 = int_to_ptr.vmem [resolvable:$true] %s489_s14 }
  0x9f   : > { %367 = vadd.xlane.f32.xlu0 %v366_v4  ;;  %s898_s18 = scalar_lea.vmem %s1289_s14, 128  ;;  %p1370_p9 = scmp.ne.s32.totalorder %s1355_s28, 0 }
  0xa0   : > { %p899_p0 = scmp.ne.s32.totalorder %s1289_s14, %s898_s18  ;;  %s1000_s26 = smov [#allocation11]  }
  0xa1   : > { %682 = vmatpush3.bf16.msra.mxu0 %v773_v8  ;;  %s902_s13 = sshll.u32 %s1000_s26, 4  ;;  %s903_s13 = int_to_ptr.vmem [resolvable:$false] %s902_s13 }
  0xa2   : > { %p900_p10 = pnand %p899_p0, %p1370_p9  ;;  %s904_s9 = scalar_lea.vmem %s903_s13, 256 }
  0xa3   : > { %370 = vadd.xlane.f32.xlu0 %v369_v5  ;;  %p905_p5 = scmp.lt.s32.totalorder %s1289_s14, %s903_s13  ;;  %p906_p11 = scmp.lt.s32.totalorder %s904_s9, %s898_s18 }
  0xa4   : > { %p901_p13 = pneg %p900_p10 }
  0xa5   : > { %p907_p4 = por %p906_p11, %p905_p5 }
  0xa7   : > { %p908_p6 = pnand %p907_p4, %p901_p13 }
 0x12c   : > { %v368_v9 = vpop.xlane.xlu0 %367 }
 0x12d   : > { %v373_v10 = vmul.f32 0.03125, %v368_v9 }
 0x12f   : > { %v375_v11 = vadd.f32 1.1920929e-07, %v373_v10 }
 0x130   : > { %v371_v12 = vpop.xlane.xlu0 %370 }
 0x131   : > { %774 = vrsqrt.f32 %v375_v11  ;;  %v374_v13 = vmul.f32 0.03125, %v371_v12 }
 0x133   : > { %v376_v14 = vadd.f32 1.1920929e-07, %v374_v13 }
 0x135   : > { %776 = vrsqrt.f32 %v376_v14 }
 0x13b   : > { %v775_v15 = vpop.eup %774 }
 0x13c   : > { %v379_v16 = vmul.f32 %v775_v15, %v361_v0 }
 0x13e   : > { %v388_v20 = vmul.f32 %v659_v18, %v379_v16 }
 0x13f   : > { %v777_v17 = vpop.eup %776 }
 0x140   : > { %v380_v19 = vmul.f32 %v777_v17, %v362_v1 }
 0x142   : > { %v389_v21 = vmul.f32 %v659_v18, %v380_v19 }
 0x144   : > { %v390_v22 = vpack.c.bf16 %v389_v21, %v388_v20 }
 0x146   : > { %391 = vst.msk [vmem:[#allocation2] sm:$0xff] %vm365_vm0, %v390_v22 }
 0x14d   : > { %v392_v23 = vld [vmem:[#allocation2] sm:$0xff] }
 0x14e   : > { %684 = vmatmul.mubr.msk.bf16.vlgmr.msra.gmra.mrb[0].mxu0 %vm365_vm0, %v392_v23 }
 0x221   : > { %v454_v25 = vpop.f32.mrb[0].mxu0 }
 0x222   : > { %v455_v26 = vadd.f32 %v660_v24, %v454_v25  ;;  %v685_v27 = vpop.f32.mrb[1].mxu0 }
 0x223   : > { %v457_v28 = vpop.f32.mrb[2].mxu0 }
 0x224   : > { %v673_v29 = vpack.c.bf16 %v455_v26, %v455_v26  ;;  %v458_v30 = vadd.f32 %v660_v24, %v457_v28  ;;  %v686_v31 = vpop.f32.mrb[3].mxu0 }
 0x226   : > { %470 = vst.msk [vmem:[%s353_s27] sm:$0xf] %vm469_vm2, %v673_v29  ;;  %v674_v32 = vpack.c.bf16 %v458_v30, %v458_v30 }
 0x228   : > { %471 = vst.msk [vmem:[%s353_s27 + $0x4] sm:$0xf] %vm469_vm2, %v674_v32 }
 0x229   : > { %911 = shalt.err (!%p908_p6)
}
 0x22a   : > { %s912_s8 = scalar_lea.hbm %s1287_s5, 128  ;;  %s916_s22 = scalar_lea.hbm %s1342_s4, 256 }
 0x22b   : > { %p913_p2 = scmp.ne.s32.totalorder %s1287_s5, %s912_s8  ;;  %p917_p8 = scmp.lt.u32.totalorder %s1287_s5, %s1342_s4 }
 0x22c   : > { %p918_p12 = scmp.lt.u32.totalorder %s916_s22, %s912_s8  ;;  %p920_p0 = scmp.lt.u32.totalorder %s912_s8, %s1287_s5 }
 0x22d   : > { %p914_p7 = pnand %p913_p2, %p1370_p9 }
 0x22e   : > { %p919_p3 = por %p918_p12, %p917_p8 }
 0x22f   : > { %p915_p1 = pneg %p914_p7 }
 0x230   : > { %p921_p10 = por %p920_p0, %p919_p3 }
 0x232   : > { %p922_p13 = pnand %p921_p10, %p915_p1 }
 0x234   : > { %925 = shalt.err (!%p922_p13)
}
 0x235   : > { %s1001_s25 = smov 64   ;;  %s1002_s0 = smov 4  }
 0x236   : > { %695 = dma.vmem_to_hbm [thread:$0]  (%p1370_p9), %s1289_s14, 128, %s1287_s5, %s473_s12, %s1001_s25, %s1001_s25, %s1002_s0  }
 0x237 PF: > { %s504_s21 = sand.u32 1, %s968_s15   ;;  %p1371_p5 = scmp.ne.s32.totalorder %s1357_s30, 0 }
 0x238   : > { %p1372_p11 = scmp.ge.s32.totalorder %s988_s20, 2  ;;  %s505_s27 = scalar_lea.sflag [#allocation5], %s504_s21 }
 0x23a   : > { %p711_p4 = pnand %p1372_p11, %p1371_p5 }
 0x23c   : > { %963 = dma.done.wait (!%p711_p4), %s505_s27, 128  }
 0x23d   : > { %965 = vsyncadd (!%p711_p4), %s505_s27, 4294967168  ;;  %s26_s20 = sadd.s32 1, %s988_s20   ;;  %s1373_s10 = sld [smem:[#allocation17_spill]] }
 0x23e   : > { %p23_p6 = scmp.ge.s32.totalorder %s26_s20, 4   ;;  %s1374_s28 = sld [smem:[#allocation16_spill]] }
 0x23f   : > { %s1375_s15 = smov %s972_s16  ;;  %s1376_s16 = smov %s976_s17 }
 0x240   : > { %s1378_s18 = smov %s984_s19  ;;  %25 = sbr.rel (!%p23_p6) target bundleno = 13 (0xd), region = 122 }
 0x243   : > { %s1377_s17 = smov %s1373_s10 }
 0x244   : > { %s1379_s19 = smov %s1374_s28 }
 0x247   :  { %510 = vsyncpa [#allocation4], 1 }
 0x248   :  { %512 = vsyncpa [#allocation4 + $0x1], 1 }
 0x249   :  { %513 = vsyncpa [#allocation7], 1 }
 0x24a   :  { %515 = vsyncpa [#allocation7 + $0x1], 1 }
 0x24b   :  { %516 = vsyncpa [#allocation10], 1 }
 0x24c   :  { %518 = vsyncpa [#allocation10 + $0x1], 1 }
 0x24d   :  { %519 = vsyncpa [#allocation5], 1 }
 0x24e   :  { %521 = vsyncpa [#allocation5 + $0x1], 1 }

// kernel: forward.6
= control target key start
LH: loop header
LB: loop body
LE: loop exit
PB: predicated region body
PF: predicated region fallthrough
CT: control target
= control target key end

     0   :  { %s1279_s0 = inlined_call_operand.hbm [shape: f32[2,8,32], index: 0, kind: input, shape index: {}]   ;;  %s1280_s1 = inlined_call_operand.hbm [shape: f32[2,1,32], index: 1, kind: input, shape index: {}]   ;;  %s1281_s2 = inlined_call_operand.hbm [shape: bf16[2,32,32], index: 2, kind: input, shape index: {}]   ;;  %s1282_s3 = inlined_call_operand.hbm [shape: f32[2,1,32], index: 3, kind: input, shape index: {}]   ;;  %s1283_s4 = inlined_call_operand.hbm [shape: bf16[2,8,32], index: 4, kind: output, shape index: {}]  }
   0x1   :  { %1289 = sst [smem:[#allocation18_spill]] %s1280_s1 }
   0x2   :  { %9 = vsyncpa [#allocation4], 0 }
   0x3   :  { %11 = vsyncpa [#allocation4 + $0x1], 0 }
   0x4   :  { %12 = vsyncpa [#allocation7], 0 }
   0x5   :  { %14 = vsyncpa [#allocation7 + $0x1], 0 }
   0x6   :  { %15 = vsyncpa [#allocation10], 0 }
   0x7   :  { %17 = vsyncpa [#allocation10 + $0x1], 0 }
   0x8   :  { %18 = vsyncpa [#allocation5], 0 }
   0x9   :  { %20 = vsyncpa [#allocation5 + $0x1], 0  ;;  %s978_s15 = smov 0   ;;  %s980_s16 = smov 0  }
   0xa   :  { %s982_s17 = smov 0   ;;  %s984_s18 = smov 0  }
   0xb   :  { %s986_s19 = smov 0   ;;  %s988_s20 = smov 0  }
   0xc LB: > { %s1009_s21 = sadd.s32 4294967295, %s942_s20   ;;  %s612_s22 = sadd.s32 4294967294, %s942_s20   ;;  %s942_s20 = sphi %s988_s20, %s26_s20   ;;  %s938_s19 = sphi %s986_s19, %s1314_s19   ;;  %s934_s18 = sphi %s984_s18, %s1313_s18   ;;  %s930_s17 = sphi %s982_s17, %s1312_s17   ;;  %s926_s16 = sphi %s980_s16, %s1311_s16   ;;  %s922_s15 = sphi %s978_s15, %s1310_s15  }
   0xd   : > { %s45_s23 = sadd.s32 1, %s938_s19  ;;  %s54_s24 = sadd.s32 1, %s930_s17 }
   0xe   : > { %p47_p0 = scmp.ge.s32.totalorder %s45_s23, 2  ;;  %p61_p1 = scmp.ne.s32.totalorder %s930_s17, %s926_s16 }
   0xf   : > { %p62_p2 = scmp.eq.s32.totalorder %s942_s20, 0  ;;  %p67_p3 = scmp.ne.s32.totalorder %s926_s16, %s922_s15 }
  0x10   : > { %s1316_s23 = smov (%p47_p0, %s45_s23), 0  ;;  %p68_p5 = scmp.eq.s32.totalorder %s1009_s21, 0 }
  0x11   : > { %1290 = sst [smem:[#allocation16_spill]] %s1316_s23  ;;  %p1021_p4 = por %p62_p2, %p61_p1 }
  0x12   : > { %s49_s26 = ssub.s32 %s938_s19, %s1316_s23  ;;  %p177_p6 = scmp.eq.s32.totalorder %s1009_s21, 1 }
  0x13   : > { %p52_p7 = scmp.eq.s32.totalorder %s49_s26, 0  ;;  %p1029_p8 = por %p68_p5, %p67_p3 }
  0x14   : > { %p1033_p9 = por %p177_p6, %p61_p1  ;;  %p183_p10 = scmp.eq.s32.totalorder %s612_s22, 1 }
  0x15   : > { %s1292_s27 = scalar_select %p1029_p8, 1, 0 }
  0x16   : > { %s1293_s28 = scalar_select %p1033_p9, 1, 0 }
  0x17   : > { %s1038_s29 = scalar_select %p52_p7, %s930_s17, %s54_s24  }
  0x18   : > { %p1040_p11 = por %p183_p10, %p67_p3  ;;  %p674_p13 = scmp.lt.s32.totalorder %s942_s20, 2 }
  0x19   : > { %1294 = sst [smem:[#allocation17_spill]] %s1038_s29  ;;  %s1047_s5 = sand.u32 1, %s930_s17  }
  0x1a   : > { %s1295_s30 = scalar_select %p1040_p11, 1, 0 }
  0x1b   : > { %s222_s6 = sand.u32 1, %s942_s20   ;;  %p1052_p0 = pnand %p674_p13, %p1021_p4 }
  0x1c   : > { %s1286_s8 = sshll.u32 %s938_s19, 4  ;;  %s225_s9 = scalar_lea.vmem [#allocation6], %s1047_s5 }
  0x1d   : > { %s1296_s7 = scalar_select %p1052_p0, 1, 0 }
  0x1e   : > { %s232_s10 = sshll.u32 %s225_s9, 4  ;;  %s1297_s1 = sld [smem:[#allocation18_spill]]  ;;  %s1065_s10 = int_to_ptr.vmem [resolvable:$true] %s232_s10 }
  0x1f   : > { %s1068_s14 = scalar_lea.sflag [#allocation7], %s222_s6  ;;  %p1074_p3 = pneg %p1052_p0 }
  0x24   : > { %s1063_s13 = scalar_lea.hbm %s1297_s1, %s1286_s8  ;;  %s737_s9 = scalar_lea.hbm %s1297_s1, 32 }
  0x25   : > { %s732_s22 = scalar_lea.hbm %s1063_s13, 16  ;;  %p738_p6 = scmp.lt.u32.totalorder %s1063_s13, %s1297_s1 }
  0x26   : > { %p733_p2 = scmp.ne.s32.totalorder %s1063_s13, %s732_s22  ;;  %p739_p7 = scmp.lt.u32.totalorder %s737_s9, %s732_s22 }
  0x27   : > { %p741_p13 = scmp.lt.u32.totalorder %s732_s22, %s1063_s13 }
  0x28   : > { %p735_p4 = pnand %p1074_p3, %p733_p2  ;;  %p740_p10 = por %p739_p7, %p738_p6 }
  0x2a   : > { %p736_p5 = pneg %p735_p4  ;;  %p742_p12 = por %p741_p13, %p740_p10 }
  0x2c   : > { %p743_p1 = pnand %p742_p12, %p736_p5 }
  0x2e   : > { %746 = shalt.err (!%p743_p1)
}
  0x2f   : > { %s747_s6 = scalar_lea.vmem %s1065_s10, 16  ;;  %s944_s25 = smov [#allocation6]  }
  0x30   : > { %p748_p2 = scmp.ne.s32.totalorder %s1065_s10, %s747_s6  ;;  %s752_s26 = sshll.u32 %s944_s25, 4  ;;  %s753_s26 = int_to_ptr.vmem [resolvable:$false] %s752_s26 }
  0x31   : > { %s754_s11 = scalar_lea.vmem %s753_s26, 32  ;;  %p755_p9 = scmp.lt.s32.totalorder %s1065_s10, %s753_s26 }
  0x32   : > { %p750_p4 = pnand %p748_p2, %p1074_p3  ;;  %p756_p8 = scmp.lt.s32.totalorder %s754_s11, %s747_s6 }
  0x34   : > { %p751_p11 = pneg %p750_p4  ;;  %p757_p6 = por %p756_p8, %p755_p9 }
  0x36   : > { %p758_p7 = pnand %p757_p6, %p751_p11 }
  0x38   : > { %761 = shalt.err (!%p758_p7)
}
  0x39   : > { %663 = dma.hbm_to_vmem [thread:$0]  (!%p1052_p0), %s1063_s13, 16, %s1065_s10, %s1068_s14  }
  0x3a   : > { %p277_p12 = scmp.lt.s32.totalorder %s942_s20, 3  ;;  %p1299_p1 = scmp.ge.s32.totalorder %s942_s20, 1 }
  0x3b   : > { %s615_s9 = sshll.u32 %s1047_s5, 3  ;;  %s616_s12 = sshll.u32 %s938_s19, 7 }
  0x3c   : > { %p1101_p5 = pnand %p1299_p1, %p277_p12  ;;  %s1110_s26 = scalar_lea.hbm %s1279_s0, %s616_s12 }
  0x3d   : > { %s207_s11 = scalar_lea.vmem [#allocation3], %s615_s9  ;;  %s618_s10 = sshll.u32 %s1047_s5, 4 }
  0x3e   : > { %s1300_s22 = scalar_select %p1101_p5, 1, 0 }
  0x3f   : > { %s215_s8 = sshll.u32 %s207_s11, 4  ;;  %s204_s13 = scalar_lea.sflag [#allocation4], %s1047_s5  ;;  %s1112_s8 = int_to_ptr.vmem [resolvable:$true] %s215_s8 }
  0x40   : > { %s762_s1 = scalar_lea.hbm %s1110_s26, 128  ;;  %s767_s12 = scalar_lea.hbm %s1279_s0, 256 }
  0x41   : > { %p763_p8 = scmp.ne.s32.totalorder %s1110_s26, %s762_s1  ;;  %p768_p10 = scmp.lt.u32.totalorder %s1110_s26, %s1279_s0 }
  0x42   : > { %p769_p13 = scmp.lt.u32.totalorder %s767_s12, %s762_s1  ;;  %p771_p4 = scmp.lt.u32.totalorder %s762_s1, %s1110_s26 }
  0x43   : > { %p765_p9 = pnand %p763_p8, %p1074_p3 }
  0x44   : > { %p770_p2 = por %p769_p13, %p768_p10 }
  0x45   : > { %p766_p11 = pneg %p765_p9 }
  0x46   : > { %p772_p6 = por %p771_p4, %p770_p2 }
  0x48   : > { %p773_p7 = pnand %p772_p6, %p766_p11 }
  0x4a   : > { %776 = shalt.err (!%p773_p7)
}
  0x4b   : > { %s777_s9 = scalar_lea.vmem %s1112_s8, 128  ;;  %s945_s23 = smov [#allocation3]  }
  0x4c   : > { %p778_p12 = scmp.ne.s32.totalorder %s1112_s8, %s777_s9  ;;  %s782_s29 = sshll.u32 %s945_s23, 4  ;;  %s783_s29 = int_to_ptr.vmem [resolvable:$false] %s782_s29 }
  0x4d   : > { %s784_s11 = scalar_lea.vmem %s783_s29, 256  ;;  %p785_p9 = scmp.lt.s32.totalorder %s1112_s8, %s783_s29 }
  0x4e   : > { %p780_p1 = pnand %p778_p12, %p1074_p3  ;;  %p786_p5 = scmp.lt.s32.totalorder %s784_s11, %s777_s9 }
  0x50   : > { %p781_p8 = pneg %p780_p1  ;;  %p787_p10 = por %p786_p5, %p785_p9 }
  0x52   : > { %p788_p13 = pnand %p787_p10, %p781_p8 }
  0x54   : > { %791 = shalt.err (!%p788_p13)
}
  0x55   : > { %660 = dma.hbm_to_vmem [thread:$0]  (!%p1052_p0), %s1110_s26, 128, %s1112_s8, %s204_s13  }
  0x56   : > { %s635_s1 = sshll.u32 %s938_s19, 8  ;;  %s243_s9 = scalar_lea.vmem [#allocation8], %s618_s10 }
  0x57   : > { %s1141_s25 = scalar_lea.hbm %s1281_s2, %s635_s1  ;;  %s251_s23 = sshll.u32 %s243_s9, 4  ;;  %s1145_s23 = int_to_ptr.vmem [resolvable:$true] %s251_s23 }
  0x58   : > { %s792_s29 = scalar_lea.hbm %s1141_s25, 256  ;;  %s797_s13 = scalar_lea.hbm %s1281_s2, 512 }
  0x59   : > { %p793_p5 = scmp.ne.s32.totalorder %s1141_s25, %s792_s29  ;;  %p798_p4 = scmp.lt.u32.totalorder %s1141_s25, %s1281_s2 }
  0x5a   : > { %p799_p6 = scmp.lt.u32.totalorder %s797_s13, %s792_s29  ;;  %p801_p12 = scmp.lt.u32.totalorder %s792_s29, %s1141_s25 }
  0x5b   : > { %p795_p11 = pnand %p793_p5, %p1074_p3 }
  0x5c   : > { %p800_p7 = por %p799_p6, %p798_p4 }
  0x5d   : > { %p796_p2 = pneg %p795_p11 }
  0x5e   : > { %p802_p1 = por %p801_p12, %p800_p7 }
  0x60   : > { %p803_p8 = pnand %p802_p1, %p796_p2 }
  0x62   : > { %806 = shalt.err (!%p803_p8)
}
  0x63   : > { %s807_s10 = scalar_lea.vmem %s1145_s23, 256  ;;  %s946_s12 = smov [#allocation8]  }
  0x64   : > { %p808_p9 = scmp.ne.s32.totalorder %s1145_s23, %s807_s10  ;;  %s812_s6 = sshll.u32 %s946_s12, 4  ;;  %s813_s6 = int_to_ptr.vmem [resolvable:$false] %s812_s6 }
  0x65   : > { %s814_s9 = scalar_lea.vmem %s813_s6, 512  ;;  %p815_p5 = scmp.lt.s32.totalorder %s1145_s23, %s813_s6 }
  0x66   : > { %p810_p10 = pnand %p808_p9, %p1074_p3  ;;  %p816_p11 = scmp.lt.s32.totalorder %s814_s9, %s807_s10 }
  0x68   : > { %p811_p13 = pneg %p810_p10  ;;  %p817_p4 = por %p816_p11, %p815_p5 }
  0x6a   : > { %p818_p6 = pnand %p817_p4, %p811_p13 }
  0x6c   : > { %821 = shalt.err (!%p818_p6)
}
  0x6d   : > { %s947_s29 = smov 64   ;;  %s948_s8 = smov 4  }
  0x6e   : > { %666 = dma.hbm_to_vmem [thread:$0]  (!%p1052_p0), %s1141_s25, 256, %s1145_s23, %s1068_s14, %s947_s29, %s947_s29, %s948_s8  }
  0x6f   : > { %s1301_s26 = sshll.u32 %s938_s19, 4  ;;  %s264_s10 = scalar_lea.vmem [#allocation9], %s1047_s5 }
  0x70   : > { %s1174_s1 = scalar_lea.hbm %s1282_s3, %s1301_s26  ;;  %s272_s12 = sshll.u32 %s264_s10, 4  ;;  %s273_s12 = int_to_ptr.vmem [resolvable:$true] %s272_s12 }
  0x71   : > { %s262_s6 = scalar_lea.sflag [#allocation10], %s1047_s5  ;;  %s822_s9 = scalar_lea.hbm %s1174_s1, 16 }
  0x72   : > { %p823_p2 = scmp.ne.s32.totalorder %s1174_s1, %s822_s9  ;;  %s827_s23 = scalar_lea.hbm %s1282_s3, 32 }
  0x73   : > { %p828_p1 = scmp.lt.u32.totalorder %s1174_s1, %s1282_s3  ;;  %p829_p8 = scmp.lt.u32.totalorder %s827_s23, %s822_s9 }
  0x74   : > { %p825_p7 = pnand %p823_p2, %p1074_p3  ;;  %p831_p10 = scmp.lt.u32.totalorder %s822_s9, %s1174_s1 }
  0x75   : > { %p830_p9 = por %p829_p8, %p828_p1 }
  0x76   : > { %p826_p12 = pneg %p825_p7 }
  0x77   : > { %p832_p13 = por %p831_p10, %p830_p9 }
  0x79   : > { %p833_p5 = pnand %p832_p13, %p826_p12 }
  0x7b   : > { %836 = shalt.err (!%p833_p5)
}
  0x7c   : > { %s837_s5 = scalar_lea.vmem %s273_s12, 16  ;;  %s949_s26 = smov [#allocation9]  }
  0x7d   : > { %p838_p11 = scmp.ne.s32.totalorder %s273_s12, %s837_s5  ;;  %s842_s13 = sshll.u32 %s949_s26, 4  ;;  %s843_s13 = int_to_ptr.vmem [resolvable:$false] %s842_s13 }
  0x7e   : > { %s844_s11 = scalar_lea.vmem %s843_s13, 32  ;;  %p845_p2 = scmp.lt.s32.totalorder %s273_s12, %s843_s13 }
  0x7f   : > { %p840_p4 = pnand %p838_p11, %p1074_p3  ;;  %p846_p7 = scmp.lt.s32.totalorder %s844_s11, %s837_s5 }
  0x81   : > { %p841_p6 = pneg %p840_p4  ;;  %p847_p0 = por %p846_p7, %p845_p2 }
  0x83   : > { %p848_p1 = pnand %p847_p0, %p841_p6 }
  0x85   : > { %851 = shalt.err (!%p848_p1)
}
  0x86   : > { %p1302_p8 = scmp.ne.s32.totalorder %s1296_s7, 0  ;;  %p1303_p12 = scmp.ne.s32.totalorder %s1300_s22, 0 }
  0x87   : > { %s1198_s24 = sand.u32 (!%p1303_p12), 1, %s926_s16   ;;  %p1304_p3 = scmp.ne.s32.totalorder (!%p1303_p12), %s1292_s27, 0 }
  0x88   : > { %669 = dma.hbm_to_vmem [thread:$0]  (!%p1302_p8), %s1174_s1, 16, %s273_s12, %s262_s6  }
  0x89   : > { %281 = sbr.rel (%p1303_p12) target bundleno = 556 (0x22c), region = 36  ;;  %s623_s10 = sshll.u32 (!%p1303_p12), %s1198_s24, 3 }
  0x8a   : > { %s284_s9 = scalar_lea.sflag (!%p1303_p12), [#allocation4], %s1198_s24  ;;  %s287_s14 = scalar_lea.vmem (!%p1303_p12), [#allocation3], %s623_s10 }
  0x90   : > { %905 = dma.done.wait (%p1304_p3), %s284_s9, 128  }
  0x91   : > { %907 = vsyncadd (%p1304_p3), %s284_s9, 4294967168  ;;  %s292_s7 = sand.u32 1, %s1009_s21   ;;  %s295_s1 = scalar_lea.vmem [#allocation6], %s1198_s24 }
  0x92   : > { %s293_s22 = scalar_lea.sflag [#allocation7], %s292_s7 }
  0x93   : > { %909 = dma.done.wait (%p1304_p3), %s293_s22, 272  }
  0x94   : > { %911 = vsyncadd (%p1304_p3), %s293_s22, 4294967024  ;;  %s624_s12 = sshll.u32 %s1198_s24, 4  ;;  %s310_s25 = scalar_lea.sflag [#allocation10], %s1198_s24 }
  0x95   : > { %s304_s6 = scalar_lea.vmem [#allocation8], %s624_s12  ;;  %s312_s23 = scalar_lea.vmem [#allocation9], %s1198_s24 }
  0x96   : > { %913 = dma.done.wait (%p1304_p3), %s310_s25, 16  }
  0x97   : > { %915 = vsyncadd (%p1304_p3), %s310_s25, 4294967280  ;;  %v355_v0 = vld [vmem:[%s287_s14] sm:$0xff]  ;;  %vm357_vm0 = vcmask 261120   ;;  %v950_v4 = vmov 0.0   ;;  %vm951_vm1 = vmmov 0   ;;  %vm375_vm2 = vcmask 257024  }
  0x98   : > { %v356_v1 = vmul.f32 %v355_v0, %v355_v0  ;;  %v728_v3 = vld [vmem:[%s304_s6] sm:$0xff]   ;;  %639 = vmatprep.subr.bf16.mxu0 %v950_v4  ;;  %v729_v5 = vld [vmem:[%s304_s6 + $0x8] sm:$0xff]   ;;  %643 = vmatprep.mubr.msk.bf16.mxu0 %vm951_vm1, %v950_v4  ;;  %s625_s21 = sshll.u32 %s1198_s24, 2  ;;  %s632_s27 = sshll.u32 %s934_s18, 6 }
  0x99   : > { %640 = vmatpush3.bf16.msra.mxu0 %v728_v3  ;;  %v626_v10 = vld [vmem:[%s295_s1] ss:$0 sm:$0xff]  ;;  %s349_s29 = scalar_lea.vmem [#allocation11], %s625_s21  ;;  %s1229_s13 = scalar_lea.hbm %s1283_s4, %s632_s27 }
  0x9a   : > { %v358_v2 = vsel %vm357_vm0, %v356_v1, 0.0  ;;  %641 = vmatprep.subr.bf16.mxu0 %v950_v4  ;;  %v627_v15 = vld [vmem:[%s312_s23] ss:$0 sm:$0xff]  ;;  %s464_s8 = sshll.u32 %s349_s29, 4  ;;  %s449_s18 = scalar_lea.sflag [#allocation5], %s1198_s24  ;;  %s1231_s8 = int_to_ptr.vmem [resolvable:$true] %s464_s8 }
  0x9b   : > { %359 = vadd.xlane.f32.xlu0 %v358_v2  ;;  %s852_s11 = scalar_lea.vmem %s1231_s8, 64  ;;  %p1305_p9 = scmp.ne.s32.totalorder %s1293_s28, 0 }
  0x9c   : > { %p853_p0 = scmp.ne.s32.totalorder %s1231_s8, %s852_s11  ;;  %s952_s10 = smov [#allocation11]  }
  0x9d   : > { %642 = vmatpush3.bf16.msra.mxu0 %v729_v5  ;;  %s856_s9 = sshll.u32 %s952_s10, 4  ;;  %s857_s9 = int_to_ptr.vmem [resolvable:$false] %s856_s9 }
  0x9e   : > { %p854_p10 = pnand %p853_p0, %p1305_p9  ;;  %s858_s14 = scalar_lea.vmem %s857_s9, 128 }
  0x9f   : > { %p859_p5 = scmp.lt.s32.totalorder %s1231_s8, %s857_s9  ;;  %p860_p11 = scmp.lt.s32.totalorder %s858_s14, %s852_s11 }
  0xa0   : > { %p855_p13 = pneg %p854_p10 }
  0xa1   : > { %p861_p4 = por %p860_p11, %p859_p5 }
  0xa3   : > { %p862_p6 = pnand %p861_p4, %p855_p13 }
 0x128   : > { %v360_v6 = vpop.xlane.xlu0 %359 }
 0x129   : > { %v362_v7 = vmul.f32 0.03125, %v360_v6 }
 0x12b   : > { %v363_v8 = vadd.f32 1.1920929e-07, %v362_v7 }
 0x12d   : > { %730 = vrsqrt.f32 %v363_v8 }
 0x137   : > { %v731_v9 = vpop.eup %730 }
 0x138   : > { %v365_v11 = vmul.f32 %v731_v9, %v355_v0 }
 0x13a   : > { %v373_v12 = vmul.f32 %v626_v10, %v365_v11 }
 0x13c   : > { %v374_v13 = vpack.c.bf16 %v373_v12, %v373_v12 }
 0x13e   : > { %376 = vst.msk [vmem:[#allocation2] sm:$0xf] %vm375_vm2, %v374_v13 }
 0x145   : > { %v377_v14 = vld [vmem:[#allocation2] sm:$0xf] }
 0x146   : > { %644 = vmatmul.mubr.msk.bf16.vlgmr.msra.gmra.mrb[0].mxu0 %vm357_vm0, %v377_v14 }
 0x219   : > { %v439_v16 = vpop.f32.mrb[0].mxu0 }
 0x21a   : > { %v440_v17 = vadd.f32 %v627_v15, %v439_v16  ;;  %v645_v18 = vpop.f32.mrb[1].mxu0 }
 0x21b   : > { %v442_v19 = vpop.f32.mrb[2].mxu0 }
 0x21c   : > { %v445_v20 = vpack.c.bf16 %v440_v17, %v440_v17  ;;  %v646_v21 = vpop.f32.mrb[3].mxu0 }
 0x21e   : > { %447 = vst.msk [vmem:[%s349_s29] sm:$0xf] %vm375_vm2, %v445_v20 }
 0x21f   : > { %865 = shalt.err (!%p862_p6)
}
 0x220   : > { %s866_s24 = scalar_lea.hbm %s1229_s13, 64  ;;  %s870_s1 = scalar_lea.hbm %s1283_s4, 128 }
 0x221   : > { %p867_p2 = scmp.ne.s32.totalorder %s1229_s13, %s866_s24  ;;  %p871_p8 = scmp.lt.u32.totalorder %s1229_s13, %s1283_s4 }
 0x222   : > { %p872_p12 = scmp.lt.u32.totalorder %s870_s1, %s866_s24  ;;  %p874_p0 = scmp.lt.u32.totalorder %s866_s24, %s1229_s13 }
 0x223   : > { %p868_p7 = pnand %p867_p2, %p1305_p9 }
 0x224   : > { %p873_p3 = por %p872_p12, %p871_p8 }
 0x225   : > { %p869_p1 = pneg %p868_p7 }
 0x226   : > { %p875_p10 = por %p874_p0, %p873_p3 }
 0x228   : > { %p876_p13 = pnand %p875_p10, %p869_p1 }
 0x22a   : > { %879 = shalt.err (!%p876_p13)
}
 0x22b   : > { %655 = dma.vmem_to_hbm [thread:$0]  (%p1305_p9), %s1231_s8, 64, %s1229_s13, %s449_s18  }
 0x22c PF: > { %s476_s25 = sand.u32 1, %s922_s15   ;;  %p1306_p5 = scmp.ne.s32.totalorder %s1295_s30, 0 }
 0x22d   : > { %p1307_p11 = scmp.ge.s32.totalorder %s942_s20, 2  ;;  %s477_s23 = scalar_lea.sflag [#allocation5], %s476_s25 }
 0x22f   : > { %p671_p4 = pnand %p1307_p11, %p1306_p5 }
 0x231   : > { %917 = dma.done.wait (!%p671_p4), %s477_s23, 64  }
 0x232   : > { %919 = vsyncadd (!%p671_p4), %s477_s23, 4294967232  ;;  %s26_s20 = sadd.s32 1, %s942_s20   ;;  %s1308_s28 = sld [smem:[#allocation17_spill]] }
 0x233   : > { %p23_p6 = scmp.ge.s32.totalorder %s26_s20, 4   ;;  %s1309_s21 = sld [smem:[#allocation16_spill]] }
 0x234   : > { %s1310_s15 = smov %s926_s16  ;;  %s1311_s16 = smov %s930_s17 }
 0x235   : > { %s1313_s18 = smov %s938_s19  ;;  %25 = sbr.rel (!%p23_p6) target bundleno = 12 (0xc), region = 122 }
 0x238   : > { %s1312_s17 = smov %s1308_s28 }
 0x239   : > { %s1314_s19 = smov %s1309_s21 }
 0x23c   :  { %482 = vsyncpa [#allocation4], 1 }
 0x23d   :  { %484 = vsyncpa [#allocation4 + $0x1], 1 }
 0x23e   :  { %485 = vsyncpa [#allocation7], 1 }
 0x23f   :  { %487 = vsyncpa [#allocation7 + $0x1], 1 }
 0x240   :  { %488 = vsyncpa [#allocation10], 1 }
 0x241   :  { %490 = vsyncpa [#allocation10 + $0x1], 1 }
 0x242   :  { %491 = vsyncpa [#allocation5], 1 }
 0x243   :  { %493 = vsyncpa [#allocation5 + $0x1], 1 }

// kernel: forward.9
= control target key start
LH: loop header
LB: loop body
LE: loop exit
PB: predicated region body
PF: predicated region fallthrough
CT: control target
= control target key end

     0   :  { %s1338_s0 = inlined_call_operand.hbm [shape: f32[2,16,32], index: 0, kind: input, shape index: {}]   ;;  %s1339_s1 = inlined_call_operand.hbm [shape: f32[2,1,32], index: 1, kind: input, shape index: {}]   ;;  %s1340_s2 = inlined_call_operand.hbm [shape: bf16[2,32,32], index: 2, kind: input, shape index: {}]   ;;  %s1341_s3 = inlined_call_operand.hbm [shape: f32[2,1,32], index: 3, kind: input, shape index: {}]   ;;  %s1342_s4 = inlined_call_operand.hbm [shape: bf16[2,16,32], index: 4, kind: output, shape index: {}]  }
   0x1   :  { %1350 = sst [smem:[#allocation18_spill]] %s1338_s0 }
   0x2   :  { %1351 = sst [smem:[#allocation19_spill]] %s1339_s1 }
   0x3   :  { %9 = vsyncpa [#allocation4], 0 }
   0x4   :  { %11 = vsyncpa [#allocation4 + $0x1], 0 }
   0x5   :  { %12 = vsyncpa [#allocation7], 0 }
   0x6   :  { %14 = vsyncpa [#allocation7 + $0x1], 0 }
   0x7   :  { %15 = vsyncpa [#allocation10], 0 }
   0x8   :  { %17 = vsyncpa [#allocation10 + $0x1], 0 }
   0x9   :  { %18 = vsyncpa [#allocation5], 0 }
   0xa   :  { %20 = vsyncpa [#allocation5 + $0x1], 0  ;;  %s1028_s15 = smov 0   ;;  %s1030_s16 = smov 0  }
   0xb   :  { %s1032_s17 = smov 0   ;;  %s1034_s18 = smov 0  }
   0xc   :  { %s1036_s19 = smov 0   ;;  %s1038_s20 = smov 0  }
   0xd LB: > { %s1059_s21 = sadd.s32 4294967295, %s988_s20   ;;  %s644_s22 = sadd.s32 4294967294, %s988_s20   ;;  %s988_s20 = sphi %s1038_s20, %s26_s20   ;;  %s984_s19 = sphi %s1036_s19, %s1379_s19   ;;  %s980_s18 = sphi %s1034_s18, %s1378_s18   ;;  %s976_s17 = sphi %s1032_s17, %s1377_s17   ;;  %s972_s16 = sphi %s1030_s16, %s1376_s16   ;;  %s968_s15 = sphi %s1028_s15, %s1375_s15  }
   0xe   : > { %s45_s23 = sadd.s32 1, %s984_s19  ;;  %s54_s24 = sadd.s32 1, %s976_s17 }
   0xf   : > { %p47_p0 = scmp.ge.s32.totalorder %s45_s23, 2  ;;  %p61_p1 = scmp.ne.s32.totalorder %s976_s17, %s972_s16 }
  0x10   : > { %p62_p2 = scmp.eq.s32.totalorder %s988_s20, 0  ;;  %p67_p3 = scmp.ne.s32.totalorder %s972_s16, %s968_s15 }
  0x11   : > { %s1381_s23 = smov (%p47_p0, %s45_s23), 0  ;;  %p68_p5 = scmp.eq.s32.totalorder %s1059_s21, 0 }
  0x12   : > { %1352 = sst [smem:[#allocation16_spill]] %s1381_s23  ;;  %p1071_p4 = por %p62_p2, %p61_p1 }
  0x13   : > { %s49_s26 = ssub.s32 %s984_s19, %s1381_s23  ;;  %p177_p6 = scmp.eq.s32.totalorder %s1059_s21, 1 }
  0x14   : > { %p52_p7 = scmp.eq.s32.totalorder %s49_s26, 0  ;;  %p1079_p8 = por %p68_p5, %p67_p3 }
  0x15   : > { %p1083_p9 = por %p177_p6, %p61_p1  ;;  %p183_p10 = scmp.eq.s32.totalorder %s644_s22, 1 }
  0x16   : > { %s1354_s27 = scalar_select %p1079_p8, 1, 0 }
  0x17   : > { %s1355_s28 = scalar_select %p1083_p9, 1, 0 }
  0x18   : > { %s1088_s29 = scalar_select %p52_p7, %s976_s17, %s54_s24  }
  0x19   : > { %p1090_p11 = por %p183_p10, %p67_p3  ;;  %p714_p13 = scmp.lt.s32.totalorder %s988_s20, 2 }
  0x1a   : > { %1356 = sst [smem:[#allocation17_spill]] %s1088_s29  ;;  %s1097_s5 = sand.u32 1, %s976_s17  }
  0x1b   : > { %s1357_s30 = scalar_select %p1090_p11, 1, 0 }
  0x1c   : > { %s226_s6 = sand.u32 1, %s988_s20   ;;  %p1102_p0 = pnand %p714_p13, %p1071_p4 }
  0x1d   : > { %s1345_s8 = sshll.u32 %s984_s19, 4  ;;  %s229_s9 = scalar_lea.vmem [#allocation6], %s1097_s5 }
  0x1e   : > { %s1358_s7 = scalar_select %p1102_p0, 1, 0 }
  0x1f   : > { %s236_s10 = sshll.u32 %s229_s9, 4  ;;  %s1359_s1 = sld [smem:[#allocation19_spill]]  ;;  %s1115_s10 = int_to_ptr.vmem [resolvable:$true] %s236_s10 }
  0x20   : > { %s1118_s14 = scalar_lea.sflag [#allocation7], %s226_s6  ;;  %p1124_p3 = pneg %p1102_p0 }
  0x25   : > { %s1113_s13 = scalar_lea.hbm %s1359_s1, %s1345_s8  ;;  %s783_s9 = scalar_lea.hbm %s1359_s1, 32 }
  0x26   : > { %s778_s22 = scalar_lea.hbm %s1113_s13, 16  ;;  %p784_p6 = scmp.lt.u32.totalorder %s1113_s13, %s1359_s1 }
  0x27   : > { %p779_p2 = scmp.ne.s32.totalorder %s1113_s13, %s778_s22  ;;  %p785_p7 = scmp.lt.u32.totalorder %s783_s9, %s778_s22 }
  0x28   : > { %p787_p13 = scmp.lt.u32.totalorder %s778_s22, %s1113_s13 }
  0x29   : > { %p781_p4 = pnand %p1124_p3, %p779_p2  ;;  %p786_p10 = por %p785_p7, %p784_p6 }
  0x2b   : > { %p782_p5 = pneg %p781_p4  ;;  %p788_p12 = por %p787_p13, %p786_p10 }
  0x2d   : > { %p789_p1 = pnand %p788_p12, %p782_p5 }
  0x2f   : > { %792 = shalt.err (!%p789_p1)
}
  0x30   : > { %s793_s6 = scalar_lea.vmem %s1115_s10, 16  ;;  %s990_s25 = smov [#allocation6]  }
  0x31   : > { %p794_p2 = scmp.ne.s32.totalorder %s1115_s10, %s793_s6  ;;  %s798_s26 = sshll.u32 %s990_s25, 4  ;;  %s799_s26 = int_to_ptr.vmem [resolvable:$false] %s798_s26 }
  0x32   : > { %s800_s11 = scalar_lea.vmem %s799_s26, 32  ;;  %p801_p9 = scmp.lt.s32.totalorder %s1115_s10, %s799_s26 }
  0x33   : > { %p796_p4 = pnand %p794_p2, %p1124_p3  ;;  %p802_p8 = scmp.lt.s32.totalorder %s800_s11, %s793_s6 }
  0x35   : > { %p797_p11 = pneg %p796_p4  ;;  %p803_p6 = por %p802_p8, %p801_p9 }
  0x37   : > { %p804_p7 = pnand %p803_p6, %p797_p11 }
  0x39   : > { %807 = shalt.err (!%p804_p7)
}
  0x3a   : > { %703 = dma.hbm_to_vmem [thread:$0]  (!%p1102_p0), %s1113_s13, 16, %s1115_s10, %s1118_s14  }
  0x3b   : > { %p281_p12 = scmp.lt.s32.totalorder %s988_s20, 3  ;;  %p1361_p1 = scmp.ge.s32.totalorder %s988_s20, 1 }
  0x3c   : > { %s1348_s9 = sshll.u32 %s1097_s5, 4  ;;  %s1347_s12 = sshll.u32 %s984_s19, 8 }
  0x3d   : > { %p1151_p5 = pnand %p1361_p1, %p281_p12  ;;  %s1363_s0 = sld [smem:[#allocation18_spill]] }
  0x3e   : > { %s207_s10 = scalar_lea.vmem [#allocation3], %s1348_s9  ;;  %s204_s11 = scalar_lea.sflag [#allocation4], %s1097_s5 }
  0x3f   : > { %s1362_s22 = scalar_select %p1151_p5, 1, 0 }
  0x40   : > { %s216_s13 = sshll.u32 %s207_s10, 4  ;;  %s1166_s13 = int_to_ptr.vmem [resolvable:$true] %s216_s13 }
  0x43   : > { %s1162_s26 = scalar_lea.hbm %s1363_s0, %s1347_s12  ;;  %s813_s6 = scalar_lea.hbm %s1363_s0, 512 }
  0x44   : > { %s808_s8 = scalar_lea.hbm %s1162_s26, 256  ;;  %p814_p10 = scmp.lt.u32.totalorder %s1162_s26, %s1363_s0 }
  0x45   : > { %p809_p8 = scmp.ne.s32.totalorder %s1162_s26, %s808_s8  ;;  %p815_p13 = scmp.lt.u32.totalorder %s813_s6, %s808_s8 }
  0x46   : > { %p817_p4 = scmp.lt.u32.totalorder %s808_s8, %s1162_s26 }
  0x47   : > { %p811_p9 = pnand %p809_p8, %p1124_p3  ;;  %p816_p2 = por %p815_p13, %p814_p10 }
  0x49   : > { %p812_p11 = pneg %p811_p9  ;;  %p818_p6 = por %p817_p4, %p816_p2 }
  0x4b   : > { %p819_p7 = pnand %p818_p6, %p812_p11 }
  0x4d   : > { %822 = shalt.err (!%p819_p7)
}
  0x4e   : > { %s823_s10 = scalar_lea.vmem %s1166_s13, 256  ;;  %s991_s1 = smov [#allocation3]  }
  0x4f   : > { %p824_p12 = scmp.ne.s32.totalorder %s1166_s13, %s823_s10  ;;  %s828_s23 = sshll.u32 %s991_s1, 4  ;;  %s829_s23 = int_to_ptr.vmem [resolvable:$false] %s828_s23 }
  0x50   : > { %s830_s12 = scalar_lea.vmem %s829_s23, 512  ;;  %p831_p9 = scmp.lt.s32.totalorder %s1166_s13, %s829_s23 }
  0x51   : > { %p826_p1 = pnand %p824_p12, %p1124_p3  ;;  %p832_p5 = scmp.lt.s32.totalorder %s830_s12, %s823_s10 }
  0x53   : > { %p827_p8 = pneg %p826_p1  ;;  %p833_p10 = por %p832_p5, %p831_p9 }
  0x55   : > { %p834_p13 = pnand %p833_p10, %p827_p8 }
  0x57   : > { %837 = shalt.err (!%p834_p13)
}
  0x58   : > { %s992_s8 = smov 128   ;;  %s993_s6 = smov 8  }
  0x59   : > { %700 = dma.hbm_to_vmem [thread:$0]  (!%p1102_p0), %s1162_s26, 256, %s1166_s13, %s204_s11, %s992_s8, %s992_s8, %s993_s6  }
  0x5a   : > { %s1364_s25 = sshll.u32 %s984_s19, 8  ;;  %s1365_s23 = sshll.u32 %s1097_s5, 4 }
  0x5b   : > { %s1197_s10 = scalar_lea.hbm %s1340_s2, %s1364_s25  ;;  %s247_s12 = scalar_lea.vmem [#allocation8], %s1365_s23 }
  0x5c   : > { %s255_s0 = sshll.u32 %s247_s12, 4  ;;  %s838_s29 = scalar_lea.hbm %s1197_s10, 256  ;;  %s1201_s0 = int_to_ptr.vmem [resolvable:$true] %s255_s0 }
  0x5d   : > { %p839_p5 = scmp.ne.s32.totalorder %s1197_s10, %s838_s29  ;;  %s843_s9 = scalar_lea.hbm %s1340_s2, 512 }
  0x5e   : > { %p844_p4 = scmp.lt.u32.totalorder %s1197_s10, %s1340_s2  ;;  %p845_p6 = scmp.lt.u32.totalorder %s843_s9, %s838_s29 }
  0x5f   : > { %p841_p11 = pnand %p839_p5, %p1124_p3  ;;  %p847_p12 = scmp.lt.u32.totalorder %s838_s29, %s1197_s10 }
  0x60   : > { %p846_p7 = por %p845_p6, %p844_p4 }
  0x61   : > { %p842_p2 = pneg %p841_p11 }
  0x62   : > { %p848_p1 = por %p847_p12, %p846_p7 }
  0x64   : > { %p849_p8 = pnand %p848_p1, %p842_p2 }
  0x66   : > { %852 = shalt.err (!%p849_p8)
}
  0x67   : > { %s853_s6 = scalar_lea.vmem %s1201_s0, 256  ;;  %s994_s25 = smov [#allocation8]  }
  0x68   : > { %p854_p9 = scmp.ne.s32.totalorder %s1201_s0, %s853_s6  ;;  %s858_s1 = sshll.u32 %s994_s25, 4  ;;  %s859_s1 = int_to_ptr.vmem [resolvable:$false] %s858_s1 }
  0x69   : > { %s860_s23 = scalar_lea.vmem %s859_s1, 512  ;;  %p861_p5 = scmp.lt.s32.totalorder %s1201_s0, %s859_s1 }
  0x6a   : > { %p856_p10 = pnand %p854_p9, %p1124_p3  ;;  %p862_p11 = scmp.lt.s32.totalorder %s860_s23, %s853_s6 }
  0x6c   : > { %p857_p13 = pneg %p856_p10  ;;  %p863_p4 = por %p862_p11, %p861_p5 }
  0x6e   : > { %p864_p6 = pnand %p863_p4, %p857_p13 }
  0x70   : > { %867 = shalt.err (!%p864_p6)
}
  0x71   : > { %s995_s29 = smov 64   ;;  %s996_s12 = smov 4  }
  0x72   : > { %706 = dma.hbm_to_vmem [thread:$0]  (!%p1102_p0), %s1197_s10, 256, %s1201_s0, %s1118_s14, %s995_s29, %s995_s29, %s996_s12  }
  0x73   : > { %s1366_s26 = sshll.u32 %s984_s19, 4  ;;  %s268_s8 = scalar_lea.vmem [#allocation9], %s1097_s5 }
  0x74   : > { %s1230_s11 = scalar_lea.hbm %s1341_s3, %s1366_s26  ;;  %s276_s6 = sshll.u32 %s268_s8, 4  ;;  %s277_s6 = int_to_ptr.vmem [resolvable:$true] %s276_s6 }
  0x75   : > { %s266_s25 = scalar_lea.sflag [#allocation10], %s1097_s5  ;;  %s868_s1 = scalar_lea.hbm %s1230_s11, 16 }
  0x76   : > { %p869_p2 = scmp.ne.s32.totalorder %s1230_s11, %s868_s1  ;;  %s873_s10 = scalar_lea.hbm %s1341_s3, 32 }
  0x77   : > { %p874_p1 = scmp.lt.u32.totalorder %s1230_s11, %s1341_s3  ;;  %p875_p8 = scmp.lt.u32.totalorder %s873_s10, %s868_s1 }
  0x78   : > { %p871_p7 = pnand %p869_p2, %p1124_p3  ;;  %p877_p10 = scmp.lt.u32.totalorder %s868_s1, %s1230_s11 }
  0x79   : > { %p876_p9 = por %p875_p8, %p874_p1 }
  0x7a   : > { %p872_p12 = pneg %p871_p7 }
  0x7b   : > { %p878_p13 = por %p877_p10, %p876_p9 }
  0x7d   : > { %p879_p5 = pnand %p878_p13, %p872_p12 }
  0x7f   : > { %882 = shalt.err (!%p879_p5)
}
  0x80   : > { %s883_s5 = scalar_lea.vmem %s277_s6, 16  ;;  %s997_s12 = smov [#allocation9]  }
  0x81   : > { %p884_p11 = scmp.ne.s32.totalorder %s277_s6, %s883_s5  ;;  %s888_s26 = sshll.u32 %s997_s12, 4  ;;  %s889_s26 = int_to_ptr.vmem [resolvable:$false] %s888_s26 }
  0x82   : > { %s890_s13 = scalar_lea.vmem %s889_s26, 32  ;;  %p891_p2 = scmp.lt.s32.totalorder %s277_s6, %s889_s26 }
  0x83   : > { %p886_p4 = pnand %p884_p11, %p1124_p3  ;;  %p892_p7 = scmp.lt.s32.totalorder %s890_s13, %s883_s5 }
  0x85   : > { %p887_p6 = pneg %p886_p4  ;;  %p893_p0 = por %p892_p7, %p891_p2 }
  0x87   : > { %p894_p1 = pnand %p893_p0, %p887_p6 }
  0x89   : > { %897 = shalt.err (!%p894_p1)
}
  0x8a   : > { %p1367_p8 = scmp.ne.s32.totalorder %s1358_s7, 0  ;;  %p1368_p12 = scmp.ne.s32.totalorder %s1362_s22, 0 }
  0x8b   : > { %s1254_s24 = sand.u32 (!%p1368_p12), 1, %s972_s16   ;;  %p1369_p3 = scmp.ne.s32.totalorder (!%p1368_p12), %s1354_s27, 0 }
  0x8c   : > { %709 = dma.hbm_to_vmem [thread:$0]  (!%p1367_p8), %s1230_s11, 16, %s277_s6, %s266_s25  }
  0x8d   : > { %285 = sbr.rel (%p1368_p12) target bundleno = 567 (0x237), region = 36  ;;  %s656_s9 = sshll.u32 (!%p1368_p12), %s1254_s24, 4 }
  0x8e   : > { %s288_s8 = scalar_lea.sflag (!%p1368_p12), [#allocation4], %s1254_s24  ;;  %s291_s1 = scalar_lea.vmem (!%p1368_p12), [#allocation3], %s656_s9 }
  0x94   : > { %951 = dma.done.wait (%p1369_p3), %s288_s8, 256  }
  0x95   : > { %953 = vsyncadd (%p1369_p3), %s288_s8, 4294967040  ;;  %s296_s7 = sand.u32 1, %s1059_s21   ;;  %s299_s11 = scalar_lea.vmem [#allocation6], %s1254_s24 }
  0x96   : > { %s297_s22 = scalar_lea.sflag [#allocation7], %s296_s7 }
  0x97   : > { %955 = dma.done.wait (%p1369_p3), %s297_s22, 272  }
  0x98   : > { %957 = vsyncadd (%p1369_p3), %s297_s22, 4294967024  ;;  %s308_s6 = scalar_lea.vmem [#allocation8], %s656_s9  ;;  %s314_s25 = scalar_lea.sflag [#allocation10], %s1254_s24 }
  0x99   : > { %s316_s0 = scalar_lea.vmem [#allocation9], %s1254_s24 }
  0x9a   : > { %959 = dma.done.wait (%p1369_p3), %s314_s25, 16  }
  0x9b   : > { %961 = vsyncadd (%p1369_p3), %s314_s25, 4294967280  ;;  %v361_v0 = vld [vmem:[%s291_s1] sm:$0xff]  ;;  %vm365_vm0 = vcmask 261120   ;;  %v362_v1 = vld [vmem:[%s291_s1 + $0x8] sm:$0xff]  ;;  %v998_v7 = vmov 0.0   ;;  %vm999_vm1 = vmmov 0  }
  0x9c   : > { %v363_v2 = vmul.f32 %v361_v0, %v361_v0  ;;  %v364_v3 = vmul.f32 %v362_v1, %v362_v1  ;;  %v772_v6 = vld [vmem:[%s308_s6] sm:$0xff]   ;;  %679 = vmatprep.subr.bf16.mxu0 %v998_v7  ;;  %v773_v8 = vld [vmem:[%s308_s6 + $0x8] sm:$0xff]   ;;  %683 = vmatprep.mubr.msk.bf16.mxu0 %vm999_vm1, %v998_v7  ;;  %s658_s21 = sshll.u32 %s1254_s24, 3  ;;  %s675_s10 = sshll.u32 %s980_s18, 7  ;;  %vm469_vm2 = vcmask 257024  }
  0x9d   : > { %680 = vmatpush3.bf16.msra.mxu0 %v772_v6  ;;  %v659_v18 = vld [vmem:[%s299_s11] ss:$0 sm:$0xff]  ;;  %s353_s27 = scalar_lea.vmem [#allocation11], %s658_s21  ;;  %s1287_s5 = scalar_lea.hbm %s1342_s4, %s675_s10 }
  0x9e   : > { %v366_v4 = vsel %vm365_vm0, %v363_v2, 0.0  ;;  %v369_v5 = vsel %vm365_vm0, %v364_v3, 0.0  ;;  %681 = vmatprep.subr.bf16.mxu0 %v998_v7  ;;  %v660_v24 = vld [vmem:[%s316_s0] ss:$0 sm:$0xff]  ;;  %s489_s14 = sshll.u32 %s353_s27, 4  ;;  %s473_s12 = scalar_lea.sflag [#allocation5], %s1254_s24  ;;  %s1289_s14 = int_to_ptr.vmem [resolvable:$true] %s489_s14 }
  0x9f   : > { %367 = vadd.xlane.f32.xlu0 %v366_v4  ;;  %s898_s18 = scalar_lea.vmem %s1289_s14, 128  ;;  %p1370_p9 = scmp.ne.s32.totalorder %s1355_s28, 0 }
  0xa0   : > { %p899_p0 = scmp.ne.s32.totalorder %s1289_s14, %s898_s18  ;;  %s1000_s26 = smov [#allocation11]  }
  0xa1   : > { %682 = vmatpush3.bf16.msra.mxu0 %v773_v8  ;;  %s902_s13 = sshll.u32 %s1000_s26, 4  ;;  %s903_s13 = int_to_ptr.vmem [resolvable:$false] %s902_s13 }
  0xa2   : > { %p900_p10 = pnand %p899_p0, %p1370_p9  ;;  %s904_s9 = scalar_lea.vmem %s903_s13, 256 }
  0xa3   : > { %370 = vadd.xlane.f32.xlu0 %v369_v5  ;;  %p905_p5 = scmp.lt.s32.totalorder %s1289_s14, %s903_s13  ;;  %p906_p11 = scmp.lt.s32.totalorder %s904_s9, %s898_s18 }
  0xa4   : > { %p901_p13 = pneg %p900_p10 }
  0xa5   : > { %p907_p4 = por %p906_p11, %p905_p5 }
  0xa7   : > { %p908_p6 = pnand %p907_p4, %p901_p13 }
 0x12c   : > { %v368_v9 = vpop.xlane.xlu0 %367 }
 0x12d   : > { %v373_v10 = vmul.f32 0.03125, %v368_v9 }
 0x12f   : > { %v375_v11 = vadd.f32 1.1920929e-07, %v373_v10 }
 0x130   : > { %v371_v12 = vpop.xlane.xlu0 %370 }
 0x131   : > { %774 = vrsqrt.f32 %v375_v11  ;;  %v374_v13 = vmul.f32 0.03125, %v371_v12 }
 0x133   : > { %v376_v14 = vadd.f32 1.1920929e-07, %v374_v13 }
 0x135   : > { %776 = vrsqrt.f32 %v376_v14 }
 0x13b   : > { %v775_v15 = vpop.eup %774 }
 0x13c   : > { %v379_v16 = vmul.f32 %v775_v15, %v361_v0 }
 0x13e   : > { %v388_v20 = vmul.f32 %v659_v18, %v379_v16 }
 0x13f   : > { %v777_v17 = vpop.eup %776 }
 0x140   : > { %v380_v19 = vmul.f32 %v777_v17, %v362_v1 }
 0x142   : > { %v389_v21 = vmul.f32 %v659_v18, %v380_v19 }
 0x144   : > { %v390_v22 = vpack.c.bf16 %v389_v21, %v388_v20 }
 0x146   : > { %391 = vst.msk [vmem:[#allocation2] sm:$0xff] %vm365_vm0, %v390_v22 }
 0x14d   : > { %v392_v23 = vld [vmem:[#allocation2] sm:$0xff] }
 0x14e   : > { %684 = vmatmul.mubr.msk.bf16.vlgmr.msra.gmra.mrb[0].mxu0 %vm365_vm0, %v392_v23 }
 0x221   : > { %v454_v25 = vpop.f32.mrb[0].mxu0 }
 0x222   : > { %v455_v26 = vadd.f32 %v660_v24, %v454_v25  ;;  %v685_v27 = vpop.f32.mrb[1].mxu0 }
 0x223   : > { %v457_v28 = vpop.f32.mrb[2].mxu0 }
 0x224   : > { %v673_v29 = vpack.c.bf16 %v455_v26, %v455_v26  ;;  %v458_v30 = vadd.f32 %v660_v24, %v457_v28  ;;  %v686_v31 = vpop.f32.mrb[3].mxu0 }
 0x226   : > { %470 = vst.msk [vmem:[%s353_s27] sm:$0xf] %vm469_vm2, %v673_v29  ;;  %v674_v32 = vpack.c.bf16 %v458_v30, %v458_v30 }
 0x228   : > { %471 = vst.msk [vmem:[%s353_s27 + $0x4] sm:$0xf] %vm469_vm2, %v674_v32 }
 0x229   : > { %911 = shalt.err (!%p908_p6)
}
 0x22a   : > { %s912_s8 = scalar_lea.hbm %s1287_s5, 128  ;;  %s916_s22 = scalar_lea.hbm %s1342_s4, 256 }
 0x22b   : > { %p913_p2 = scmp.ne.s32.totalorder %s1287_s5, %s912_s8  ;;  %p917_p8 = scmp.lt.u32.totalorder %s1287_s5, %s1342_s4 }
 0x22c   : > { %p918_p12 = scmp.lt.u32.totalorder %s916_s22, %s912_s8  ;;  %p920_p0 = scmp.lt.u32.totalorder %s912_s8, %s1287_s5 }
 0x22d   : > { %p914_p7 = pnand %p913_p2, %p1370_p9 }
 0x22e   : > { %p919_p3 = por %p918_p12, %p917_p8 }
 0x22f   : > { %p915_p1 = pneg %p914_p7 }
 0x230   : > { %p921_p10 = por %p920_p0, %p919_p3 }
 0x232   : > { %p922_p13 = pnand %p921_p10, %p915_p1 }
 0x234   : > { %925 = shalt.err (!%p922_p13)
}
 0x235   : > { %s1001_s25 = smov 64   ;;  %s1002_s0 = smov 4  }
 0x236   : > { %695 = dma.vmem_to_hbm [thread:$0]  (%p1370_p9), %s1289_s14, 128, %s1287_s5, %s473_s12, %s1001_s25, %s1001_s25, %s1002_s0  }
 0x237 PF: > { %s504_s21 = sand.u32 1, %s968_s15   ;;  %p1371_p5 = scmp.ne.s32.totalorder %s1357_s30, 0 }
 0x238   : > { %p1372_p11 = scmp.ge.s32.totalorder %s988_s20, 2  ;;  %s505_s27 = scalar_lea.sflag [#allocation5], %s504_s21 }
 0x23a   : > { %p711_p4 = pnand %p1372_p11, %p1371_p5 }
 0x23c   : > { %963 = dma.done.wait (!%p711_p4), %s505_s27, 128  }
 0x23d   : > { %965 = vsyncadd (!%p711_p4), %s505_s27, 4294967168  ;;  %s26_s20 = sadd.s32 1, %s988_s20   ;;  %s1373_s10 = sld [smem:[#allocation17_spill]] }
 0x23e   : > { %p23_p6 = scmp.ge.s32.totalorder %s26_s20, 4   ;;  %s1374_s28 = sld [smem:[#allocation16_spill]] }
 0x23f   : > { %s1375_s15 = smov %s972_s16  ;;  %s1376_s16 = smov %s976_s17 }
 0x240   : > { %s1378_s18 = smov %s984_s19  ;;  %25 = sbr.rel (!%p23_p6) target bundleno = 13 (0xd), region = 122 }
 0x243   : > { %s1377_s17 = smov %s1373_s10 }
 0x244   : > { %s1379_s19 = smov %s1374_s28 }
 0x247   :  { %510 = vsyncpa [#allocation4], 1 }
 0x248   :  { %512 = vsyncpa [#allocation4 + $0x1], 1 }
 0x249   :  { %513 = vsyncpa [#allocation7], 1 }
 0x24a   :  { %515 = vsyncpa [#allocation7 + $0x1], 1 }
 0x24b   :  { %516 = vsyncpa [#allocation10], 1 }
 0x24c   :  { %518 = vsyncpa [#allocation10 + $0x1], 1 }
 0x24d   :  { %519 = vsyncpa [#allocation5], 1 }
 0x24e   :  { %521 = vsyncpa [#allocation5 + $0x1], 1 }

// kernel: forward.10
= control target key start
LH: loop header
LB: loop body
LE: loop exit
PB: predicated region body
PF: predicated region fallthrough
CT: control target
= control target key end

     0   :  { %s1204_s0 = inlined_call_operand.hbm [shape: f32[1,8,32], index: 0, kind: input, shape index: {}]   ;;  %s1205_s1 = inlined_call_operand.hbm [shape: f32[1,1,32], index: 1, kind: input, shape index: {}]   ;;  %s1206_s2 = inlined_call_operand.hbm [shape: bf16[2,32,64], index: 2, kind: input, shape index: {}]   ;;  %s1207_s3 = inlined_call_operand.hbm [shape: f32[2,1,64], index: 3, kind: input, shape index: {}]   ;;  %s1208_s4 = inlined_call_operand.hbm [shape: bf16[2,8,64], index: 4, kind: output, shape index: {}]  }
   0x1   :  { %1221 = sst [smem:[#allocation18_spill]] %s1204_s0 }
   0x2   :  { %1222 = sst [smem:[#allocation19_spill]] %s1206_s2 }
   0x3   :  { %9 = vsyncpa [#allocation4], 0 }
   0x4   :  { %10 = vsyncpa [#allocation7], 0 }
   0x5   :  { %11 = vsyncpa [#allocation5], 0 }
   0x6   :  { %13 = vsyncpa [#allocation5 + $0x1], 0  ;;  %s918_s15 = smov 0   ;;  %s920_s16 = smov 0  }
   0x7   :  { %s922_s17 = smov 0   ;;  %s924_s18 = smov 0  }
   0x8   :  { %s926_s19 = smov 0   ;;  %s928_s20 = smov 0  }
   0x9 LB: > { %1223 = sst [smem:[#allocation15_spill]] %s882_s20  ;;  %s949_s21 = sadd.s32 4294967295, %s882_s20   ;;  %s882_s20 = sphi %s928_s20, %s19_s20   ;;  %s878_s19 = sphi %s926_s19, %s1261_s19   ;;  %s874_s18 = sphi %s924_s18, %s1260_s18   ;;  %s870_s17 = sphi %s922_s17, %s1259_s17   ;;  %s866_s16 = sphi %s920_s16, %s1258_s16   ;;  %s862_s15 = sphi %s918_s15, %s1257_s15  }
   0xa   : > { %s545_s22 = sadd.s32 4294967294, %s882_s20   ;;  %s94_s23 = sadd.s32 1, %s870_s17 }
   0xb   : > { %p101_p0 = scmp.ne.s32.totalorder %s870_s17, %s866_s16  ;;  %p102_p1 = scmp.eq.s32.totalorder %s882_s20, 0 }
   0xc   : > { %p107_p2 = scmp.ne.s32.totalorder %s866_s16, %s862_s15  ;;  %p1209_p3 = scmp.eq.s32.totalorder %s949_s21, 0 }
   0xd   : > { %p163_p4 = scmp.eq.s32.totalorder %s949_s21, 1  ;;  %p960_p5 = por %p102_p1, %p101_p0 }
   0xe   : > { %p169_p6 = scmp.eq.s32.totalorder %s545_s22, 1  ;;  %p966_p7 = por %p1209_p3, %p107_p2 }
   0xf   : > { %p970_p8 = por %p163_p4, %p101_p0  ;;  %p546_p10 = scmp.ge.s32.totalorder %s882_s20, 1 }
  0x10   : > { %s1225_s25 = scalar_select %p966_p7, 1, 0 }
  0x11   : > { %s1226_s26 = scalar_select %p970_p8, 1, 0 }
  0x12   : > { %p974_p9 = por %p169_p6, %p107_p2  ;;  %p176_p11 = scmp.lt.s32.totalorder %s882_s20, 3 }
  0x13   : > { %s884_s29 = smov [#allocation3]   ;;  %p614_p1 = scmp.lt.s32.totalorder %s882_s20, 2 }
  0x14   : > { %s1227_s27 = scalar_select %p974_p9, 1, 0 }
  0x15   : > { %p981_p13 = pnand %p546_p10, %p176_p11  ;;  %s191_s30 = sshll.u32 %s884_s29, 4  ;;  %s192_s30 = int_to_ptr.vmem [resolvable:$true] %s191_s30 }
  0x16   : > { %p990_p4 = pnand %p614_p1, %p960_p5  ;;  %s38_s7 = sadd.s32 1, %s878_s19 }
  0x17   : > { %s1228_s28 = scalar_select %p981_p13, 1, 0 }
  0x18   : > { %p594_p0 = pneg %p981_p13  ;;  %p1001_p6 = scmp.ge.s32.totalorder %s38_s7, 2 }
  0x19   : > { %s1229_s5 = scalar_select %p990_p4, 1, 0 }
  0x1a   : > { %p996_p2 = pnand %p594_p0, %p1209_p3  ;;  %s1232_s0 = sld [smem:[#allocation18_spill]] }
  0x1b   : > { %s1231_s8 = scalar_select %p1001_p6, 1, 0 }
  0x1c   : > { %p1215_p10 = pneg %p996_p2 }
  0x20   : > { %s676_s12 = scalar_lea.hbm %s1232_s0, 128 }
  0x21   : > { %p677_p5 = scmp.ne.s32.totalorder %s1232_s0, %s676_s12  ;;  %p683_p0 = scmp.lt.u32.totalorder %s676_s12, %s1232_s0 }
  0x23   : > { %p679_p11 = pnand %p1215_p10, %p677_p5 }
  0x25   : > { %p680_p1 = pneg %p679_p11 }
  0x27   : > { %p685_p12 = pnand %p683_p0, %p680_p1 }
  0x29   : > { %688 = shalt.err (!%p685_p12)
}
  0x2a   : > { %s689_s29 = scalar_lea.vmem %s192_s30, 128  ;;  %p697_p7 = scmp.lt.s32.totalorder %s192_s30, %s192_s30 }
  0x2b   : > { %p690_p3 = scmp.ne.s32.totalorder %s192_s30, %s689_s29  ;;  %p698_p13 = scmp.lt.s32.totalorder %s689_s29, %s689_s29 }
  0x2d   : > { %p692_p9 = pnand %p690_p3, %p1215_p10  ;;  %p699_p4 = por %p698_p13, %p697_p7 }
  0x2f   : > { %p693_p8 = pneg %p692_p9 }
  0x31   : > { %p700_p6 = pnand %p699_p4, %p693_p8 }
  0x33   : > { %703 = shalt.err (!%p700_p6)
}
  0x34   : > { %597 = dma.hbm_to_vmem [thread:$0]  (!%p996_p2), %s1232_s0, 128, %s192_s30, [#allocation4]  }
  0x35   : > { %p1233_p3 = scmp.ne.s32.totalorder %s1231_s8, 0  ;;  %s1214_s12 = sand.u32 1, %s870_s17  }
  0x36   : > { %s550_s14 = sshll.u32 %s1214_s12, 4  ;;  %s568_s22 = sshll.u32 %s878_s19, 8 }
  0x37   : > { %s1263_s7 = smov (%p1233_p3, %s38_s7), 0  ;;  %s217_s24 = scalar_lea.vmem [#allocation8], %s550_s14 }
  0x38   : > { %1234 = sst [smem:[#allocation16_spill]] %s1263_s7  ;;  %s89_s13 = ssub.s32 %s878_s19, %s1263_s7 }
  0x39   : > { %p92_p7 = scmp.eq.s32.totalorder %s89_s13, 0  ;;  %s225_s29 = sshll.u32 %s217_s24, 4  ;;  %s1048_s29 = int_to_ptr.vmem [resolvable:$true] %s225_s29 }
  0x3a   : > { %s1236_s2 = sld [smem:[#allocation19_spill]]  ;;  %s1237_s8 = sand.u32 1, %s882_s20  }
  0x3b   : > { %s1041_s10 = scalar_select %p92_p7, %s870_s17, %s94_s23  }
  0x3c   : > { %s1052_s12 = scalar_lea.sflag [#allocation4], %s1237_s8  ;;  %p1238_p9 = scmp.ne.s32.totalorder %s1229_s5, 0 }
  0x3d   : > { %1235 = sst [smem:[#allocation17_spill]] %s1041_s10 }
  0x3e   : > { %p1219_p12 = pneg %p1238_p9 }
  0x40   : > { %s1046_s30 = scalar_lea.hbm %s1236_s2, %s568_s22  ;;  %s709_s14 = scalar_lea.hbm %s1236_s2, 512 }
  0x41   : > { %s704_s13 = scalar_lea.hbm %s1046_s30, 256  ;;  %p710_p6 = scmp.lt.u32.totalorder %s1046_s30, %s1236_s2 }
  0x42   : > { %p705_p8 = scmp.ne.s32.totalorder %s1046_s30, %s704_s13  ;;  %p711_p5 = scmp.lt.u32.totalorder %s709_s14, %s704_s13 }
  0x43   : > { %p713_p1 = scmp.lt.u32.totalorder %s704_s13, %s1046_s30 }
  0x44   : > { %p707_p13 = pnand %p1219_p12, %p705_p8  ;;  %p712_p11 = por %p711_p5, %p710_p6 }
  0x46   : > { %p708_p4 = pneg %p707_p13  ;;  %p714_p0 = por %p713_p1, %p712_p11 }
  0x48   : > { %p715_p3 = pnand %p714_p0, %p708_p4 }
  0x4a   : > { %718 = shalt.err (!%p715_p3)
}
  0x4b   : > { %s719_s11 = scalar_lea.vmem %s1048_s29, 256  ;;  %s885_s8 = smov [#allocation8]  }
  0x4c   : > { %p720_p7 = scmp.ne.s32.totalorder %s1048_s29, %s719_s11  ;;  %s724_s23 = sshll.u32 %s885_s8, 4  ;;  %s725_s23 = int_to_ptr.vmem [resolvable:$false] %s724_s23 }
  0x4d   : > { %s726_s9 = scalar_lea.vmem %s725_s23, 512  ;;  %p727_p10 = scmp.lt.s32.totalorder %s1048_s29, %s725_s23 }
  0x4e   : > { %p722_p8 = pnand %p720_p7, %p1219_p12  ;;  %p728_p6 = scmp.lt.s32.totalorder %s726_s9, %s719_s11 }
  0x50   : > { %p723_p13 = pneg %p722_p8  ;;  %p729_p5 = por %p728_p6, %p727_p10 }
  0x52   : > { %p730_p11 = pnand %p729_p5, %p723_p13 }
  0x54   : > { %733 = shalt.err (!%p730_p11)
}
  0x55   : > { %s886_s13 = smov 64   ;;  %s887_s14 = smov 4  }
  0x56   : > { %604 = dma.hbm_to_vmem [thread:$0]  (!%p1238_p9), %s1046_s30, 256, %s1048_s29, %s1052_s12, %s886_s13, %s886_s13, %s887_s14  }
  0x57   : > { %s888_s22 = smov [#allocation6]   ;;  %s553_s8 = sshll.u32 %s878_s19, 4 }
  0x58   : > { %s202_s24 = sshll.u32 %s888_s22, 4  ;;  %s1084_s11 = scalar_lea.hbm %s1207_s3, %s553_s8  ;;  %s203_s24 = int_to_ptr.vmem [resolvable:$true] %s202_s24 }
  0x59   : > { %s734_s7 = scalar_lea.hbm %s1205_s1, 16  ;;  %p1239_p4 = pneg %p996_p2 }
  0x5a   : > { %p735_p10 = scmp.ne.s32.totalorder %s1205_s1, %s734_s7  ;;  %p741_p3 = scmp.lt.u32.totalorder %s734_s7, %s1205_s1 }
  0x5c   : > { %p737_p1 = pnand %p735_p10, %p1239_p4 }
  0x5e   : > { %p738_p0 = pneg %p737_p1 }
  0x60   : > { %p743_p7 = pnand %p741_p3, %p738_p0 }
  0x62   : > { %746 = shalt.err (!%p743_p7)
}
  0x63   : > { %s747_s0 = scalar_lea.vmem %s203_s24, 16  ;;  %p1240_p13 = pmov %p1239_p4 }
  0x64   : > { %p748_p8 = scmp.ne.s32.totalorder %s203_s24, %s747_s0  ;;  %s754_s2 = scalar_lea.vmem %s203_s24, 32 }
  0x65   : > { %p755_p11 = scmp.lt.s32.totalorder %s203_s24, %s203_s24  ;;  %p756_p12 = scmp.lt.s32.totalorder %s754_s2, %s747_s0 }
  0x66   : > { %p750_p6 = pnand %p748_p8, %p1240_p13 }
  0x67   : > { %p757_p9 = por %p756_p12, %p755_p11 }
  0x68   : > { %p751_p5 = pneg %p750_p6 }
  0x6a   : > { %p758_p4 = pnand %p757_p9, %p751_p5 }
  0x6c   : > { %761 = shalt.err (!%p758_p4)
}
  0x6d   : > { %600 = dma.hbm_to_vmem [thread:$0]  (!%p996_p2), %s1205_s1, 16, %s203_s24, [#allocation7]  }
  0x6e   : > { %s1241_s7 = sand.u32 1, %s870_s17   ;;  %s762_s22 = scalar_lea.hbm %s1084_s11, 16 }
  0x6f   : > { %s238_s13 = scalar_lea.vmem [#allocation9], %s1241_s7  ;;  %p763_p12 = scmp.ne.s32.totalorder %s1084_s11, %s762_s22 }
  0x70   : > { %s246_s14 = sshll.u32 %s238_s13, 4  ;;  %p1242_p9 = scmp.ne.s32.totalorder %s1229_s5, 0  ;;  %s247_s14 = int_to_ptr.vmem [resolvable:$true] %s246_s14 }
  0x71   : > { %s767_s23 = scalar_lea.hbm %s1207_s3, 32  ;;  %p768_p3 = scmp.lt.u32.totalorder %s1084_s11, %s1207_s3 }
  0x72   : > { %p1243_p10 = pneg %p1242_p9  ;;  %p769_p7 = scmp.lt.u32.totalorder %s767_s23, %s762_s22 }
  0x73   : > { %p771_p8 = scmp.lt.u32.totalorder %s762_s22, %s1084_s11 }
  0x74   : > { %p765_p1 = pnand %p763_p12, %p1243_p10  ;;  %p770_p2 = por %p769_p7, %p768_p3 }
  0x76   : > { %p766_p0 = pneg %p765_p1  ;;  %p772_p13 = por %p771_p8, %p770_p2 }
  0x78   : > { %p773_p6 = pnand %p772_p13, %p766_p0 }
  0x7a   : > { %776 = shalt.err (!%p773_p6)
}
  0x7b   : > { %s777_s24 = scalar_lea.vmem %s247_s14, 16  ;;  %p1244_p11 = pmov %p1243_p10 }
  0x7c   : > { %p778_p5 = scmp.ne.s32.totalorder %s247_s14, %s777_s24  ;;  %s889_s30 = smov [#allocation9]  }
  0x7d   : > { %s782_s0 = sshll.u32 %s889_s30, 4  ;;  %s783_s0 = int_to_ptr.vmem [resolvable:$false] %s782_s0 }
  0x7e   : > { %p780_p4 = pnand %p778_p5, %p1244_p11  ;;  %s784_s2 = scalar_lea.vmem %s783_s0, 32 }
  0x7f   : > { %p785_p10 = scmp.lt.s32.totalorder %s247_s14, %s783_s0  ;;  %p786_p1 = scmp.lt.s32.totalorder %s784_s2, %s777_s24 }
  0x80   : > { %p781_p12 = pneg %p780_p4 }
  0x81   : > { %p787_p3 = por %p786_p1, %p785_p10 }
  0x83   : > { %p788_p7 = pnand %p787_p3, %p781_p12 }
  0x85   : > { %791 = shalt.err (!%p788_p7)
}
  0x86   : > { %607 = dma.hbm_to_vmem [thread:$0]  (!%p1242_p9), %s1084_s11, 16, %s247_s14, %s1052_s12  }
  0x87   : > { %p1245_p0 = scmp.ne.s32.totalorder %s1228_s28, 0 }
  0x88   : > { %p1246_p2 = scmp.eq.s32.totalorder (!%p1245_p0), %s949_s21, 0 }
  0x89   : > { %255 = sbr.rel (%p1245_p0) target bundleno = 558 (0x22e), region = 36 }
  0x90   : > { %845 = dma.done.wait (%p1246_p2), [#allocation4], 128   ;;  %p1247_p8 = pmov %p1246_p2 }
  0x91   : > { %p1248_p13 = pmov %p1246_p2 }
  0x92   : > { %847 = vsyncadd (%p1247_p8), [#allocation4], 4294967168 }
  0x93   : > { %849 = dma.done.wait (%p1248_p13), [#allocation7], 16   ;;  %p1249_p6 = pmov %p1246_p2 }
  0x94   : > { %s265_s5 = sand.u32 1, %s949_s21   ;;  %s1140_s12 = sand.u32 1, %s866_s16  }
  0x95   : > { %851 = vsyncadd (%p1249_p6), [#allocation7], 4294967280  ;;  %s557_s28 = sshll.u32 %s1140_s12, 4  ;;  %s266_s11 = scalar_lea.sflag [#allocation4], %s265_s5 }
  0x96   : > { %s269_s20 = scalar_lea.vmem [#allocation8], %s557_s28  ;;  %p1250_p9 = scmp.ne.s32.totalorder %s1225_s25, 0 }
  0x98   : > { %853 = dma.done.wait (%p1250_p9), %s266_s11, 272  }
  0x99   : > { %855 = vsyncadd (%p1250_p9), %s266_s11, 4294967024  ;;  %v311_v0 = vld [vmem:[#allocation3] sm:$0xff]  ;;  %vm313_vm0 = vcmask 261120   ;;  %v890_v4 = vmov 0.0   ;;  %vm891_vm1 = vmmov 0   ;;  %vm331_vm2 = vcmask 257024  }
  0x9a   : > { %v312_v1 = vmul.f32 %v311_v0, %v311_v0  ;;  %v672_v3 = vld [vmem:[%s269_s20] sm:$0xff]   ;;  %572 = vmatprep.subr.bf16.mxu0 %v890_v4  ;;  %v673_v5 = vld [vmem:[%s269_s20 + $0x8] sm:$0xff]   ;;  %576 = vmatprep.mubr.msk.bf16.mxu0 %vm891_vm1, %v890_v4  ;;  %s558_s21 = sshll.u32 %s1140_s12, 2  ;;  %s277_s25 = scalar_lea.vmem [#allocation9], %s1140_s12  ;;  %vm402_vm3 = vcmask 519168  }
  0x9b   : > { %573 = vmatpush3.bf16.msra.mxu0 %v672_v3  ;;  %v559_v10 = vld [vmem:[#allocation6] ss:$0 sm:$0xff]  ;;  %v560_v15 = vld [vmem:[%s277_s25] ss:$0 sm:$0xff]  ;;  %s565_s10 = sshll.u32 %s874_s18, 6  ;;  %s305_s7 = scalar_lea.vmem [#allocation10], %s558_s21 }
  0x9c   : > { %v314_v2 = vsel %vm313_vm0, %v312_v1, 0.0  ;;  %574 = vmatprep.subr.bf16.mxu0 %v890_v4  ;;  %s420_s13 = sshll.u32 %s305_s7, 4  ;;  %s1155_s6 = scalar_lea.hbm %s1208_s4, %s565_s10  ;;  %s1157_s13 = int_to_ptr.vmem [resolvable:$true] %s420_s13 }
  0x9d   : > { %315 = vadd.xlane.f32.xlu0 %v314_v2  ;;  %s405_s18 = scalar_lea.sflag [#allocation5], %s1140_s12  ;;  %s792_s8 = scalar_lea.vmem %s1157_s13, 64 }
  0x9e   : > { %p793_p5 = scmp.ne.s32.totalorder %s1157_s13, %s792_s8  ;;  %p1251_p11 = scmp.ne.s32.totalorder %s1226_s26, 0 }
  0x9f   : > { %575 = vmatpush3.bf16.msra.mxu0 %v673_v5  ;;  %s892_s23 = smov [#allocation10]  }
  0xa0   : > { %p794_p4 = pnand %p793_p5, %p1251_p11  ;;  %s796_s9 = sshll.u32 %s892_s23, 4  ;;  %s797_s9 = int_to_ptr.vmem [resolvable:$false] %s796_s9 }
  0xa1   : > { %s798_s29 = scalar_lea.vmem %s797_s9, 128  ;;  %p799_p10 = scmp.lt.s32.totalorder %s1157_s13, %s797_s9 }
  0xa2   : > { %p795_p12 = pneg %p794_p4  ;;  %p800_p1 = scmp.lt.s32.totalorder %s798_s29, %s792_s8 }
  0xa4   : > { %p801_p3 = por %p800_p1, %p799_p10 }
  0xa6   : > { %p802_p7 = pnand %p801_p3, %p795_p12 }
 0x12a   : > { %v316_v6 = vpop.xlane.xlu0 %315 }
 0x12b   : > { %v318_v7 = vmul.f32 0.03125, %v316_v6 }
 0x12d   : > { %v319_v8 = vadd.f32 1.1920929e-07, %v318_v7 }
 0x12f   : > { %674 = vrsqrt.f32 %v319_v8 }
 0x139   : > { %v675_v9 = vpop.eup %674 }
 0x13a   : > { %v321_v11 = vmul.f32 %v675_v9, %v311_v0 }
 0x13c   : > { %v329_v12 = vmul.f32 %v559_v10, %v321_v11 }
 0x13e   : > { %v330_v13 = vpack.c.bf16 %v329_v12, %v329_v12 }
 0x140   : > { %332 = vst.msk [vmem:[#allocation2] sm:$0xf] %vm331_vm2, %v330_v13 }
 0x147   : > { %v333_v14 = vld [vmem:[#allocation2] sm:$0xf] }
 0x148   : > { %577 = vmatmul.mubr.msk.bf16.vlgmr.msra.gmra.mrb[0].mxu0 %vm313_vm0, %v333_v14 }
 0x21b   : > { %v395_v16 = vpop.f32.mrb[0].mxu0 }
 0x21c   : > { %v396_v17 = vadd.f32 %v560_v15, %v395_v16  ;;  %v578_v18 = vpop.f32.mrb[1].mxu0 }
 0x21d   : > { %v398_v19 = vpop.f32.mrb[2].mxu0 }
 0x21e   : > { %v401_v20 = vpack.c.bf16 %v396_v17, %v396_v17  ;;  %v579_v21 = vpop.f32.mrb[3].mxu0 }
 0x220   : > { %403 = vst.msk [vmem:[%s305_s7] sm:$0xf] %vm402_vm3, %v401_v20 }
 0x221   : > { %805 = shalt.err (!%p802_p7)
}
 0x222   : > { %s806_s24 = scalar_lea.hbm %s1155_s6, 64  ;;  %s810_s2 = scalar_lea.hbm %s1208_s4, 128 }
 0x223   : > { %p807_p0 = scmp.ne.s32.totalorder %s1155_s6, %s806_s24  ;;  %p811_p13 = scmp.lt.u32.totalorder %s1155_s6, %s1208_s4 }
 0x224   : > { %p812_p6 = scmp.lt.u32.totalorder %s810_s2, %s806_s24  ;;  %p814_p5 = scmp.lt.u32.totalorder %s806_s24, %s1155_s6 }
 0x225   : > { %p808_p2 = pnand %p807_p0, %p1251_p11 }
 0x226   : > { %p813_p9 = por %p812_p6, %p811_p13 }
 0x227   : > { %p809_p8 = pneg %p808_p2 }
 0x228   : > { %p815_p4 = por %p814_p5, %p813_p9 }
 0x22a   : > { %p816_p12 = pnand %p815_p4, %p809_p8 }
 0x22c   : > { %819 = shalt.err (!%p816_p12)
}
 0x22d   : > { %592 = dma.vmem_to_hbm [thread:$0]  (%p1251_p11), %s1157_s13, 64, %s1155_s6, %s405_s18  }
 0x22e PF: > { %s1252_s28 = sld [smem:[#allocation15_spill]]  ;;  %s432_s11 = sand.u32 1, %s862_s15  }
 0x22f   : > { %p1253_p10 = scmp.ne.s32.totalorder %s1227_s27, 0  ;;  %s433_s20 = scalar_lea.sflag [#allocation5], %s432_s11 }
 0x234   : > { %p1254_p1 = scmp.ge.s32.totalorder %s1252_s28, 2 }
 0x236   : > { %p609_p3 = pnand %p1254_p1, %p1253_p10 }
 0x238   : > { %857 = dma.done.wait (!%p609_p3), %s433_s20, 64  }
 0x239   : > { %859 = vsyncadd (!%p609_p3), %s433_s20, 4294967232  ;;  %s19_s20 = sadd.s32 1, %s1252_s28   ;;  %s1255_s26 = sld [smem:[#allocation17_spill]] }
 0x23a   : > { %p16_p7 = scmp.ge.s32.totalorder %s19_s20, 4   ;;  %s1256_s21 = sld [smem:[#allocation16_spill]] }
 0x23b   : > { %s1257_s15 = smov %s866_s16  ;;  %s1258_s16 = smov %s870_s17 }
 0x23c   : > { %s1260_s18 = smov %s878_s19  ;;  %18 = sbr.rel (!%p16_p7) target bundleno = 9 (0x9), region = 104 }
 0x23f   : > { %s1259_s17 = smov %s1255_s26 }
 0x240   : > { %s1261_s19 = smov %s1256_s21 }
 0x243   :  { %438 = vsyncpa [#allocation4], 1 }
 0x244   :  { %440 = vsyncpa [#allocation4 + $0x1], 1 }
 0x245   :  { %441 = vsyncpa [#allocation7], 1 }
 0x246   :  { %442 = vsyncpa [#allocation5], 1 }
 0x247   :  { %444 = vsyncpa [#allocation5 + $0x1], 1 }

// kernel: forward.8
= control target key start
LH: loop header
LB: loop body
LE: loop exit
PB: predicated region body
PF: predicated region fallthrough
CT: control target
= control target key end

     0   :  { %s3159_s0 = inlined_call_operand.hbm [shape: bf16[2,1,4,8,8], index: 0, kind: input, shape index: {}]   ;;  %s3160_s1 = inlined_call_operand.hbm [shape: bf16[2,2,4,8,8], index: 1, kind: input, shape index: {}]   ;;  %s3161_s2 = inlined_call_operand.hbm [shape: bf16[2,2,4,8,8], index: 2, kind: input, shape index: {}]   ;;  %s3162_s3 = inlined_call_operand.hbm [shape: f32[8,8], index: 3, kind: input, shape index: {}]   ;;  %s3163_s4 = inlined_call_operand.hbm [shape: f32[8,8], index: 4, kind: input, shape index: {}]   ;;  %s3164_s5 = inlined_call_operand.hbm [shape: bf16[2,4,8,32], index: 5, kind: input, shape index: {}]   ;;  %s3165_s6 = inlined_call_operand.hbm [shape: f32[2,1,32], index: 6, kind: input, shape index: {}]   ;;  %s3166_s7 = inlined_call_operand.hbm [shape: f32[2,1,8,32], index: 7, kind: input, shape index: {}]   ;;  %s3167_s8 = inlined_call_operand.hbm [shape: f32[2,2,8,32], index: 8, kind: output, shape index: {}]  }
   0x1   :  { %3209 = sst [smem:[#allocation41_spill]] %s3160_s1 }
   0x2   :  { %3210 = sst [smem:[#allocation42_spill]] %s3162_s3 }
   0x3   :  { %3211 = sst [smem:[#allocation43_spill]] %s3164_s5 }
   0x4   :  { %3212 = sst [smem:[#allocation44_spill]] %s3166_s7 }
   0x5   :  { %3213 = sst [smem:[#allocation45_spill]] %s3167_s8 }
   0x6   :  { %13 = vsyncpa [#allocation6], 0 }
   0x7   :  { %15 = vsyncpa [#allocation6 + $0x1], 0 }
   0x8   :  { %16 = vsyncpa [#allocation9], 0 }
   0x9   :  { %18 = vsyncpa [#allocation9 + $0x1], 0 }
   0xa   :  { %19 = vsyncpa [#allocation12], 0 }
   0xb   :  { %20 = vsyncpa [#allocation15], 0 }
   0xc   :  { %22 = vsyncpa [#allocation15 + $0x1], 0 }
   0xd   :  { %23 = vsyncpa [#allocation18], 0 }
   0xe   :  { %25 = vsyncpa [#allocation18 + $0x1], 0 }
   0xf   :  { %26 = vsyncpa [#allocation7], 0 }
  0x10   :  { %28 = vsyncpa [#allocation7 + $0x1], 0  ;;  %s2461_s27 = smov 0   ;;  %s2463_s28 = smov 0  }
  0x11   :  { %s2465_s29 = smov 0   ;;  %s2467_s30 = smov 0  }
  0x12   :  { %s2469_s9 = smov 0   ;;  %s2471_s10 = smov 0  }
  0x13   :  { %s2473_s11 = smov 0   ;;  %s2475_s12 = smov 0  }
  0x14   :  { %s2477_s13 = smov 0   ;;  %s2479_s14 = smov 0  }
  0x15   :  { %s2481_s15 = smov 0  }
  0x16 LB: > { %3214 = sst [smem:[#allocation26_spill]] %s2357_s27  ;;  %s2515_s16 = sadd.s32 4294967295, %s2397_s15   ;;  %s2397_s15 = sphi %s2481_s15, %s34_s15   ;;  %s2393_s14 = sphi %s2479_s14, %s3295_s14   ;;  %s2389_s13 = sphi %s2477_s13, %s3287_s13   ;;  %s2385_s12 = sphi %s2475_s12, %s3294_s12   ;;  %s2381_s11 = sphi %s2473_s11, %s3293_s11   ;;  %s2377_s10 = sphi %s2471_s10, %s3292_s10   ;;  %s2373_s9 = sphi %s2469_s9, %s3291_s9   ;;  %s2369_s30 = sphi %s2467_s30, %s3284_s30   ;;  %s2365_s29 = sphi %s2465_s29, %s3290_s29   ;;  %s2361_s28 = sphi %s2463_s28, %s3289_s28   ;;  %s2357_s27 = sphi %s2461_s27, %s3283_s27  }
  0x17   : > { %3215 = sst [smem:[#allocation27_spill]] %s2361_s28  ;;  %s1669_s17 = sadd.s32 4294967294, %s2397_s15  }
  0x18   : > { %3216 = sst [smem:[#allocation28_spill]] %s2373_s9  ;;  %p67_p0 = scmp.ne.s32.totalorder %s2377_s10, %s2373_s9 }
  0x19   : > { %3217 = sst [smem:[#allocation29_spill]] %s2381_s11  ;;  %p3172_p1 = scmp.eq.s32.totalorder %s2397_s15, 0 }
  0x1a   : > { %3218 = sst [smem:[#allocation30_spill]] %s2385_s12  ;;  %p73_p2 = scmp.ne.s32.totalorder %s2373_s9, %s2369_s30 }
  0x1b   : > { %3219 = sst [smem:[#allocation31_spill]] %s2389_s13  ;;  %p3171_p3 = scmp.eq.s32.totalorder %s2515_s16, 0 }
  0x1c   : > { %3220 = sst [smem:[#allocation32_spill]] %s2515_s16  ;;  %p2525_p4 = por %p3172_p1, %p67_p0 }
  0x1d   : > { %p103_p5 = scmp.ne.s32.totalorder %s2361_s28, %s2357_s27  ;;  %p2533_p6 = por %p3171_p3, %p73_p2 }
  0x1e   : > { %s3221_s18 = scalar_select %p2525_p4, 1, 0 }
  0x1f   : > { %s3222_s19 = scalar_select %p2533_p6, 1, 0 }
  0x20   : > { %p2540_p8 = por %p103_p5, %p3171_p3  ;;  %p295_p9 = scmp.eq.s32.totalorder %s1669_s17, 3 }
  0x21   : > { %3223 = sst [smem:[#allocation33_spill]] %s3222_s19  ;;  %p1670_p10 = scmp.ge.s32.totalorder %s2397_s15, 1 }
  0x22   : > { %s3224_s20 = scalar_select %p2540_p8, 1, 0 }
  0x23   : > { %p302_p11 = scmp.lt.s32.totalorder %s2397_s15, 5  ;;  %p2546_p12 = por %p295_p9, %p103_p5 }
  0x24   : > { %3225 = sst [smem:[#allocation34_spill]] %s3224_s20  ;;  %s2399_s23 = smov [#allocation11]  }
  0x25   : > { %s3226_s21 = scalar_select %p2546_p12, 1, 0 }
  0x26   : > { %p2550_p13 = pnand %p1670_p10, %p302_p11  ;;  %s317_s24 = sshll.u32 %s2399_s23, 4  ;;  %s318_s24 = int_to_ptr.vmem [resolvable:$true] %s317_s24 }
  0x27   : > { %3227 = sst [smem:[#allocation35_spill]] %s3226_s21 }
  0x28   : > { %s3228_s22 = scalar_select %p2550_p13, 1, 0 }
  0x29   : > { %p1863_p0 = pneg %p2550_p13  ;;  %s3231_s3 = sld [smem:[#allocation42_spill]] }
  0x2a   : > { %3229 = sst [smem:[#allocation36_spill]] %s3228_s22 }
  0x2b   : > { %p2558_p2 = pnand %p1863_p0, %p3171_p3 }
  0x2d   : > { %s3230_s25 = scalar_select %p2558_p2, 1, 0 }
  0x2e   : > { %p3190_p9 = pneg %p2558_p2 }
  0x2f   : > { %s2023_s17 = scalar_lea.hbm %s3231_s3, 128 }
  0x30   : > { %p2024_p5 = scmp.ne.s32.totalorder %s3231_s3, %s2023_s17  ;;  %p2030_p0 = scmp.lt.u32.totalorder %s2023_s17, %s3231_s3 }
  0x32   : > { %p2026_p10 = pnand %p3190_p9, %p2024_p5 }
  0x34   : > { %p2027_p11 = pneg %p2026_p10 }
  0x36   : > { %p2032_p3 = pnand %p2030_p0, %p2027_p11 }
  0x38   : > { %2035 = shalt.err (!%p2032_p3)
}
  0x39   : > { %s2036_s26 = scalar_lea.vmem %s318_s24, 128  ;;  %p2044_p8 = scmp.lt.s32.totalorder %s318_s24, %s318_s24 }
  0x3a   : > { %p2037_p7 = scmp.ne.s32.totalorder %s318_s24, %s2036_s26  ;;  %p2045_p6 = scmp.lt.s32.totalorder %s2036_s26, %s2036_s26 }
  0x3c   : > { %p2039_p1 = pnand %p2037_p7, %p3190_p9  ;;  %p2046_p13 = por %p2045_p6, %p2044_p8 }
  0x3e   : > { %p2040_p12 = pneg %p2039_p1 }
  0x40   : > { %p2047_p4 = pnand %p2046_p13, %p2040_p12 }
  0x42   : > { %2050 = shalt.err (!%p2047_p4)
}
  0x43   : > { %1866 = dma.hbm_to_vmem [thread:$0]  (!%p2558_p2), %s3231_s3, 128, %s318_s24, [#allocation12]  }
  0x44   : > { %s49_s8 = sadd.s32 1, %s2389_s13  ;;  %s53_s30 = sadd.s32 1, %s2393_s14 }
  0x45   : > { %p51_p1 = scmp.ge.s32.totalorder %s49_s8, 2  ;;  %s60_s17 = sadd.s32 1, %s2377_s10 }
  0x46   : > { %s90_s23 = sadd.s32 1, %s2365_s29  ;;  %p97_p3 = scmp.ne.s32.totalorder %s2365_s29, %s2361_s28 }
  0x47   : > { %s3297_s8 = smov (%p51_p1, %s49_s8), 0  ;;  %s3299_s30 = smov (!%p51_p1, %s53_s30), %s2393_s14 }
  0x48   : > { %3232 = sst [smem:[#allocation37_spill]] %s3297_s8  ;;  %s84_s26 = ssub.s32 %s2389_s13, %s3297_s8 }
  0x49   : > { %p3233_p4 = scmp.eq.s32.totalorder %s2397_s15, 0  ;;  %p55_p7 = scmp.ge.s32.totalorder %s3299_s30, 2 }
  0x4a   : > { %p3235_p8 = scmp.eq.s32.totalorder %s2515_s16, 3  ;;  %p3191_p13 = scmp.lt.s32.totalorder %s2397_s15, 4 }
  0x4b   : > { %p2597_p6 = por %p97_p3, %p3233_p4  ;;  %s3301_s30 = smov (%p55_p7, %s3299_s30), 0 }
  0x4c   : > { %p2603_p12 = por %p3235_p8, %p97_p3  ;;  %3238 = sst [smem:[#allocation39_spill]] %s3301_s30 }
  0x4d   : > { %s57_s3 = ssub.s32 %s2393_s14, %s3301_s30  ;;  %s364_s11 = sand.u32 1, %s2365_s29  }
  0x4e   : > { %s3236_s27 = scalar_select %p2603_p12, 1, 0 }
  0x4f   : > { %p58_p5 = scmp.eq.s32.totalorder %s57_s3, 0  ;;  %s85_s8 = sor.u32 %s84_s26, %s57_s3 }
  0x50   : > { %3237 = sst [smem:[#allocation38_spill]] %s3236_s27  ;;  %p88_p10 = scmp.eq.s32.totalorder %s85_s8, 0 }
  0x51   : > { %s2615_s12 = scalar_select %p58_p5, %s2377_s10, %s60_s17  }
  0x52   : > { %s2618_s20 = scalar_select %p88_p10, %s2365_s29, %s90_s23  }
  0x53   : > { %3239 = sst [smem:[#allocation40_spill]] %s2615_s12  ;;  %s1677_s28 = sshll.u32 %s364_s11, 4 }
  0x54   : > { %s1678_s16 = sshll.u32 %s2389_s13, 2  ;;  %s1679_s27 = sshll.u32 %s2393_s14, 3 }
  0x55   : > { %s373_s19 = sadd.s32 %s1679_s27, %s1678_s16  ;;  %s366_s9 = scalar_lea.vmem [#allocation8], %s1677_s28 }
  0x56   : > { %s376_s22 = sshll.u32 %s366_s9, 4  ;;  %s1680_s7 = sshll.u32 %s373_s19, 6  ;;  %s2622_s22 = int_to_ptr.vmem [resolvable:$true] %s376_s22 }
  0x57   : > { %s3240_s1 = sld [smem:[#allocation41_spill]]  ;;  %p2633_p11 = pnand %p3191_p13, %p2597_p6 }
  0x58   : > { %s2640_s19 = scalar_lea.hbm %s3161_s2, %s1680_s7  ;;  %s390_s8 = scalar_lea.vmem [#allocation10], %s1677_s28 }
  0x59   : > { %s3241_s11 = scalar_select %p2633_p11, 1, 0 }
  0x5a   : > { %s2642_s30 = sshll.u32 %s390_s8, 4  ;;  %s3242_s17 = sand.u32 1, %s2397_s15   ;;  %s2678_s30 = int_to_ptr.vmem [resolvable:$true] %s2642_s30 }
  0x5b   : > { %s2646_s23 = scalar_lea.sflag [#allocation9], %s3242_s17  ;;  %p3199_p1 = pneg %p2633_p11 }
  0x5d   : > { %s2627_s3 = scalar_lea.hbm %s3240_s1, %s1680_s7  ;;  %s2056_s21 = scalar_lea.hbm %s3240_s1, 1024 }
  0x5e   : > { %s2051_s26 = scalar_lea.hbm %s2627_s3, 256  ;;  %p2057_p6 = scmp.lt.u32.totalorder %s2627_s3, %s3240_s1 }
  0x5f   : > { %p2052_p0 = scmp.ne.s32.totalorder %s2627_s3, %s2051_s26  ;;  %p2058_p7 = scmp.lt.u32.totalorder %s2056_s21, %s2051_s26 }
  0x60   : > { %p2060_p5 = scmp.lt.u32.totalorder %s2051_s26, %s2627_s3 }
  0x61   : > { %p2054_p3 = pnand %p3199_p1, %p2052_p0  ;;  %p2059_p8 = por %p2058_p7, %p2057_p6 }
  0x63   : > { %p2055_p4 = pneg %p2054_p3  ;;  %p2061_p10 = por %p2060_p5, %p2059_p8 }
  0x65   : > { %p2062_p9 = pnand %p2061_p10, %p2055_p4 }
  0x67   : > { %2065 = shalt.err (!%p2062_p9)
}
  0x68   : > { %s2066_s28 = scalar_lea.vmem %s2622_s22, 256  ;;  %s2400_s9 = smov [#allocation8]  }
  0x69   : > { %p2067_p0 = scmp.ne.s32.totalorder %s2622_s22, %s2066_s28  ;;  %s2071_s8 = sshll.u32 %s2400_s9, 4  ;;  %s2072_s8 = int_to_ptr.vmem [resolvable:$false] %s2071_s8 }
  0x6a   : > { %s2073_s17 = scalar_lea.vmem %s2072_s8, 512  ;;  %p2074_p12 = scmp.lt.s32.totalorder %s2622_s22, %s2072_s8 }
  0x6b   : > { %p2069_p3 = pnand %p2067_p0, %p3199_p1  ;;  %p2075_p6 = scmp.lt.s32.totalorder %s2073_s17, %s2066_s28 }
  0x6d   : > { %p2070_p13 = pneg %p2069_p3  ;;  %p2076_p7 = por %p2075_p6, %p2074_p12 }
  0x6f   : > { %p2077_p8 = pnand %p2076_p7, %p2070_p13 }
  0x71   : > { %2080 = shalt.err (!%p2077_p8)
}
  0x72   : > { %s3193_s26 = smov 64   ;;  %s3197_s24 = smov 4  }
  0x73   : > { %1876 = dma.hbm_to_vmem [thread:$0]  (!%p2633_p11), %s2627_s3, 256, %s2622_s22, %s2646_s23, %s3193_s26, %s3193_s26, %s3197_s24  }
  0x74   : > { %s2681_s27 = sand.u32 1, %s2377_s10   ;;  %s3195_s7 = sshll.u32 %s2393_s14, 8 }
  0x75   : > { %s3196_s21 = sshll.u32 %s2681_s27, 4  ;;  %p3243_p9 = scmp.ne.s32.totalorder %s3221_s18, 0 }
  0x76   : > { %p3244_p12 = scmp.lt.s32.totalorder %s2397_s15, 4  ;;  %s3246_s5 = sld [smem:[#allocation43_spill]] }
  0x77   : > { %s414_s3 = scalar_lea.vmem [#allocation14], %s3196_s21  ;;  %s3247_s18 = sand.u32 1, %s2397_s15  }
  0x78   : > { %p2689_p13 = pnand %p3244_p12, %p3243_p9  ;;  %s421_s8 = sshll.u32 %s414_s3, 4  ;;  %s2702_s8 = int_to_ptr.vmem [resolvable:$true] %s421_s8 }
  0x79   : > { %s2706_s17 = scalar_lea.sflag [#allocation15], %s3247_s18 }
  0x7a   : > { %s3245_s16 = scalar_select %p2689_p13, 1, 0 }
  0x7b   : > { %p2712_p5 = pneg %p2689_p13 }
  0x7c   : > { %s2698_s22 = scalar_lea.hbm %s3246_s5, %s3195_s7  ;;  %s2086_s3 = scalar_lea.hbm %s3246_s5, 512 }
  0x7d   : > { %s2081_s26 = scalar_lea.hbm %s2698_s22, 256  ;;  %p2087_p3 = scmp.lt.u32.totalorder %s2698_s22, %s3246_s5 }
  0x7e   : > { %p2082_p4 = scmp.ne.s32.totalorder %s2698_s22, %s2081_s26  ;;  %p2088_p6 = scmp.lt.u32.totalorder %s2086_s3, %s2081_s26 }
  0x7f   : > { %s3248_s28 = scalar_select %p2712_p5, 1, 0 }
  0x80   : > { %p2084_p10 = pnand %p2712_p5, %p2082_p4  ;;  %p2089_p7 = por %p2088_p6, %p2087_p3 }
  0x81   : > { %p2090_p8 = scmp.lt.u32.totalorder %s2081_s26, %s2698_s22 }
  0x82   : > { %p2085_p0 = pneg %p2084_p10 }
  0x83   : > { %p2091_p9 = por %p2090_p8, %p2089_p7 }
  0x85   : > { %p2092_p12 = pnand %p2091_p9, %p2085_p0 }
  0x87   : > { %2095 = shalt.err (!%p2092_p12)
}
  0x88   : > { %s2096_s18 = scalar_lea.vmem %s2702_s8, 256  ;;  %s2403_s7 = smov [#allocation14]  }
  0x89   : > { %p2097_p4 = scmp.ne.s32.totalorder %s2702_s8, %s2096_s18  ;;  %s2101_s9 = sshll.u32 %s2403_s7, 4  ;;  %s2102_s9 = int_to_ptr.vmem [resolvable:$false] %s2101_s9 }
  0x8a   : > { %s2103_s24 = scalar_lea.vmem %s2102_s9, 512  ;;  %p2104_p11 = scmp.lt.s32.totalorder %s2702_s8, %s2102_s9 }
  0x8b   : > { %p2099_p10 = pnand %p2097_p4, %p2712_p5  ;;  %p2105_p2 = scmp.lt.s32.totalorder %s2103_s24, %s2096_s18 }
  0x8d   : > { %p2100_p1 = pneg %p2099_p10  ;;  %p2106_p3 = por %p2105_p2, %p2104_p11 }
  0x8f   : > { %p2107_p6 = pnand %p2106_p3, %p2100_p1 }
  0x91   : > { %2110 = shalt.err (!%p2107_p6)
}
  0x92   : > { %s3249_s26 = smov 4   ;;  %s3250_s21 = smov 64  }
  0x93   : > { %1882 = dma.hbm_to_vmem [thread:$0]  (!%p2689_p13), %s2698_s22, 256, %s2702_s8, %s2706_s17, %s3250_s21, %s3250_s21, %s3249_s26  }
  0x94   : > { %s2404_s3 = smov [#allocation13]   ;;  %s2111_s18 = scalar_lea.hbm %s3163_s4, 128 }
  0x95   : > { %s330_s1 = sshll.u32 %s2404_s3, 4  ;;  %p2112_p2 = scmp.ne.s32.totalorder %s3163_s4, %s2111_s18  ;;  %s331_s1 = int_to_ptr.vmem [resolvable:$true] %s330_s1 }
  0x96   : > { %p3251_p11 = scmp.ne.s32.totalorder %s3230_s25, 0  ;;  %p2118_p8 = scmp.lt.u32.totalorder %s2111_s18, %s3163_s4 }
  0x98   : > { %p3252_p1 = pneg %p3251_p11 }
  0x9a   : > { %p2114_p0 = pnand %p2112_p2, %p3252_p1 }
  0x9c   : > { %p2115_p7 = pneg %p2114_p0 }
  0x9e   : > { %p2120_p9 = pnand %p2118_p8, %p2115_p7 }
  0xa0   : > { %2123 = shalt.err (!%p2120_p9)
}
  0xa1   : > { %s2124_s22 = scalar_lea.vmem %s331_s1, 128  ;;  %p3253_p4 = pmov %p3252_p1 }
  0xa2   : > { %p2125_p12 = scmp.ne.s32.totalorder %s331_s1, %s2124_s22  ;;  %p2132_p6 = scmp.lt.s32.totalorder %s331_s1, %s331_s1 }
  0xa3   : > { %p2133_p13 = scmp.lt.s32.totalorder %s2124_s22, %s2124_s22 }
  0xa4   : > { %p2127_p10 = pnand %p2125_p12, %p3253_p4 }
  0xa5   : > { %p2134_p5 = por %p2133_p13, %p2132_p6 }
  0xa6   : > { %p2128_p3 = pneg %p2127_p10 }
  0xa8   : > { %p2135_p1 = pnand %p2134_p5, %p2128_p3 }
  0xaa   : > { %2138 = shalt.err (!%p2135_p1)
}
  0xab   : > { %1869 = dma.hbm_to_vmem [thread:$0]  (!%p3251_p11), %s3163_s4, 128, %s331_s1, [#allocation12]  }
  0xac   : > { %s3254_s12 = sshll.u32 %s2393_s14, 8  ;;  %s3255_s18 = sshll.u32 %s2681_s27, 4 }
  0xad   : > { %s2764_s7 = scalar_lea.hbm %s3159_s0, %s3254_s12  ;;  %s345_s25 = scalar_lea.vmem [#allocation5], %s3255_s18 }
  0xae   : > { %s352_s9 = sshll.u32 %s345_s25, 4  ;;  %s342_s24 = scalar_lea.sflag [#allocation6], %s2681_s27  ;;  %s2768_s9 = int_to_ptr.vmem [resolvable:$true] %s352_s9 }
  0xaf   : > { %s2139_s22 = scalar_lea.hbm %s2764_s7, 256  ;;  %p3256_p5 = scmp.ne.s32.totalorder %s3248_s28, 0 }
  0xb0   : > { %p2140_p13 = scmp.ne.s32.totalorder %s2764_s7, %s2139_s22  ;;  %s2144_s8 = scalar_lea.hbm %s3159_s0, 512 }
  0xb1   : > { %p2145_p0 = scmp.lt.u32.totalorder %s2764_s7, %s3159_s0  ;;  %p2146_p7 = scmp.lt.u32.totalorder %s2144_s8, %s2139_s22 }
  0xb2   : > { %p2142_p2 = pnand %p2140_p13, %p3256_p5  ;;  %p2148_p9 = scmp.lt.u32.totalorder %s2139_s22, %s2764_s7 }
  0xb3   : > { %p2147_p8 = por %p2146_p7, %p2145_p0 }
  0xb4   : > { %p2143_p11 = pneg %p2142_p2 }
  0xb5   : > { %p2149_p12 = por %p2148_p9, %p2147_p8 }
  0xb7   : > { %p2150_p4 = pnand %p2149_p12, %p2143_p11 }
  0xb9   : > { %2153 = shalt.err (!%p2150_p4)
}
  0xba   : > { %s2154_s3 = scalar_lea.vmem %s2768_s9, 256  ;;  %s2405_s18 = smov [#allocation5]  }
  0xbb   : > { %p2155_p10 = scmp.ne.s32.totalorder %s2768_s9, %s2154_s3  ;;  %s2159_s25 = sshll.u32 %s2405_s18, 4  ;;  %s2160_s25 = int_to_ptr.vmem [resolvable:$false] %s2159_s25 }
  0xbc   : > { %s2161_s1 = scalar_lea.vmem %s2160_s25, 512  ;;  %p2162_p1 = scmp.lt.s32.totalorder %s2768_s9, %s2160_s25 }
  0xbd   : > { %p2157_p3 = pnand %p2155_p10, %p3256_p5  ;;  %p2163_p13 = scmp.lt.s32.totalorder %s2161_s1, %s2154_s3 }
  0xbf   : > { %p2158_p6 = pneg %p2157_p3  ;;  %p2164_p2 = por %p2163_p13, %p2162_p1 }
  0xc1   : > { %p2165_p0 = pnand %p2164_p2, %p2158_p6 }
  0xc3   : > { %2168 = shalt.err (!%p2165_p0)
}
  0xc4   : > { %p3257_p11 = scmp.ne.s32.totalorder %s3245_s16, 0  ;;  %s2169_s22 = scalar_lea.hbm %s2640_s19, 256 }
  0xc5   : > { %p2170_p7 = scmp.ne.s32.totalorder %s2640_s19, %s2169_s22  ;;  %p3258_p8 = scmp.ne.s32.totalorder %s3241_s11, 0 }
  0xc6   : > { %1873 = dma.hbm_to_vmem [thread:$0]  (!%p3257_p11), %s2764_s7, 256, %s2768_s9, %s342_s24, %s3250_s21, %s3250_s21, %s3249_s26  }
  0xc7   : > { %p3259_p9 = pneg %p3258_p8  ;;  %s2174_s12 = scalar_lea.hbm %s3161_s2, 1024 }
  0xc8   : > { %p2175_p10 = scmp.lt.u32.totalorder %s2640_s19, %s3161_s2  ;;  %p2176_p3 = scmp.lt.u32.totalorder %s2174_s12, %s2169_s22 }
  0xc9   : > { %p2172_p12 = pnand %p2170_p7, %p3259_p9  ;;  %p2178_p1 = scmp.lt.u32.totalorder %s2169_s22, %s2640_s19 }
  0xca   : > { %p2177_p6 = por %p2176_p3, %p2175_p10 }
  0xcb   : > { %p2173_p4 = pneg %p2172_p12 }
  0xcc   : > { %p2179_p13 = por %p2178_p1, %p2177_p6 }
  0xce   : > { %p2180_p2 = pnand %p2179_p13, %p2173_p4 }
  0xd0   : > { %2183 = shalt.err (!%p2180_p2)
}
  0xd1   : > { %s2184_s7 = scalar_lea.vmem %s2678_s30, 256  ;;  %p3260_p7 = pmov %p3259_p9 }
  0xd2   : > { %p2185_p0 = scmp.ne.s32.totalorder %s2678_s30, %s2184_s7  ;;  %s2406_s9 = smov [#allocation10]  }
  0xd3   : > { %s2189_s24 = sshll.u32 %s2406_s9, 4  ;;  %s2190_s24 = int_to_ptr.vmem [resolvable:$false] %s2189_s24 }
  0xd4   : > { %p2187_p9 = pnand %p2185_p0, %p3260_p7  ;;  %s2191_s18 = scalar_lea.vmem %s2190_s24, 512 }
  0xd5   : > { %p2192_p11 = scmp.lt.s32.totalorder %s2678_s30, %s2190_s24  ;;  %p2193_p10 = scmp.lt.s32.totalorder %s2191_s18, %s2184_s7 }
  0xd6   : > { %p2188_p12 = pneg %p2187_p9 }
  0xd7   : > { %p2194_p3 = por %p2193_p10, %p2192_p11 }
  0xd9   : > { %p2195_p6 = pnand %p2194_p3, %p2188_p12 }
  0xdb   : > { %2198 = shalt.err (!%p2195_p6)
}
  0xdc   : > { %1879 = dma.hbm_to_vmem [thread:$0]  (!%p3258_p8), %s2640_s19, 256, %s2678_s30, %s2646_s23, %s3250_s21, %s3250_s21, %s3249_s26  }
  0xdd   : > { %s1688_s25 = sshll.u32 %s2393_s14, 4  ;;  %s434_s1 = scalar_lea.vmem [#allocation16], %s2681_s27 }
  0xde   : > { %s441_s22 = sshll.u32 %s434_s1, 4  ;;  %s439_s12 = scalar_lea.hbm %s3165_s6, %s1688_s25  ;;  %s442_s22 = int_to_ptr.vmem [resolvable:$true] %s441_s22 }
  0xdf   : > { %s2199_s13 = scalar_lea.hbm %s439_s12, 16  ;;  %s2204_s7 = scalar_lea.hbm %s3165_s6, 32 }
  0xe0   : > { %p2200_p11 = scmp.ne.s32.totalorder %s439_s12, %s2199_s13  ;;  %p2205_p8 = scmp.lt.u32.totalorder %s439_s12, %s3165_s6 }
  0xe1   : > { %p2206_p13 = scmp.lt.u32.totalorder %s2204_s7, %s2199_s13  ;;  %p2208_p0 = scmp.lt.u32.totalorder %s2199_s13, %s439_s12 }
  0xe2   : > { %p2202_p4 = pnand %p2200_p11, %p3256_p5 }
  0xe3   : > { %p2207_p2 = por %p2206_p13, %p2205_p8 }
  0xe4   : > { %p2203_p1 = pneg %p2202_p4 }
  0xe5   : > { %p2209_p7 = por %p2208_p0, %p2207_p2 }
  0xe7   : > { %p2210_p9 = pnand %p2209_p7, %p2203_p1 }
  0xe9   : > { %2213 = shalt.err (!%p2210_p9)
}
  0xea   : > { %s2214_s19 = scalar_lea.vmem %s442_s22, 16  ;;  %s2407_s30 = smov [#allocation16]  }
  0xeb   : > { %p2215_p12 = scmp.ne.s32.totalorder %s442_s22, %s2214_s19  ;;  %s2219_s23 = sshll.u32 %s2407_s30, 4  ;;  %s2220_s23 = int_to_ptr.vmem [resolvable:$false] %s2219_s23 }
  0xec   : > { %s2221_s26 = scalar_lea.vmem %s2220_s23, 32  ;;  %p2222_p6 = scmp.lt.s32.totalorder %s442_s22, %s2220_s23 }
  0xed   : > { %p2217_p10 = pnand %p2215_p12, %p3256_p5  ;;  %p2223_p11 = scmp.lt.s32.totalorder %s2221_s26, %s2214_s19 }
  0xef   : > { %p2218_p3 = pneg %p2217_p10  ;;  %p2224_p4 = por %p2223_p11, %p2222_p6 }
  0xf1   : > { %p2225_p8 = pnand %p2224_p4, %p2218_p3 }
  0xf3   : > { %2228 = shalt.err (!%p2225_p8)
}
  0xf4   : > { %p3261_p13 = scmp.ne.s32.totalorder %s3245_s16, 0  ;;  %s1689_s21 = sshll.u32 %s2681_s27, 3 }
  0xf5   : > { %s1690_s18 = sshll.u32 %s2393_s14, 7  ;;  %s3262_s5 = sld [smem:[#allocation44_spill]] }
  0xf6   : > { %1885 = dma.hbm_to_vmem [thread:$0]  (!%p3261_p13), %s439_s12, 16, %s442_s22, %s2706_s17  }
  0xf7   : > { %s452_s13 = scalar_lea.vmem [#allocation17], %s1689_s21  ;;  %s449_s3 = scalar_lea.sflag [#allocation18], %s2681_s27 }
  0xf8   : > { %s459_s11 = sshll.u32 %s452_s13, 4  ;;  %s460_s11 = int_to_ptr.vmem [resolvable:$true] %s459_s11 }
  0xfb   : > { %s2847_s8 = scalar_lea.hbm %s3262_s5, %s1690_s18  ;;  %s2234_s12 = scalar_lea.hbm %s3262_s5, 256 }
  0xfc   : > { %s2229_s7 = scalar_lea.hbm %s2847_s8, 128  ;;  %p2235_p7 = scmp.lt.u32.totalorder %s2847_s8, %s3262_s5 }
  0xfd   : > { %p2230_p1 = scmp.ne.s32.totalorder %s2847_s8, %s2229_s7  ;;  %p2236_p9 = scmp.lt.u32.totalorder %s2234_s12, %s2229_s7 }
  0xfe   : > { %p2238_p10 = scmp.lt.u32.totalorder %s2229_s7, %s2847_s8 }
  0xff   : > { %p2232_p2 = pnand %p2230_p1, %p3256_p5  ;;  %p2237_p12 = por %p2236_p9, %p2235_p7 }
 0x101   : > { %p2233_p0 = pneg %p2232_p2  ;;  %p2239_p3 = por %p2238_p10, %p2237_p12 }
 0x103   : > { %p2240_p6 = pnand %p2239_p3, %p2233_p0 }
 0x105   : > { %2243 = shalt.err (!%p2240_p6)
}
 0x106   : > { %s2244_s27 = scalar_lea.vmem %s460_s11, 128  ;;  %s2408_s19 = smov [#allocation17]  }
 0x107   : > { %p2245_p11 = scmp.ne.s32.totalorder %s460_s11, %s2244_s27  ;;  %s2249_s30 = sshll.u32 %s2408_s19, 4  ;;  %s2250_s30 = int_to_ptr.vmem [resolvable:$false] %s2249_s30 }
 0x108   : > { %s2251_s23 = scalar_lea.vmem %s2250_s30, 256  ;;  %p2252_p1 = scmp.lt.s32.totalorder %s460_s11, %s2250_s30 }
 0x109   : > { %p2247_p4 = pnand %p2245_p11, %p3256_p5  ;;  %p2253_p2 = scmp.lt.s32.totalorder %s2251_s23, %s2244_s27 }
 0x10b   : > { %p2248_p8 = pneg %p2247_p4  ;;  %p2254_p13 = por %p2253_p2, %p2252_p1 }
 0x10d   : > { %p2255_p7 = pnand %p2254_p13, %p2248_p8 }
 0x10f   : > { %2258 = shalt.err (!%p2255_p7)
}
 0x110   : > { %p3263_p9 = scmp.ne.s32.totalorder %s3245_s16, 0  ;;  %s3264_s26 = sld [smem:[#allocation36_spill]] }
 0x112   : > { %1888 = dma.hbm_to_vmem [thread:$0]  (!%p3263_p9), %s2847_s8, 128, %s460_s11, %s449_s3  }
 0x116   : > { %p3265_p0 = scmp.ne.s32.totalorder %s3264_s26, 0 }
 0x117   : > { %s3266_s21 = sld [smem:[#allocation28_spill]] (!%p3265_p0)  ;;  %s3267_s28 = sld [smem:[#allocation33_spill]] (!%p3265_p0) }
 0x118   : > { %468 = sbr.rel (%p3265_p0) target bundleno = 1508 (0x5e4), region = 52 }
 0x11d   : > { %s2870_s18 = sand.u32 (!%p3265_p0), 1, %s3266_s21   ;;  %p3268_p5 = scmp.ne.s32.totalorder (!%p3265_p0), %s3267_s28, 0 }
 0x11e   : > { %s1692_s25 = sshll.u32 (!%p3265_p0), %s2870_s18, 4  ;;  %s471_s1 = scalar_lea.sflag (!%p3265_p0), [#allocation6], %s2870_s18 }
 0x11f   : > { %s2874_s13 = scalar_lea.vmem [#allocation5], %s1692_s25 }
 0x120   : > { %2332 = dma.done.wait (%p3268_p5), %s471_s1, 256  }
 0x121   : > { %2334 = vsyncadd (%p3268_p5), %s471_s1, 4294967040  ;;  %s3269_s16 = sld [smem:[#allocation32_spill]]  ;;  %s3270_s8 = sld [smem:[#allocation27_spill]] }
 0x122   : > { %s3271_s11 = sld [smem:[#allocation34_spill]] }
 0x127   : > { %s479_s3 = sand.u32 1, %s3269_s16   ;;  %s2882_s7 = sand.u32 1, %s3270_s8  }
 0x128   : > { %s1693_s17 = sshll.u32 %s2882_s7, 4  ;;  %s480_s22 = scalar_lea.sflag [#allocation9], %s479_s3 }
 0x129   : > { %s2885_s12 = scalar_lea.vmem [#allocation8], %s1693_s17  ;;  %p3272_p13 = scmp.ne.s32.totalorder %s3271_s11, 0 }
 0x12b   : > { %2336 = dma.done.wait (%p3272_p13), %s480_s22, 512  }
 0x12c   : > { %2338 = vsyncadd (%p3272_p13), %s480_s22, 4294966784  ;;  %s2891_s9 = scalar_lea.vmem [#allocation10], %s1693_s17  ;;  %p3273_p12 = scmp.eq.s32.totalorder %s3269_s16, 0 }
 0x12e   : > { %2340 = dma.done.wait (%p3273_p12), [#allocation12], 256   ;;  %p3274_p10 = pmov %p3273_p12 }
 0x12f   : > { %s506_s24 = scalar_lea.sflag [#allocation15], %s479_s3  ;;  %s2897_s27 = scalar_lea.vmem [#allocation14], %s1692_s25 }
 0x130   : > { %2342 = vsyncadd (%p3274_p10), [#allocation12], 4294967040 }
 0x131   : > { %2344 = dma.done.wait (%p3268_p5), %s506_s24, 272  }
 0x132   : > { %2346 = vsyncadd (%p3268_p5), %s506_s24, 4294967024  ;;  %s1698_s19 = sshll.u32 %s2870_s18, 3  ;;  %s517_s30 = scalar_lea.vmem [#allocation16], %s2870_s18 }
 0x133   : > { %s523_s23 = scalar_lea.sflag [#allocation18], %s2870_s18  ;;  %s2906_s26 = scalar_lea.vmem [#allocation17], %s1698_s19 }
 0x134   : > { %2348 = dma.done.wait (%p3268_p5), %s523_s23, 128  }
 0x135   : > { %2350 = vsyncadd (%p3268_p5), %s523_s23, 4294967168  ;;  %vm597_vm0 = vcmask 64512   ;;  %v1724_v0 = vld [vmem:[%s2885_s12] sm:$0xff]   ;;  %v2409_v1 = vmov 0.0   ;;  %s2410_s21 = smov 124   ;;  %v1731_v4 = vld [vmem:[%s2885_s12 + $0x8] sm:$0xff]  }
 0x136   : > { %1756 = vmatprep.subr.bf16.mxu1 %v2409_v1  ;;  %598 = vst.msk [vmem:[#allocation4] sm:$0xff] %vm597_vm0, %v2409_v1  ;;  %599 = vst.msk [vmem:[#allocation4 + $0x8] sm:$0xff] %vm597_vm0, %v2409_v1  ;;  %1780 = vmatprep.subr.bf16.mxu0 %v2409_v1  ;;  %v1725_v2 = vunpack.c.l.bf16 %v1724_v0  ;;  %v1726_v3 = vunpack.c.h.bf16 %v1724_v0  ;;  %vm2411_vm1 = vmmov 0   ;;  %s2412_s28 = smov 4   ;;  %v1729_v5 = vunpack.c.l.bf16 %v1731_v4  ;;  %v618_v9 = vld [vmem:[#allocation11] sm:$0xff]  ;;  %v619_v10 = vld [vmem:[#allocation13] sm:$0xff] }
 0x137   : > { %600 = vst.msk [vmem:[#allocation4 + $0x10] sm:$0xff] %vm597_vm0, %v2409_v1  ;;  %601 = vst.msk [vmem:[#allocation4 + $0x18] sm:$0xff] %vm597_vm0, %v2409_v1  ;;  %1758 = vmatprep.mubr.msk.bf16.mxu1 %vm2411_vm1, %v2409_v1  ;;  %1782 = vmatprep.mubr.msk.bf16.mxu0 %vm2411_vm1, %v2409_v1  ;;  %v1730_v6 = vunpack.c.h.bf16 %v1731_v4  ;;  %vm652_vm2 = vcmask 31744   ;;  %v602_v31 = vld [vmem:[%s2874_s13] sm:$0xf]  ;;  %vm588_vm3 = vcmask 7168  }
 0x138   : > { %628 = vrot.lane.b32.xlu0 %v1725_v2, %s2410_s21  ;;  %630 = vrot.lane.b32.xlu1 %v1726_v3, %s2410_s21  ;;  %v620_v13 = vmul.f32 %v1725_v2, %v618_v9  ;;  %v621_v17 = vmul.f32 %v1726_v3, %v618_v9  ;;  %v622_v27 = vmul.f32 %v1729_v5, %v618_v9  ;;  %v603_v38 = vld [vmem:[%s2874_s13 + $0x4] sm:$0xf]  ;;  %v604_v42 = vld [vmem:[%s2874_s13 + $0x8] sm:$0xf]  ;;  %v2413_v45 = vmov -inf   ;;  %s3275_s25 = sld [smem:[#allocation30_spill]] }
 0x139   : > { %v623_v36 = vmul.f32 %v1730_v6, %v618_v9  ;;  %v605_v44 = vld [vmem:[%s2874_s13 + $0xc] sm:$0xf]  ;;  %589 = vst.msk [vmem:[#allocation2] sm:$0xff] %vm588_vm3, %v2413_v45  ;;  %590 = vst.msk [vmem:[#allocation2 + $0x8] sm:$0xff] %vm588_vm3, %v2413_v45  ;;  %v2414_v0 = vmov 0   ;;  %vm986_vm4 = vcmask 1043456  }
 0x13a   : > { %591 = vst.msk [vmem:[#allocation2 + $0x10] sm:$0xff] %vm588_vm3, %v2413_v45  ;;  %592 = vst.msk [vmem:[#allocation2 + $0x18] sm:$0xff] %vm588_vm3, %v2413_v45  ;;  %1997 = vset.pattern.permute.xlu1 %v2414_v0  ;;  %1998 = vset.pattern.permute.xlu0 %v2414_v0  ;;  %s3276_s1 = sld [smem:[#allocation29_spill]]  ;;  %s1699_s13 = sshll.u32 %s2882_s7, 3  ;;  %vm1427_vm5 = vcmask 261120  }
 0x13b   : > { %593 = vst.msk [vmem:[#allocation3] sm:$0xff] %vm588_vm3, %v2409_v1  ;;  %594 = vst.msk [vmem:[#allocation3 + $0x8] sm:$0xff] %vm588_vm3, %v2409_v1  ;;  %s3277_s11 = sld [smem:[#allocation38_spill]]  ;;  %s582_s17 = scalar_lea.vmem [#allocation19], %s1699_s13 }
 0x13c   : > { %640 = vrot.lane.b32.xlu0 %v1725_v2, %s2412_s28  ;;  %642 = vrot.lane.b32.xlu1 %v1726_v3, %s2412_s28  ;;  %595 = vst.msk [vmem:[#allocation3 + $0x10] sm:$0xff] %vm588_vm3, %v2409_v1  ;;  %596 = vst.msk [vmem:[#allocation3 + $0x18] sm:$0xff] %vm588_vm3, %v2409_v1  ;;  %s1445_s22 = sshll.u32 %s582_s17, 4  ;;  %s3278_s24 = sld [smem:[#allocation45_spill]]  ;;  %s3098_s22 = int_to_ptr.vmem [resolvable:$true] %s1445_s22 }
 0x13d   : > { %s1430_s18 = scalar_lea.sflag [#allocation7], %s2882_s7  ;;  %s2259_s19 = scalar_lea.vmem %s3098_s22, 128 }
 0x13e   : > { %s1717_s16 = sshll.u32 %s3275_s25, 1  ;;  %p2260_p3 = scmp.ne.s32.totalorder %s3098_s22, %s2259_s19 }
 0x140   : > { %644 = vrot.lane.b32.xlu1 %v1729_v5, %s2412_s28  ;;  %632 = vrot.lane.b32.xlu0 %v1729_v5, %s2410_s21  ;;  %s1441_s8 = sadd.s32 %s3276_s1, %s1717_s16 }
 0x141   : > { %s1718_s3 = sshll.u32 %s1441_s8, 7  ;;  %p3279_p6 = scmp.ne.s32.totalorder %s3277_s11, 0 }
 0x143   : > { %p2261_p11 = pnand %p2260_p3, %p3279_p6 }
 0x144   : > { %646 = vrot.lane.b32.xlu1 %v1730_v6, %s2412_s28  ;;  %634 = vrot.lane.b32.xlu0 %v1730_v6, %s2410_s21 }
 0x145   : > { %p2262_p4 = pneg %p2261_p11 }
 0x1aa   : > { %v629_v7 = vpop.permute.xlu0 %628  ;;  %v631_v8 = vpop.permute.xlu1 %630 }
 0x1ae   : > { %v641_v11 = vpop.permute.xlu0 %640  ;;  %v643_v12 = vpop.permute.xlu1 %642 }
 0x1af   : > { %v653_v14 = vsel %vm652_vm2, %v629_v7, %v641_v11  ;;  %v654_v15 = vsel %vm652_vm2, %v631_v8, %v643_v12  ;;  %v2981_v8 = vld [vmem:[#allocation2] sm:$0xff]  ;;  %v2991_v12 = vld [vmem:[#allocation2 + $0x8] sm:$0xff] }
 0x1b0   : > { %v657_v16 = vmul.f32 %v653_v14, %v619_v10  ;;  %v658_v18 = vmul.f32 %v654_v15, %v619_v10 }
 0x1b2   : > { %v661_v19 = vadd.f32 %v657_v16, %v620_v13  ;;  %v645_v20 = vpop.permute.xlu1 %644  ;;  %v633_v21 = vpop.permute.xlu0 %632  ;;  %v662_v22 = vadd.f32 %v658_v18, %v621_v17  ;;  %v3001_v16 = vld [vmem:[#allocation2 + $0x10] sm:$0xff] }
 0x1b3   : > { %v655_v24 = vsel %vm652_vm2, %v633_v21, %v645_v20  ;;  %v614_v17 = vld [vmem:[%s2891_s9] sm:$0xf] }
 0x1b4   : > { %v665_v23 = vpack.c.bf16 %v661_v19, %v661_v19  ;;  %v666_v26 = vpack.c.bf16 %v662_v22, %v662_v22  ;;  %v659_v28 = vmul.f32 %v655_v24, %v619_v10  ;;  %v988_v19 = vsel %vm986_vm4, %v614_v17, 0  ;;  %v3014_v22 = vld [vmem:[#allocation2 + $0x18] sm:$0xff] }
 0x1b5   : > { %1781 = vmatpush3.bf16.msra.mxu0 %v988_v19 }
 0x1b6   : > { %v674_v25 = vsel %vm597_vm0, %v665_v23, 0  ;;  %v647_v29 = vpop.permute.xlu1 %646  ;;  %v635_v30 = vpop.permute.xlu0 %634  ;;  %v663_v32 = vadd.f32 %v659_v28, %v622_v27  ;;  %v720_v33 = vsel %vm597_vm0, %v666_v26, 0  ;;  %1792 = vmatprep.subr.bf16.mxu0 %v2409_v1  ;;  %v615_v23 = vld [vmem:[%s2891_s9 + $0x4] sm:$0xf] }
 0x1b7   : > { %1757 = vmatpush3.bf16.xpose.msra.mxu1 %v674_v25  ;;  %v656_v34 = vsel %vm652_vm2, %v635_v30, %v647_v29  ;;  %v1034_v25 = vsel %vm986_vm4, %v615_v23, 0  ;;  %v951_v23 = vld [vmem:[#allocation4] sm:$0xff] }
 0x1b8   : > { %1762 = vmatprep.subr.bf16.mxu1 %v2409_v1  ;;  %v667_v35 = vpack.c.bf16 %v663_v32, %v663_v32  ;;  %v660_v37 = vmul.f32 %v656_v34, %v619_v10  ;;  %v616_v34 = vld [vmem:[%s2891_s9 + $0x8] sm:$0xf] }
 0x1ba   : > { %v664_v39 = vadd.f32 %v660_v37, %v623_v36  ;;  %v766_v40 = vsel %vm597_vm0, %v667_v35, 0 }
 0x1bc   : > { %v668_v41 = vpack.c.bf16 %v664_v39, %v664_v39  ;;  %v1080_v39 = vsel %vm986_vm4, %v616_v34, 0 }
 0x1be   : > { %1759 = vmatmul.mubr.msk.bf16.vlgmr.msra.gmra.mrb[0].mxu1 %vm597_vm0, %v602_v31  ;;  %v812_v43 = vsel %vm597_vm0, %v668_v41, 0 }
 0x1bf   : > { %1763 = vmatpush3.bf16.xpose.msra.mxu1 %v720_v33  ;;  %1764 = vmatprep.mubr.msk.bf16.mxu1 %vm2411_vm1, %v2409_v1 }
 0x1c0   : > { %1768 = vmatprep.subr.bf16.mxu1 %v2409_v1 }
 0x1c6   : > { %1765 = vmatmul.mubr.msk.bf16.vlgmr.msra.gmra.mrb[4].mxu1 %vm597_vm0, %v603_v38 }
 0x1c7   : > { %1769 = vmatpush3.bf16.xpose.msra.mxu1 %v766_v40  ;;  %1770 = vmatprep.mubr.msk.bf16.mxu1 %vm2411_vm1, %v2409_v1 }
 0x1c8   : > { %1774 = vmatprep.subr.bf16.mxu1 %v2409_v1 }
 0x1ce   : > { %1771 = vmatmul.mubr.msk.bf16.vlgmr.msra.gmra.mrb[8].mxu1 %vm597_vm0, %v604_v42  ;;  %v617_v42 = vld [vmem:[%s2891_s9 + $0xc] sm:$0xf] }
 0x1cf   : > { %1775 = vmatpush3.bf16.xpose.msra.mxu1 %v812_v43  ;;  %1776 = vmatprep.mubr.msk.bf16.mxu1 %vm2411_vm1, %v2409_v1 }
 0x1d0   : > { %1786 = vmatprep.subr.bf16.mxu1 %v2409_v1 }
 0x1d6   : > { %1777 = vmatmul.mubr.msk.bf16.vlgmr.msra.gmra.mrb[12].mxu1 %vm597_vm0, %v605_v44 }
 0x1d7   : > { %1788 = vmatprep.mubr.msk.bf16.mxu1 %vm2411_vm1, %v2409_v1  ;;  %1787 = vmatpush3.bf16.msra.mxu1 %v1034_v25 }
 0x1d8   : > { %1798 = vmatprep.subr.bf16.mxu1 %v2409_v1 }
 0x291   : > { %v710_v46 = vpop.f32.mrb[0].mxu1 }
 0x292   : > { %v2968_v47 = vmul.f32 0.35355338, %v710_v46  ;;  %v1760_v48 = vpop.f32.mrb[1].mxu1 }
 0x293   : > { %v713_v49 = vpop.f32.mrb[2].mxu1 }
 0x294   : > { %v1761_v50 = vpop.f32.mrb[3].mxu1  ;;  %v862_v51 = vsel %vm597_vm0, %v2968_v47, -inf }
 0x295   : > { %863 = vmax.xlane.f32.xlu0 %v862_v51 }
 0x299   : > { %v756_v52 = vpop.f32.mrb[4].mxu1 }
 0x29a   : > { %v855_v53 = vmul.f32 0.35355338, %v756_v52  ;;  %v1766_v54 = vpop.f32.mrb[5].mxu1 }
 0x29b   : > { %v759_v55 = vpop.f32.mrb[6].mxu1 }
 0x29c   : > { %v865_v56 = vsel %vm597_vm0, %v855_v53, -inf  ;;  %v1767_v57 = vpop.f32.mrb[7].mxu1 }
 0x29d   : > { %866 = vmax.xlane.f32.xlu1 %v865_v56 }
 0x2a1   : > { %v802_v58 = vpop.f32.mrb[8].mxu1 }
 0x2a2   : > { %v2973_v59 = vmul.f32 0.35355338, %v802_v58  ;;  %v1772_v60 = vpop.f32.mrb[9].mxu1 }
 0x2a3   : > { %v805_v61 = vpop.f32.mrb[10].mxu1  ;;  %v922_v60 = vld [vmem:[#allocation3] sm:$0xff] }
 0x2a4   : > { %v868_v62 = vsel %vm597_vm0, %v2973_v59, -inf  ;;  %v1773_v63 = vpop.f32.mrb[11].mxu1 }
 0x2a5   : > { %869 = vmax.xlane.f32.xlu0 %v868_v62 }
 0x2a9   : > { %v848_v2 = vpop.f32.mrb[12].mxu1 }
 0x2aa   : > { %v2977_v3 = vmul.f32 0.35355338, %v848_v2  ;;  %v1778_v4 = vpop.f32.mrb[13].mxu1 }
 0x2ab   : > { %v851_v5 = vpop.f32.mrb[14].mxu1 }
 0x2ac   : > { %v871_v6 = vsel %vm597_vm0, %v2977_v3, -inf  ;;  %v1779_v7 = vpop.f32.mrb[15].mxu1 }
 0x2ad   : > { %872 = vmax.xlane.f32.xlu0 %v871_v6 }
 0x322   : > { %v864_v9 = vpop.xlane.xlu0 %863 }
 0x323   : > { %v2984_v10 = vmax.f32 %v2981_v8, %v864_v9  ;;  %v924_v9 = vld [vmem:[#allocation3 + $0x10] sm:$0xff] }
 0x325   : > { %v878_v11 = vsub.f32 %v2981_v8, %v2984_v10  ;;  %1176 = vst.msk [vmem:[#allocation2] sm:$0xff] %vm588_vm3, %v2984_v10  ;;  %892 = vperm.xlu1 %1997, %v2984_v10  }
 0x327   : > { %v882_v56 = vmul.f32 1.442695, %v878_v11 }
 0x32a   : > { %v867_v13 = vpop.xlane.xlu1 %866 }
 0x32b   : > { %v2994_v14 = vmax.f32 %v2991_v12, %v867_v13 }
 0x32d   : > { %v879_v15 = vsub.f32 %v2991_v12, %v2994_v14  ;;  %1177 = vst.msk [vmem:[#allocation2 + $0x8] sm:$0xff] %vm588_vm3, %v2994_v14  ;;  %897 = vperm.xlu0 %1998, %v2994_v14  }
 0x32f   : > { %v884_v57 = vmul.f32 1.442695, %v879_v15  ;;  %v925_v15 = vld [vmem:[#allocation3 + $0x18] sm:$0xff] }
 0x332   : > { %v870_v18 = vpop.xlane.xlu0 %869 }
 0x333   : > { %v3006_v20 = vmax.f32 %v3001_v16, %v870_v18 }
 0x335   : > { %v880_v21 = vsub.f32 %v3001_v16, %v3006_v20  ;;  %1178 = vst.msk [vmem:[#allocation2 + $0x10] sm:$0xff] %vm588_vm3, %v3006_v20  ;;  %902 = vperm.xlu1 %1997, %v3006_v20   ;;  %v1229_v16 = vld [vmem:[%s2897_s27] sm:$0xf] }
 0x336   : > { %v1234_v17 = vsel %vm986_vm4, %v1229_v16, 0 }
 0x337   : > { %v886_v61 = vmul.f32 1.442695, %v880_v21 }
 0x33a   : > { %v873_v24 = vpop.xlane.xlu0 %872 }
 0x33b   : > { %v3019_v26 = vmax.f32 %v3014_v22, %v873_v24 }
 0x33d   : > { %v881_v27 = vsub.f32 %v3014_v22, %v3019_v26  ;;  %1179 = vst.msk [vmem:[#allocation2 + $0x18] sm:$0xff] %vm588_vm3, %v3019_v26  ;;  %907 = vperm.xlu1 %1997, %v3019_v26  }
 0x33f   : > { %v888_v63 = vmul.f32 1.442695, %v881_v27 }
 0x3a4   : > { %v893_v28 = vpop.permute.xlu1 %892 }
 0x3a5   : > { %v910_v29 = vsub.f32 %v2968_v47, %v893_v28  ;;  %v1126_v47 = vsel %vm986_vm4, %v617_v42, 0 }
 0x3a7   : > { %v914_v30 = vmul.f32 1.442695, %v910_v29 }
 0x3a9   : > { %1999 = vpow2.f32 %v914_v30 }
 0x3ac   : > { %v898_v31 = vpop.permute.xlu0 %897 }
 0x3ad   : > { %v911_v32 = vsub.f32 %v855_v53, %v898_v31  ;;  %v952_v31 = vld [vmem:[#allocation4 + $0x8] sm:$0xff] }
 0x3af   : > { %v916_v33 = vmul.f32 1.442695, %v911_v32 }
 0x3b1   : > { %2001 = vpow2.f32 %v916_v33 }
 0x3b3   : > { %v2000_v35 = vpop.eup %1999 }
 0x3b4   : > { %v903_v36 = vpop.permute.xlu1 %902  ;;  %v930_v37 = vsel %vm597_vm0, %v2000_v35, 0.0  ;;  %v979_v38 = vpack.c.bf16 %v2000_v35, %v2000_v35 }
 0x3b5   : > { %v912_v40 = vsub.f32 %v2973_v59, %v903_v36  ;;  %931 = vadd.xlane.f32.xlu1 %v930_v37 }
 0x3b6   : > { %1783 = vmatmul.mubr.msk.bf16.vlgmr.msra.gmra.mrb[0].mxu0 %vm597_vm0, %v979_v38 }
 0x3b7   : > { %v918_v41 = vmul.f32 1.442695, %v912_v40  ;;  %1793 = vmatpush3.bf16.msra.mxu0 %v1080_v39  ;;  %1794 = vmatprep.mubr.msk.bf16.mxu0 %vm2411_vm1, %v2409_v1 }
 0x3b8   : > { %1804 = vmatprep.subr.bf16.mxu0 %v2409_v1 }
 0x3b9   : > { %2003 = vpow2.f32 %v918_v41 }
 0x3bb   : > { %v2002_v43 = vpop.eup %2001 }
 0x3bc   : > { %v908_v44 = vpop.permute.xlu1 %907  ;;  %v933_v45 = vsel %vm597_vm0, %v2002_v43, 0.0  ;;  %v980_v46 = vpack.c.bf16 %v2002_v43, %v2002_v43 }
 0x3bd   : > { %v913_v48 = vsub.f32 %v2977_v3, %v908_v44  ;;  %934 = vadd.xlane.f32.xlu0 %v933_v45  ;;  %v923_v3 = vld [vmem:[#allocation3 + $0x8] sm:$0xff] }
 0x3be   : > { %1789 = vmatmul.mubr.msk.bf16.vlgmr.msra.gmra.mrb[16].mxu1 %vm597_vm0, %v980_v46 }
 0x3bf   : > { %v920_v49 = vmul.f32 1.442695, %v913_v48  ;;  %1799 = vmatpush3.bf16.msra.mxu1 %v1126_v47  ;;  %1800 = vmatprep.mubr.msk.bf16.mxu1 %vm2411_vm1, %v2409_v1  ;;  %v954_v48 = vld [vmem:[#allocation4 + $0x18] sm:$0xff] }
 0x3c1   : > { %2005 = vpow2.f32 %v920_v49 }
 0x3c2   : > { %2007 = vpow2.f32 %v882_v56  ;;  %v1710_v56 = vld [vmem:[%s2897_s27 + $0x4] sm:$0xf] }
 0x3c3   : > { %v2004_v50 = vpop.eup %2003  ;;  %2009 = vpow2.f32 %v884_v57 }
 0x3c4   : > { %v936_v51 = vsel %vm597_vm0, %v2004_v50, 0.0  ;;  %v981_v52 = vpack.c.bf16 %v2004_v50, %v2004_v50  ;;  %2011 = vpow2.f32 %v886_v61  ;;  %v1284_v61 = vsel %vm986_vm4, %v1710_v56, 0 }
 0x3c5   : > { %937 = vadd.xlane.f32.xlu1 %v936_v51  ;;  %2013 = vpow2.f32 %v888_v63 }
 0x3c6   : > { %1795 = vmatmul.mubr.msk.bf16.vlgmr.msra.gmra.mrb[4].mxu0 %vm597_vm0, %v981_v52 }
 0x3c7   : > { %1806 = vmatprep.mubr.msk.bf16.mxu0 %vm2411_vm1, %v2409_v1  ;;  %1805 = vmatpush3.bf16.msra.mxu0 %v1234_v17 }
 0x3c8   : > { %1810 = vmatprep.subr.bf16.mxu0 %v2409_v1 }
 0x3cb   : > { %v2006_v53 = vpop.eup %2005 }
 0x3cc   : > { %v939_v54 = vsel %vm597_vm0, %v2006_v53, 0.0  ;;  %v982_v55 = vpack.c.bf16 %v2006_v53, %v2006_v53  ;;  %v2008_v58 = vpop.eup %2007  ;;  %v953_v53 = vld [vmem:[#allocation4 + $0x10] sm:$0xff] }
 0x3cd   : > { %940 = vadd.xlane.f32.xlu1 %v939_v54  ;;  %v2010_v59 = vpop.eup %2009  ;;  %v926_v62 = vmul.f32 %v2008_v58, %v922_v60 }
 0x3ce   : > { %1801 = vmatmul.mubr.msk.bf16.vlgmr.msra.gmra.mrb[20].mxu1 %vm597_vm0, %v982_v55  ;;  %v927_v4 = vmul.f32 %v2010_v59, %v923_v3  ;;  %v2012_v8 = vpop.eup %2011 }
 0x3cf   : > { %v2014_v10 = vpop.eup %2013  ;;  %v928_v11 = vmul.f32 %v2012_v8, %v924_v9 }
 0x3d0   : > { %v929_v18 = vmul.f32 %v2014_v10, %v925_v15 }
 0x3de   : > { %957 = vperm.xlu1 %1997, %v2008_v58  }
 0x3e2   : > { %962 = vperm.xlu1 %1997, %v2010_v59  }
 0x442   : > { %v932_v0 = vpop.xlane.xlu1 %931 }
 0x443   : > { %v942_v2 = vadd.f32 %v932_v0, %v926_v62 }
 0x445   : > { %947 = vst.msk [vmem:[#allocation3] sm:$0xff] %vm588_vm3, %v942_v2 }
 0x44a   : > { %v935_v5 = vpop.xlane.xlu0 %934 }
 0x44b   : > { %v943_v6 = vadd.f32 %v935_v5, %v927_v4  ;;  %v1712_v4 = vld [vmem:[%s2897_s27 + $0x8] sm:$0xf] }
 0x44c   : > { %v1187_v7 = vld [vmem:[#allocation3] sm:$0xff] }
 0x44d   : > { %948 = vst.msk [vmem:[#allocation3 + $0x8] sm:$0xff] %vm588_vm3, %v943_v6  ;;  %1193 = vperm.xlu0 %1998, %v1187_v7   ;;  %v1334_v6 = vsel %vm986_vm4, %v1712_v4, 0 }
 0x451   : > { %972 = vperm.xlu0 %1998, %v2014_v10  }
 0x452   : > { %v938_v12 = vpop.xlane.xlu1 %937 }
 0x453   : > { %v944_v13 = vadd.f32 %v938_v12, %v928_v11  ;;  %v1714_v11 = vld [vmem:[%s2897_s27 + $0xc] sm:$0xf]  ;;  %s3096_s27 = scalar_lea.hbm %s3278_s24, %s1718_s3 }
 0x454   : > { %v1188_v14 = vld [vmem:[#allocation3 + $0x8] sm:$0xff] }
 0x455   : > { %949 = vst.msk [vmem:[#allocation3 + $0x10] sm:$0xff] %vm588_vm3, %v944_v13  ;;  %1198 = vperm.xlu1 %1997, %v1188_v14   ;;  %v1384_v13 = vsel %vm986_vm4, %v1714_v11, 0 }
 0x459   : > { %967 = vperm.xlu1 %1997, %v2012_v8  }
 0x45a   : > { %v941_v19 = vpop.xlane.xlu1 %940 }
 0x45b   : > { %v945_v20 = vadd.f32 %v941_v19, %v929_v18  ;;  %v1219_v18 = vld [vmem:[%s2906_s26] sm:$0xff] }
 0x45c   : > { %v1189_v21 = vld [vmem:[#allocation3 + $0x10] sm:$0xff]  ;;  %v1708_v19 = vld [vmem:[%s517_s30] ss:$0 sm:$0xff]  ;;  %s2415_s30 = smov [#allocation19]  }
 0x45d   : > { %950 = vst.msk [vmem:[#allocation3 + $0x18] sm:$0xff] %vm588_vm3, %v945_v20  ;;  %1203 = vperm.xlu1 %1997, %v1189_v21   ;;  %v1227_v20 = vadd.f32 %v1708_v19, %v1219_v18  ;;  %s2263_s23 = sshll.u32 %s2415_s30, 4  ;;  %s2264_s23 = int_to_ptr.vmem [resolvable:$false] %s2263_s23 }
 0x45e   : > { %v958_v24 = vpop.permute.xlu1 %957  ;;  %s2265_s26 = scalar_lea.vmem %s2264_s23, 256  ;;  %p2266_p8 = scmp.lt.s32.totalorder %s3098_s22, %s2264_s23 }
 0x45f   : > { %v975_v25 = vmul.f32 %v958_v24, %v951_v23  ;;  %p2267_p1 = scmp.lt.s32.totalorder %s2265_s26, %s2259_s19 }
 0x461   : > { %p2268_p2 = por %p2267_p1, %p2266_p8 }
 0x462   : > { %v963_v32 = vpop.permute.xlu1 %962 }
 0x463   : > { %v976_v33 = vmul.f32 %v963_v32, %v952_v31  ;;  %p2269_p7 = pnand %p2268_p2, %p2262_p4 }
 0x464   : > { %v1190_v22 = vld [vmem:[#allocation3 + $0x18] sm:$0xff] }
 0x465   : > { %1208 = vperm.xlu1 %1997, %v1190_v22  }
 0x489   : > { %v1024_v26 = vpop.f32.mrb[0].mxu0 }
 0x48a   : > { %v1168_v27 = vadd.f32 %v1024_v26, %v975_v25  ;;  %v1784_v28 = vpop.f32.mrb[1].mxu0 }
 0x48b   : > { %v1027_v29 = vpop.f32.mrb[2].mxu0 }
 0x48c   : > { %1172 = vst.msk [vmem:[#allocation4] sm:$0xff] %vm597_vm0, %v1168_v27  ;;  %v1785_v30 = vpop.f32.mrb[3].mxu0 }
 0x491   : > { %v1070_v34 = vpop.f32.mrb[16].mxu1 }
 0x492   : > { %v1169_v35 = vadd.f32 %v1070_v34, %v976_v33  ;;  %v1790_v36 = vpop.f32.mrb[17].mxu1 }
 0x493   : > { %v1073_v37 = vpop.f32.mrb[18].mxu1  ;;  %v1183_v55 = vld [vmem:[#allocation4] sm:$0xff] }
 0x494   : > { %1173 = vst.msk [vmem:[#allocation4 + $0x8] sm:$0xff] %vm597_vm0, %v1169_v35  ;;  %v1791_v38 = vpop.f32.mrb[19].mxu1 }
 0x499   : > { %v1116_v39 = vpop.f32.mrb[4].mxu0 }
 0x49a   : > { %v1796_v40 = vpop.f32.mrb[5].mxu0 }
 0x49b   : > { %v1119_v41 = vpop.f32.mrb[6].mxu0  ;;  %v1184_v2 = vld [vmem:[#allocation4 + $0x8] sm:$0xff] }
 0x49c   : > { %v1797_v42 = vpop.f32.mrb[7].mxu0 }
 0x4a1   : > { %v1162_v43 = vpop.f32.mrb[20].mxu1 }
 0x4a2   : > { %v1802_v44 = vpop.f32.mrb[21].mxu1 }
 0x4a3   : > { %v1165_v45 = vpop.f32.mrb[22].mxu1 }
 0x4a4   : > { %v1803_v46 = vpop.f32.mrb[23].mxu1 }
 0x4cc   : > { %v1194_v47 = vpop.permute.xlu0 %1193 }
 0x4cd   : > { %2015 = vrcp.f32 %v1194_v47 }
 0x4d0   : > { %v973_v49 = vpop.permute.xlu0 %972 }
 0x4d1   : > { %v978_v50 = vmul.f32 %v973_v49, %v954_v48 }
 0x4d3   : > { %v1171_v51 = vadd.f32 %v1162_v43, %v978_v50 }
 0x4d4   : > { %v1199_v52 = vpop.permute.xlu1 %1198 }
 0x4d5   : > { %1175 = vst.msk [vmem:[#allocation4 + $0x18] sm:$0xff] %vm597_vm0, %v1171_v51  ;;  %2017 = vrcp.f32 %v1199_v52 }
 0x4d7   : > { %v2016_v54 = vpop.eup %2015 }
 0x4d8   : > { %v1212_v57 = vmul.f32 %v2016_v54, %v1183_v55  ;;  %v968_v58 = vpop.permute.xlu1 %967 }
 0x4d9   : > { %v977_v59 = vmul.f32 %v968_v58, %v953_v53 }
 0x4da   : > { %v1228_v60 = vpack.c.bf16 %v1212_v57, %v1212_v57 }
 0x4db   : > { %v1170_v62 = vadd.f32 %v1116_v39, %v977_v59 }
 0x4dc   : > { %1807 = vmatmul.mubr.msk.bf16.vlgmr.msra.gmra.mrb[8].mxu0 %vm597_vm0, %v1228_v60  ;;  %v1204_v63 = vpop.permute.xlu1 %1203  ;;  %v1186_v15 = vld [vmem:[#allocation4 + $0x18] sm:$0xff] }
 0x4dd   : > { %1174 = vst.msk [vmem:[#allocation4 + $0x10] sm:$0xff] %vm597_vm0, %v1170_v62  ;;  %1811 = vmatpush3.bf16.msra.mxu0 %v1284_v61  ;;  %1812 = vmatprep.mubr.msk.bf16.mxu0 %vm2411_vm1, %v2409_v1  ;;  %2019 = vrcp.f32 %v1204_v63 }
 0x4de   : > { %1816 = vmatprep.subr.bf16.mxu0 %v2409_v1 }
 0x4df   : > { %v2018_v0 = vpop.eup %2017 }
 0x4e0   : > { %v1214_v3 = vmul.f32 %v2018_v0, %v1184_v2 }
 0x4e2   : > { %v1277_v5 = vpack.c.bf16 %v1214_v3, %v1214_v3 }
 0x4e4   : > { %v1209_v7 = vpop.permute.xlu1 %1208  ;;  %v1185_v9 = vld [vmem:[#allocation4 + $0x10] sm:$0xff] }
 0x4e5   : > { %2021 = vrcp.f32 %v1209_v7 }
 0x4e7   : > { %v2020_v8 = vpop.eup %2019 }
 0x4e8   : > { %1813 = vmatmul.mubr.msk.bf16.vlgmr.msra.gmra.mrb[8].mxu0 %vm597_vm0, %v1277_v5  ;;  %v1216_v10 = vmul.f32 %v2020_v8, %v1185_v9 }
 0x4e9   : > { %1817 = vmatpush3.bf16.msra.mxu0 %v1334_v6  ;;  %1818 = vmatprep.mubr.msk.bf16.mxu0 %vm2411_vm1, %v2409_v1 }
 0x4ea   : > { %1822 = vmatprep.subr.bf16.mxu0 %v2409_v1  ;;  %v1327_v12 = vpack.c.bf16 %v1216_v10, %v1216_v10 }
 0x4ef   : > { %v2022_v14 = vpop.eup %2021 }
 0x4f0   : > { %v1218_v16 = vmul.f32 %v2022_v14, %v1186_v15 }
 0x4f2   : > { %v1377_v17 = vpack.c.bf16 %v1218_v16, %v1218_v16 }
 0x4f4   : > { %1819 = vmatmul.mubr.msk.bf16.vlgmr.msra.gmra.mrb[8].mxu0 %vm597_vm0, %v1327_v12 }
 0x4f5   : > { %1823 = vmatpush3.bf16.msra.mxu0 %v1384_v13  ;;  %1824 = vmatprep.mubr.msk.bf16.mxu0 %vm2411_vm1, %v2409_v1 }
 0x500   : > { %1825 = vmatmul.mubr.msk.bf16.vlgmr.msra.gmra.mrb[8].mxu0 %vm597_vm0, %v1377_v17 }
 0x5d3   : > { %v1420_v21 = vpop.f32.mrb[8].mxu0 }
 0x5d4   : > { %v1828_v1 = vadd.f32 %v1420_v21, %v1227_v20  ;;  %v1826_v22 = vpop.f32.mrb[9].mxu0 }
 0x5d5   : > { %v1423_v23 = vpop.f32.mrb[10].mxu0 }
 0x5d6   : > { %v1827_v24 = vpop.f32.mrb[11].mxu0  ;;  %1428 = vst.msk [vmem:[%s582_s17] sm:$0xff] %vm1427_vm5, %v1828_v1 }
 0x5d7   : > { %2272 = shalt.err (!%p2269_p7)
}
 0x5d8   : > { %s2273_s7 = scalar_lea.hbm %s3096_s27, 128  ;;  %s2277_s25 = scalar_lea.hbm %s3278_s24, 512 }
 0x5d9   : > { %p2274_p9 = scmp.ne.s32.totalorder %s3096_s27, %s2273_s7  ;;  %p2278_p13 = scmp.lt.u32.totalorder %s3096_s27, %s3278_s24 }
 0x5da   : > { %p2279_p12 = scmp.lt.u32.totalorder %s2277_s25, %s2273_s7  ;;  %p2281_p3 = scmp.lt.u32.totalorder %s2273_s7, %s3096_s27 }
 0x5db   : > { %p2275_p0 = pnand %p2274_p9, %p3279_p6 }
 0x5dc   : > { %p2280_p10 = por %p2279_p12, %p2278_p13 }
 0x5dd   : > { %p2276_p5 = pneg %p2275_p0 }
 0x5de   : > { %p2282_p11 = por %p2281_p3, %p2280_p10 }
 0x5e0   : > { %p2283_p4 = pnand %p2282_p11, %p2276_p5 }
 0x5e2   : > { %2286 = shalt.err (!%p2283_p4)
}
 0x5e3   : > { %1861 = dma.vmem_to_hbm [thread:$0]  (%p3279_p6), %s3098_s22, 128, %s3096_s27, %s1430_s18  }
 0x5e4 PF: > { %s3280_s16 = sld [smem:[#allocation26_spill]]  ;;  %s3281_s8 = sld [smem:[#allocation35_spill]] }
 0x5e5   : > { %p1898_p8 = scmp.ge.s32.totalorder %s2397_s15, 2 }
 0x5ea   : > { %s1457_s3 = sand.u32 1, %s3280_s16   ;;  %p3282_p1 = scmp.ne.s32.totalorder %s3281_s8, 0 }
 0x5eb   : > { %s1458_s17 = scalar_lea.sflag [#allocation7], %s1457_s3 }
 0x5ec   : > { %p1890_p2 = pnand %p1898_p8, %p3282_p1 }
 0x5ee   : > { %2352 = dma.done.wait (!%p1890_p2), %s1458_s17, 128  }
 0x5ef   : > { %2354 = vsyncadd (!%p1890_p2), %s1458_s17, 4294967168  ;;  %s34_s15 = sadd.s32 1, %s2397_s15   ;;  %s3283_s27 = sld [smem:[#allocation27_spill]] }
 0x5f0   : > { %p31_p7 = scmp.ge.s32.totalorder %s34_s15, 6   ;;  %s3284_s30 = sld [smem:[#allocation28_spill]] }
 0x5f1   : > { %s3285_s11 = sld [smem:[#allocation40_spill]]  ;;  %s3286_s22 = sld [smem:[#allocation31_spill]] }
 0x5f2   : > { %s3287_s13 = sld [smem:[#allocation37_spill]]  ;;  %s3288_s18 = sld [smem:[#allocation39_spill]] }
 0x5f3   : > { %s3289_s28 = smov %s2365_s29  ;;  %s3290_s29 = smov %s2618_s20 }
 0x5f4   : > { %s3291_s9 = smov %s2377_s10  ;;  %s3294_s12 = smov %s2393_s14 }
 0x5f5   :  { %33 = sbr.rel (!%p31_p7) target bundleno = 22 (0x16), region = 179 }
 0x5f7   : > { %s3292_s10 = smov %s3285_s11  ;;  %s3293_s11 = smov %s3286_s22 }
 0x5f8   : > { %s3295_s14 = smov %s3288_s18 }
 0x5fc   :  { %1463 = vsyncpa [#allocation6], 1 }
 0x5fd   :  { %1465 = vsyncpa [#allocation6 + $0x1], 1 }
 0x5fe   :  { %1466 = vsyncpa [#allocation9], 1 }
 0x5ff   :  { %1468 = vsyncpa [#allocation9 + $0x1], 1 }
 0x600   :  { %1469 = vsyncpa [#allocation12], 1 }
 0x601   :  { %1470 = vsyncpa [#allocation15], 1 }
 0x602   :  { %1472 = vsyncpa [#allocation15 + $0x1], 1 }
 0x603   :  { %1473 = vsyncpa [#allocation18], 1 }
 0x604   :  { %1475 = vsyncpa [#allocation18 + $0x1], 1 }
 0x605   :  { %1476 = vsyncpa [#allocation7], 1 }
 0x606   :  { %1478 = vsyncpa [#allocation7 + $0x1], 1 }

// kernel: forward.11
= control target key start
LH: loop header
LB: loop body
LE: loop exit
PB: predicated region body
PF: predicated region fallthrough
CT: control target
= control target key end

     0   :  { %s3043_s0 = inlined_call_operand.hbm [shape: bf16[2,1,4,16,8], index: 0, kind: input, shape index: {}]   ;;  %s3044_s1 = inlined_call_operand.hbm [shape: bf16[2,1,4,8,8], index: 1, kind: input, shape index: {}]   ;;  %s3045_s2 = inlined_call_operand.hbm [shape: bf16[2,1,4,8,8], index: 2, kind: input, shape index: {}]   ;;  %s3046_s3 = inlined_call_operand.hbm [shape: bf16[2,4,8,32], index: 3, kind: input, shape index: {}]   ;;  %s3047_s4 = inlined_call_operand.hbm [shape: f32[2,1,32], index: 4, kind: input, shape index: {}]   ;;  %s3048_s5 = inlined_call_operand.hbm [shape: f32[2,1,16,32], index: 5, kind: input, shape index: {}]   ;;  %s3049_s6 = inlined_call_operand.hbm [shape: f32[2,1,16,32], index: 6, kind: output, shape index: {}]  }
   0x1   :  { %3068 = sst [smem:[#allocation29_spill]] %s3043_s0 }
   0x2   :  { %3069 = sst [smem:[#allocation30_spill]] %s3044_s1 }
   0x3   :  { %3070 = sst [smem:[#allocation31_spill]] %s3045_s2 }
   0x4   :  { %3071 = sst [smem:[#allocation32_spill]] %s3046_s3 }
   0x5   :  { %3072 = sst [smem:[#allocation33_spill]] %s3049_s6 }
   0x6   :  { %11 = vsyncpa [#allocation6], 0 }
   0x7   :  { %13 = vsyncpa [#allocation6 + $0x1], 0 }
   0x8   :  { %14 = vsyncpa [#allocation9], 0 }
   0x9   :  { %16 = vsyncpa [#allocation9 + $0x1], 0 }
   0xa   :  { %17 = vsyncpa [#allocation12], 0 }
   0xb   :  { %19 = vsyncpa [#allocation12 + $0x1], 0 }
   0xc   :  { %20 = vsyncpa [#allocation15], 0 }
   0xd   :  { %22 = vsyncpa [#allocation15 + $0x1], 0 }
   0xe   :  { %23 = vsyncpa [#allocation7], 0 }
   0xf   :  { %25 = vsyncpa [#allocation7 + $0x1], 0  ;;  %s2363_s21 = smov 0   ;;  %s2365_s22 = smov 0  }
  0x10   :  { %s2367_s23 = smov 0   ;;  %s2369_s24 = smov 0  }
  0x11   :  { %s2371_s25 = smov 0   ;;  %s2373_s26 = smov 0  }
  0x12 LB: > { %3073 = sst [smem:[#allocation22_spill]] %s2289_s21  ;;  %s2394_s27 = sadd.s32 4294967295, %s2309_s26   ;;  %s2309_s26 = sphi %s2373_s26, %s31_s26   ;;  %s2305_s25 = sphi %s2371_s25, %s3111_s25   ;;  %s2301_s24 = sphi %s2369_s24, %s3110_s24   ;;  %s2297_s23 = sphi %s2367_s23, %s3106_s23   ;;  %s2293_s22 = sphi %s2365_s22, %s3109_s22   ;;  %s2289_s21 = sphi %s2363_s21, %s3108_s21  }
  0x13   : > { %3074 = sst [smem:[#allocation23_spill]] %s2297_s23  ;;  %s1717_s28 = sadd.s32 4294967294, %s2309_s26  }
  0x14   : > { %3075 = sst [smem:[#allocation24_spill]] %s2309_s26  ;;  %s50_s29 = sadd.s32 1, %s2305_s25 }
  0x15   : > { %s57_s30 = sadd.s32 1, %s2297_s23  ;;  %p52_p0 = scmp.ge.s32.totalorder %s50_s29, 2 }
  0x16   : > { %p64_p1 = scmp.ne.s32.totalorder %s2297_s23, %s2293_s22  ;;  %p65_p2 = scmp.eq.s32.totalorder %s2309_s26, 0 }
  0x17   : > { %p70_p3 = scmp.ne.s32.totalorder %s2293_s22, %s2289_s21  ;;  %s3113_s29 = smov (%p52_p0, %s50_s29), 0 }
  0x18   : > { %3076 = sst [smem:[#allocation25_spill]] %s3113_s29  ;;  %p2406_p4 = por %p65_p2, %p64_p1 }
  0x19   : > { %p71_p5 = scmp.eq.s32.totalorder %s2394_s27, 0  ;;  %s54_s8 = ssub.s32 %s2305_s25, %s3113_s29 }
  0x1a   : > { %p230_p6 = scmp.eq.s32.totalorder %s2394_s27, 1  ;;  %p55_p7 = scmp.eq.s32.totalorder %s54_s8, 0 }
  0x1b   : > { %p2414_p8 = por %p71_p5, %p70_p3  ;;  %p236_p10 = scmp.eq.s32.totalorder %s1717_s28, 1 }
  0x1c   : > { %p2418_p9 = por %p230_p6, %p64_p1  ;;  %p1921_p13 = scmp.lt.s32.totalorder %s2309_s26, 2 }
  0x1d   : > { %s3078_s9 = scalar_select %p2414_p8, 1, 0 }
  0x1e   : > { %s3079_s10 = scalar_select %p2418_p9, 1, 0 }
  0x1f   : > { %s2423_s11 = scalar_select %p55_p7, %s2297_s23, %s57_s30  }
  0x20   : > { %3080 = sst [smem:[#allocation26_spill]] %s3079_s10  ;;  %p2425_p11 = por %p236_p10, %p70_p3 }
  0x21   : > { %3081 = sst [smem:[#allocation27_spill]] %s2423_s11  ;;  %s2432_s13 = sand.u32 1, %s2297_s23  }
  0x22   : > { %s3082_s12 = scalar_select %p2425_p11, 1, 0 }
  0x23   : > { %p2436_p0 = pnand %p1921_p13, %p2406_p4  ;;  %s3052_s15 = sand.u32 1, %s2309_s26  }
  0x24   : > { %3083 = sst [smem:[#allocation28_spill]] %s3082_s12  ;;  %s2442_s16 = sshll.u32 %s2432_s13, 4 }
  0x25   : > { %s3084_s14 = scalar_select %p2436_p0, 1, 0 }
  0x26   : > { %s2445_s17 = sshll.u32 %s2305_s25, 8  ;;  %s281_s18 = scalar_lea.vmem [#allocation8], %s2442_s16 }
  0x27   : > { %s289_s19 = sshll.u32 %s281_s18, 4  ;;  %s3085_s1 = sld [smem:[#allocation30_spill]]  ;;  %s2454_s19 = int_to_ptr.vmem [resolvable:$true] %s289_s19 }
  0x28   : > { %s2458_s7 = scalar_lea.sflag [#allocation9], %s3052_s15  ;;  %p2464_p2 = pneg %p2436_p0 }
  0x2d   : > { %s2452_s30 = scalar_lea.hbm %s3085_s1, %s2445_s17  ;;  %s2040_s28 = scalar_lea.hbm %s3085_s1, 512 }
  0x2e   : > { %s2035_s8 = scalar_lea.hbm %s2452_s30, 256  ;;  %p2041_p5 = scmp.lt.u32.totalorder %s2452_s30, %s3085_s1 }
  0x2f   : > { %p2036_p1 = scmp.ne.s32.totalorder %s2452_s30, %s2035_s8  ;;  %p2042_p6 = scmp.lt.u32.totalorder %s2040_s28, %s2035_s8 }
  0x30   : > { %p2044_p10 = scmp.lt.u32.totalorder %s2035_s8, %s2452_s30 }
  0x31   : > { %p2038_p3 = pnand %p2464_p2, %p2036_p1  ;;  %p2043_p7 = por %p2042_p6, %p2041_p5 }
  0x33   : > { %p2039_p4 = pneg %p2038_p3  ;;  %p2045_p13 = por %p2044_p10, %p2043_p7 }
  0x35   : > { %p2046_p12 = pnand %p2045_p13, %p2039_p4 }
  0x37   : > { %2049 = shalt.err (!%p2046_p12)
}
  0x38   : > { %s2050_s15 = scalar_lea.vmem %s2454_s19, 256  ;;  %s2311_s18 = smov [#allocation8]  }
  0x39   : > { %p2051_p1 = scmp.ne.s32.totalorder %s2454_s19, %s2050_s15  ;;  %s2055_s20 = sshll.u32 %s2311_s18, 4  ;;  %s2056_s20 = int_to_ptr.vmem [resolvable:$false] %s2055_s20 }
  0x3a   : > { %s2057_s23 = scalar_lea.vmem %s2056_s20, 512  ;;  %p2058_p9 = scmp.lt.s32.totalorder %s2454_s19, %s2056_s20 }
  0x3b   : > { %p2053_p3 = pnand %p2051_p1, %p2464_p2  ;;  %p2059_p8 = scmp.lt.s32.totalorder %s2057_s23, %s2050_s15 }
  0x3d   : > { %p2054_p11 = pneg %p2053_p3  ;;  %p2060_p5 = por %p2059_p8, %p2058_p9 }
  0x3f   : > { %p2061_p6 = pnand %p2060_p5, %p2054_p11 }
  0x41   : > { %2064 = shalt.err (!%p2061_p6)
}
  0x42   : > { %s3055_s11 = smov 64   ;;  %s3057_s8 = smov 4  }
  0x43   : > { %1904 = dma.hbm_to_vmem [thread:$0]  (!%p2436_p0), %s2452_s30, 256, %s2454_s19, %s2458_s7, %s3055_s11, %s3055_s11, %s3057_s8  }
  0x44   : > { %p1736_p8 = scmp.ge.s32.totalorder %s2309_s26, 1  ;;  %p378_p9 = scmp.lt.s32.totalorder %s2309_s26, 3 }
  0x45   : > { %s3088_s3 = sld [smem:[#allocation32_spill]]  ;;  %s325_s23 = scalar_lea.vmem [#allocation11], %s2442_s16 }
  0x46   : > { %p2493_p11 = pnand %p1736_p8, %p378_p9  ;;  %s332_s1 = sshll.u32 %s325_s23, 4  ;;  %s2504_s1 = int_to_ptr.vmem [resolvable:$true] %s332_s1 }
  0x47   : > { %s3089_s19 = sand.u32 1, %s2309_s26  }
  0x48   : > { %s3087_s15 = scalar_select %p2493_p11, 1, 0 }
  0x49   : > { %s2508_s30 = scalar_lea.sflag [#allocation12], %s3089_s19 }
  0x4b   : > { %s2501_s20 = scalar_lea.hbm %s3088_s3, %s2445_s17  ;;  %s2070_s18 = scalar_lea.hbm %s3088_s3, 512 }
  0x4c   : > { %s2065_s11 = scalar_lea.hbm %s2501_s20, 256  ;;  %p2071_p10 = scmp.lt.u32.totalorder %s2501_s20, %s3088_s3 }
  0x4d   : > { %p2066_p12 = scmp.ne.s32.totalorder %s2501_s20, %s2065_s11  ;;  %p2072_p13 = scmp.lt.u32.totalorder %s2070_s18, %s2065_s11 }
  0x4e   : > { %p2074_p3 = scmp.lt.u32.totalorder %s2065_s11, %s2501_s20 }
  0x4f   : > { %p2068_p4 = pnand %p2066_p12, %p2464_p2  ;;  %p2073_p1 = por %p2072_p13, %p2071_p10 }
  0x51   : > { %p2069_p7 = pneg %p2068_p4  ;;  %p2075_p5 = por %p2074_p3, %p2073_p1 }
  0x53   : > { %p2076_p6 = pnand %p2075_p5, %p2069_p7 }
  0x55   : > { %2079 = shalt.err (!%p2076_p6)
}
  0x56   : > { %s2080_s23 = scalar_lea.vmem %s2504_s1, 256  ;;  %s2314_s8 = smov [#allocation11]  }
  0x57   : > { %p2081_p8 = scmp.ne.s32.totalorder %s2504_s1, %s2080_s23  ;;  %s2085_s19 = sshll.u32 %s2314_s8, 4  ;;  %s2086_s19 = int_to_ptr.vmem [resolvable:$false] %s2085_s19 }
  0x58   : > { %s2087_s21 = scalar_lea.vmem %s2086_s19, 512  ;;  %p2088_p4 = scmp.lt.s32.totalorder %s2504_s1, %s2086_s19 }
  0x59   : > { %p2083_p9 = pnand %p2081_p8, %p2464_p2  ;;  %p2089_p11 = scmp.lt.s32.totalorder %s2087_s21, %s2080_s23 }
  0x5b   : > { %p2084_p12 = pneg %p2083_p9  ;;  %p2090_p10 = por %p2089_p11, %p2088_p4 }
  0x5d   : > { %p2091_p13 = pnand %p2090_p10, %p2084_p12 }
  0x5f   : > { %2094 = shalt.err (!%p2091_p13)
}
  0x60   : > { %s3090_s12 = smov 4   ;;  %s3091_s11 = smov 64  }
  0x61   : > { %1910 = dma.hbm_to_vmem [thread:$0]  (!%p2436_p0), %s2501_s20, 256, %s2504_s1, %s2508_s30, %s3091_s11, %s3091_s11, %s3090_s12  }
  0x62   : > { %s1720_s28 = sshll.u32 %s2432_s13, 5  ;;  %s1768_s18 = sshll.u32 %s2305_s25, 9 }
  0x63   : > { %s3092_s0 = sld [smem:[#allocation29_spill]]  ;;  %s260_s21 = scalar_lea.vmem [#allocation5], %s1720_s28 }
  0x64   : > { %s267_s3 = sshll.u32 %s260_s21, 4  ;;  %s257_s26 = scalar_lea.sflag [#allocation6], %s2432_s13  ;;  %s2542_s3 = int_to_ptr.vmem [resolvable:$true] %s267_s3 }
  0x69   : > { %s2540_s19 = scalar_lea.hbm %s3092_s0, %s1768_s18  ;;  %s2100_s8 = scalar_lea.hbm %s3092_s0, 1024 }
  0x6a   : > { %s2095_s6 = scalar_lea.hbm %s2540_s19, 512  ;;  %p2101_p3 = scmp.lt.u32.totalorder %s2540_s19, %s3092_s0 }
  0x6b   : > { %p2096_p11 = scmp.ne.s32.totalorder %s2540_s19, %s2095_s6  ;;  %p2102_p5 = scmp.lt.u32.totalorder %s2100_s8, %s2095_s6 }
  0x6c   : > { %p2104_p8 = scmp.lt.u32.totalorder %s2095_s6, %s2540_s19 }
  0x6d   : > { %p2098_p7 = pnand %p2096_p11, %p2464_p2  ;;  %p2103_p6 = por %p2102_p5, %p2101_p3 }
  0x6f   : > { %p2099_p1 = pneg %p2098_p7  ;;  %p2105_p9 = por %p2104_p8, %p2103_p6 }
  0x71   : > { %p2106_p12 = pnand %p2105_p9, %p2099_p1 }
  0x73   : > { %2109 = shalt.err (!%p2106_p12)
}
  0x74   : > { %s2110_s28 = scalar_lea.vmem %s2542_s3, 512  ;;  %s2315_s21 = smov [#allocation5]  }
  0x75   : > { %p2111_p4 = scmp.ne.s32.totalorder %s2542_s3, %s2110_s28  ;;  %s2115_s1 = sshll.u32 %s2315_s21, 4  ;;  %s2116_s1 = int_to_ptr.vmem [resolvable:$false] %s2115_s1 }
  0x76   : > { %s2117_s20 = scalar_lea.vmem %s2116_s1, 1024  ;;  %p2118_p11 = scmp.lt.s32.totalorder %s2542_s3, %s2116_s1 }
  0x77   : > { %p2113_p10 = pnand %p2111_p4, %p2464_p2  ;;  %p2119_p7 = scmp.lt.s32.totalorder %s2117_s20, %s2110_s28 }
  0x79   : > { %p2114_p13 = pneg %p2113_p10  ;;  %p2120_p3 = por %p2119_p7, %p2118_p11 }
  0x7b   : > { %p2121_p5 = pnand %p2120_p3, %p2114_p13 }
  0x7d   : > { %2124 = shalt.err (!%p2121_p5)
}
  0x7e   : > { %1901 = dma.hbm_to_vmem [thread:$0]  (!%p2436_p0), %s2540_s19, 512, %s2542_s3, %s257_s26, %s3091_s11, %s3091_s11, %s3090_s12  }
  0x7f   : > { %s3093_s2 = sld [smem:[#allocation31_spill]]  ;;  %s303_s23 = scalar_lea.vmem [#allocation10], %s2442_s16 }
  0x80   : > { %s311_s28 = sshll.u32 %s303_s23, 4  ;;  %s2578_s28 = int_to_ptr.vmem [resolvable:$true] %s311_s28 }
  0x85   : > { %s2575_s18 = scalar_lea.hbm %s3093_s2, %s2445_s17  ;;  %s2130_s26 = scalar_lea.hbm %s3093_s2, 512 }
  0x86   : > { %s2125_s21 = scalar_lea.hbm %s2575_s18, 256  ;;  %p2131_p9 = scmp.lt.u32.totalorder %s2575_s18, %s3093_s2 }
  0x87   : > { %p2126_p1 = scmp.ne.s32.totalorder %s2575_s18, %s2125_s21  ;;  %p2132_p12 = scmp.lt.u32.totalorder %s2130_s26, %s2125_s21 }
  0x88   : > { %p2134_p10 = scmp.lt.u32.totalorder %s2125_s21, %s2575_s18 }
  0x89   : > { %p2128_p6 = pnand %p2126_p1, %p2464_p2  ;;  %p2133_p4 = por %p2132_p12, %p2131_p9 }
  0x8b   : > { %p2129_p8 = pneg %p2128_p6  ;;  %p2135_p13 = por %p2134_p10, %p2133_p4 }
  0x8d   : > { %p2136_p11 = pnand %p2135_p13, %p2129_p8 }
  0x8f   : > { %2139 = shalt.err (!%p2136_p11)
}
  0x90   : > { %s2140_s6 = scalar_lea.vmem %s2578_s28, 256  ;;  %s2316_s8 = smov [#allocation10]  }
  0x91   : > { %p2141_p7 = scmp.ne.s32.totalorder %s2578_s28, %s2140_s6  ;;  %s2145_s23 = sshll.u32 %s2316_s8, 4  ;;  %s2146_s23 = int_to_ptr.vmem [resolvable:$false] %s2145_s23 }
  0x92   : > { %s2147_s1 = scalar_lea.vmem %s2146_s23, 512  ;;  %p2148_p1 = scmp.lt.s32.totalorder %s2578_s28, %s2146_s23 }
  0x93   : > { %p2143_p3 = pnand %p2141_p7, %p2464_p2  ;;  %p2149_p6 = scmp.lt.s32.totalorder %s2147_s1, %s2140_s6 }
  0x95   : > { %p2144_p5 = pneg %p2143_p3  ;;  %p2150_p9 = por %p2149_p6, %p2148_p1 }
  0x97   : > { %p2151_p12 = pnand %p2150_p9, %p2144_p5 }
  0x99   : > { %2154 = shalt.err (!%p2151_p12)
}
  0x9a   : > { %1907 = dma.hbm_to_vmem [thread:$0]  (!%p2436_p0), %s2575_s18, 256, %s2578_s28, %s2458_s7, %s3091_s11, %s3091_s11, %s3090_s12  }
  0x9b   : > { %s1732_s21 = sshll.u32 %s2305_s25, 4  ;;  %s345_s3 = scalar_lea.vmem [#allocation13], %s2432_s13 }
  0x9c   : > { %s352_s26 = sshll.u32 %s345_s3, 4  ;;  %s350_s6 = scalar_lea.hbm %s3047_s4, %s1732_s21  ;;  %s353_s26 = int_to_ptr.vmem [resolvable:$true] %s352_s26 }
  0x9d   : > { %s2155_s8 = scalar_lea.hbm %s350_s6, 16  ;;  %s2160_s0 = scalar_lea.hbm %s3047_s4, 32 }
  0x9e   : > { %p2156_p8 = scmp.ne.s32.totalorder %s350_s6, %s2155_s8  ;;  %p2161_p13 = scmp.lt.u32.totalorder %s350_s6, %s3047_s4 }
  0x9f   : > { %p2162_p11 = scmp.lt.u32.totalorder %s2160_s0, %s2155_s8  ;;  %p2164_p3 = scmp.lt.u32.totalorder %s2155_s8, %s350_s6 }
  0xa0   : > { %p2158_p4 = pnand %p2156_p8, %p2464_p2 }
  0xa1   : > { %p2163_p7 = por %p2162_p11, %p2161_p13 }
  0xa2   : > { %p2159_p10 = pneg %p2158_p4 }
  0xa3   : > { %p2165_p5 = por %p2164_p3, %p2163_p7 }
  0xa5   : > { %p2166_p1 = pnand %p2165_p5, %p2159_p10 }
  0xa7   : > { %2169 = shalt.err (!%p2166_p1)
}
  0xa8   : > { %s2170_s7 = scalar_lea.vmem %s353_s26, 16  ;;  %s2317_s12 = smov [#allocation13]  }
  0xa9   : > { %p2171_p6 = scmp.ne.s32.totalorder %s353_s26, %s2170_s7  ;;  %s2175_s11 = sshll.u32 %s2317_s12, 4  ;;  %s2176_s11 = int_to_ptr.vmem [resolvable:$false] %s2175_s11 }
  0xaa   : > { %s2177_s18 = scalar_lea.vmem %s2176_s11, 32  ;;  %p2178_p8 = scmp.lt.s32.totalorder %s353_s26, %s2176_s11 }
  0xab   : > { %p2173_p9 = pnand %p2171_p6, %p2464_p2  ;;  %p2179_p4 = scmp.lt.s32.totalorder %s2177_s18, %s2170_s7 }
  0xad   : > { %p2174_p12 = pneg %p2173_p9  ;;  %p2180_p0 = por %p2179_p4, %p2178_p8 }
  0xaf   : > { %p2181_p11 = pnand %p2180_p0, %p2174_p12 }
  0xb1   : > { %2184 = shalt.err (!%p2181_p11)
}
  0xb2   : > { %p3094_p13 = scmp.ne.s32.totalorder %s3084_s14, 0  ;;  %s2627_s10 = scalar_lea.hbm %s3048_s5, %s2445_s17 }
  0xb3   : > { %s363_s28 = scalar_lea.vmem [#allocation14], %s2442_s16  ;;  %s360_s3 = scalar_lea.sflag [#allocation15], %s2432_s13 }
  0xb4   : > { %1913 = dma.hbm_to_vmem [thread:$0]  (!%p3094_p13), %s350_s6, 16, %s353_s26, %s2508_s30  }
  0xb5   : > { %s370_s21 = sshll.u32 %s363_s28, 4  ;;  %s2185_s19 = scalar_lea.hbm %s2627_s10, 256  ;;  %s2630_s21 = int_to_ptr.vmem [resolvable:$true] %s370_s21 }
  0xb6   : > { %p2186_p0 = scmp.ne.s32.totalorder %s2627_s10, %s2185_s19  ;;  %s2190_s20 = scalar_lea.hbm %s3048_s5, 512 }
  0xb7   : > { %p2191_p3 = scmp.lt.u32.totalorder %s2627_s10, %s3048_s5  ;;  %p2192_p5 = scmp.lt.u32.totalorder %s2190_s20, %s2185_s19 }
  0xb8   : > { %p2188_p10 = pnand %p2186_p0, %p2464_p2  ;;  %p2194_p6 = scmp.lt.u32.totalorder %s2185_s19, %s2627_s10 }
  0xb9   : > { %p2193_p1 = por %p2192_p5, %p2191_p3 }
  0xba   : > { %p2189_p7 = pneg %p2188_p10 }
  0xbb   : > { %p2195_p9 = por %p2194_p6, %p2193_p1 }
  0xbd   : > { %p2196_p12 = pnand %p2195_p9, %p2189_p7 }
  0xbf   : > { %2199 = shalt.err (!%p2196_p12)
}
  0xc0   : > { %s2200_s16 = scalar_lea.vmem %s2630_s21, 256  ;;  %s2318_s8 = smov [#allocation14]  }
  0xc1   : > { %p2201_p8 = scmp.ne.s32.totalorder %s2630_s21, %s2200_s16  ;;  %s2205_s23 = sshll.u32 %s2318_s8, 4  ;;  %s2206_s23 = int_to_ptr.vmem [resolvable:$false] %s2205_s23 }
  0xc2   : > { %s2207_s1 = scalar_lea.vmem %s2206_s23, 512  ;;  %p2208_p0 = scmp.lt.s32.totalorder %s2630_s21, %s2206_s23 }
  0xc3   : > { %p2203_p4 = pnand %p2201_p8, %p2464_p2  ;;  %p2209_p10 = scmp.lt.s32.totalorder %s2207_s1, %s2200_s16 }
  0xc5   : > { %p2204_p11 = pneg %p2203_p4  ;;  %p2210_p3 = por %p2209_p10, %p2208_p0 }
  0xc7   : > { %p2211_p5 = pnand %p2210_p3, %p2204_p11 }
  0xc9   : > { %2214 = shalt.err (!%p2211_p5)
}
  0xca   : > { %s2319_s7 = smov 128   ;;  %s2320_s12 = smov 8  }
  0xcb   : > { %1916 = dma.hbm_to_vmem [thread:$0]  (!%p3094_p13), %s2627_s10, 256, %s2630_s21, %s360_s3, %s2319_s7, %s2319_s7, %s2320_s12  }
  0xcc   : > { %p3095_p2 = scmp.ne.s32.totalorder %s3087_s15, 0 }
  0xcd   : > { %s2659_s29 = sand.u32 (!%p3095_p2), 1, %s2293_s22   ;;  %p3096_p7 = scmp.ne.s32.totalorder (!%p3095_p2), %s3078_s9, 0 }
  0xce   : > { %382 = sbr.rel (%p3095_p2) target bundleno = 1302 (0x516), region = 44  ;;  %s1737_s11 = sshll.u32 (!%p3095_p2), %s2659_s29, 5 }
  0xcf   : > { %s385_s18 = scalar_lea.sflag (!%p3095_p2), [#allocation6], %s2659_s29  ;;  %s2663_s0 = scalar_lea.vmem (!%p3095_p2), [#allocation5], %s1737_s11 }
  0xd5   : > { %2268 = dma.done.wait (%p3096_p7), %s385_s18, 512  }
  0xd6   : > { %2270 = vsyncadd (%p3096_p7), %s385_s18, 4294966784  ;;  %s393_s13 = sand.u32 1, %s2394_s27   ;;  %s2671_s14 = sshll.u32 %s2659_s29, 4 }
  0xd7   : > { %s394_s15 = scalar_lea.sflag [#allocation9], %s393_s13  ;;  %s2674_s2 = scalar_lea.vmem [#allocation8], %s2671_s14 }
  0xd8   : > { %2272 = dma.done.wait (%p3096_p7), %s394_s15, 512  }
  0xd9   : > { %2274 = vsyncadd (%p3096_p7), %s394_s15, 4294966784  ;;  %s2681_s10 = scalar_lea.vmem [#allocation10], %s2671_s14  ;;  %s412_s28 = scalar_lea.sflag [#allocation12], %s393_s13 }
  0xda   : > { %s2684_s21 = scalar_lea.vmem [#allocation11], %s2671_s14 }
  0xdb   : > { %2276 = dma.done.wait (%p3096_p7), %s412_s28, 272  }
  0xdc   : > { %2278 = vsyncadd (%p3096_p7), %s412_s28, 4294967024  ;;  %s423_s27 = scalar_lea.vmem [#allocation13], %s2659_s29  ;;  %s429_s3 = scalar_lea.sflag [#allocation15], %s2659_s29 }
  0xdd   : > { %s432_s19 = scalar_lea.vmem [#allocation14], %s2671_s14 }
  0xde   : > { %2280 = dma.done.wait (%p3096_p7), %s429_s3, 256  }
  0xdf   : > { %2282 = vsyncadd (%p3096_p7), %s429_s3, 4294967040  ;;  %vm507_vm0 = vcmask 64512   ;;  %v2321_v0 = vmov 0.0   ;;  %vm2322_vm1 = vmmov 0   ;;  %v524_v1 = vld [vmem:[%s2674_s2] sm:$0xf] }
  0xe0   : > { %1798 = vmatprep.subr.bf16.mxu1 %v2321_v0  ;;  %508 = vst.msk [vmem:[#allocation4] sm:$0xff] %vm507_vm0, %v2321_v0  ;;  %509 = vst.msk [vmem:[#allocation4 + $0x8] sm:$0xff] %vm507_vm0, %v2321_v0  ;;  %1800 = vmatprep.mubr.msk.bf16.mxu1 %vm2322_vm1, %v2321_v0  ;;  %v542_v2 = vsel %vm507_vm0, %v524_v1, 0  ;;  %v525_v3 = vld [vmem:[%s2674_s2 + $0x4] sm:$0xf]  ;;  %v1984_v7 = vld [vmem:[%s2663_s0 + $0x8] sm:$0xff]  }
  0xe1   : > { %510 = vst.msk [vmem:[#allocation4 + $0x10] sm:$0xff] %vm507_vm0, %v2321_v0  ;;  %511 = vst.msk [vmem:[#allocation4 + $0x18] sm:$0xff] %vm507_vm0, %v2321_v0  ;;  %1822 = vmatprep.subr.bf16.mxu0 %v2321_v0  ;;  %1824 = vmatprep.mubr.msk.bf16.mxu0 %vm2322_vm1, %v2321_v0  ;;  %v1983_v4 = vld [vmem:[%s2663_s0] sm:$0xff]   ;;  %v594_v5 = vsel %vm507_vm0, %v525_v3, 0  ;;  %v526_v6 = vld [vmem:[%s2674_s2 + $0x8] sm:$0xf] }
  0xe2   : > { %512 = vst.msk [vmem:[#allocation4 + $0x20] sm:$0xff] %vm507_vm0, %v2321_v0  ;;  %513 = vst.msk [vmem:[#allocation4 + $0x28] sm:$0xff] %vm507_vm0, %v2321_v0  ;;  %1799 = vmatpush3.bf16.xpose.msra.mxu1 %v542_v2  ;;  %v646_v8 = vsel %vm507_vm0, %v526_v6, 0  ;;  %v527_v9 = vld [vmem:[%s2674_s2 + $0xc] sm:$0xf]  ;;  %v1985_v10 = vld [vmem:[%s2663_s0 + $0x10] sm:$0xff]  }
  0xe3   : > { %514 = vst.msk [vmem:[#allocation4 + $0x30] sm:$0xff] %vm507_vm0, %v2321_v0  ;;  %515 = vst.msk [vmem:[#allocation4 + $0x38] sm:$0xff] %vm507_vm0, %v2321_v0  ;;  %1804 = vmatprep.subr.bf16.mxu1 %v2321_v0  ;;  %v698_v11 = vsel %vm507_vm0, %v527_v9, 0  ;;  %v1986_v12 = vld [vmem:[%s2663_s0 + $0x18] sm:$0xff]   ;;  %vm490_vm2 = vcmask 7168   ;;  %v2323_v13 = vmov -inf  }
  0xe4   : > { %491 = vst.msk [vmem:[#allocation2] sm:$0xff] %vm490_vm2, %v2323_v13  ;;  %492 = vst.msk [vmem:[#allocation2 + $0x8] sm:$0xff] %vm490_vm2, %v2323_v13  ;;  %v2324_v37 = vmov 0   ;;  %vm997_vm3 = vcmask 1043456   ;;  %s484_s9 = scalar_lea.vmem [#allocation16], %s2671_s14  ;;  %s3097_s26 = sld [smem:[#allocation26_spill]] }
  0xe5   : > { %493 = vst.msk [vmem:[#allocation2 + $0x10] sm:$0xff] %vm490_vm2, %v2323_v13  ;;  %494 = vst.msk [vmem:[#allocation2 + $0x18] sm:$0xff] %vm490_vm2, %v2323_v13  ;;  %1981 = vset.pattern.permute.xlu0 %v2324_v37  ;;  %1982 = vset.pattern.permute.xlu1 %v2324_v37  ;;  %s1519_s30 = sshll.u32 %s484_s9, 4  ;;  %s1773_s20 = sshll.u32 %s2301_s24, 8  ;;  %vm1500_vm4 = vcmask 261120   ;;  %s2989_s30 = int_to_ptr.vmem [resolvable:$true] %s1519_s30 }
  0xe6   : > { %495 = vst.msk [vmem:[#allocation2 + $0x20] sm:$0xff] %vm490_vm2, %v2323_v13  ;;  %496 = vst.msk [vmem:[#allocation2 + $0x28] sm:$0xff] %vm490_vm2, %v2323_v13  ;;  %s3098_s16 = sld [smem:[#allocation33_spill]]  ;;  %s1504_s24 = scalar_lea.sflag [#allocation7], %s2659_s29 }
  0xe7   : > { %497 = vst.msk [vmem:[#allocation2 + $0x30] sm:$0xff] %vm490_vm2, %v2323_v13  ;;  %498 = vst.msk [vmem:[#allocation2 + $0x38] sm:$0xff] %vm490_vm2, %v2323_v13  ;;  %s2215_s23 = scalar_lea.vmem %s2989_s30, 256  ;;  %s2325_s1 = smov [#allocation16]  }
  0xe8   : > { %499 = vst.msk [vmem:[#allocation3] sm:$0xff] %vm490_vm2, %v2321_v0  ;;  %500 = vst.msk [vmem:[#allocation3 + $0x8] sm:$0xff] %vm490_vm2, %v2321_v0  ;;  %p2216_p13 = scmp.ne.s32.totalorder %s2989_s30, %s2215_s23  ;;  %s2219_s7 = sshll.u32 %s2325_s1, 4  ;;  %s2220_s7 = int_to_ptr.vmem [resolvable:$false] %s2219_s7 }
  0xe9   : > { %1801 = vmatmul.mubr.msk.bf16.vlgmr.msra.gmra.mrb[0].mxu1 %vm507_vm0, %v1983_v4  ;;  %501 = vst.msk [vmem:[#allocation3 + $0x10] sm:$0xff] %vm490_vm2, %v2321_v0  ;;  %502 = vst.msk [vmem:[#allocation3 + $0x18] sm:$0xff] %vm490_vm2, %v2321_v0  ;;  %s2221_s12 = scalar_lea.vmem %s2220_s7, 512  ;;  %p2222_p12 = scmp.lt.s32.totalorder %s2989_s30, %s2220_s7 }
  0xea   : > { %1805 = vmatpush3.bf16.xpose.msra.mxu1 %v594_v5  ;;  %1806 = vmatprep.mubr.msk.bf16.mxu1 %vm2322_vm1, %v2321_v0  ;;  %503 = vst.msk [vmem:[#allocation3 + $0x20] sm:$0xff] %vm490_vm2, %v2321_v0  ;;  %504 = vst.msk [vmem:[#allocation3 + $0x28] sm:$0xff] %vm490_vm2, %v2321_v0  ;;  %p3099_p1 = scmp.ne.s32.totalorder %s3097_s26, 0  ;;  %p2223_p8 = scmp.lt.s32.totalorder %s2221_s12, %s2215_s23 }
  0xeb   : > { %1810 = vmatprep.subr.bf16.mxu1 %v2321_v0  ;;  %505 = vst.msk [vmem:[#allocation3 + $0x30] sm:$0xff] %vm490_vm2, %v2321_v0  ;;  %506 = vst.msk [vmem:[#allocation3 + $0x38] sm:$0xff] %vm490_vm2, %v2321_v0  ;;  %v2803_v47 = vld [vmem:[#allocation2] sm:$0xff]  ;;  %v2808_v50 = vld [vmem:[#allocation2 + $0x8] sm:$0xff] }
  0xec   : > { %v2818_v54 = vld [vmem:[#allocation2 + $0x10] sm:$0xff]  ;;  %v2828_v58 = vld [vmem:[#allocation2 + $0x18] sm:$0xff]  ;;  %s2994_s8 = scalar_lea.hbm %s3098_s16, %s1773_s20  ;;  %p2217_p6 = pnand %p2216_p13, %p3099_p1 }
  0xed   : > { %v2838_v62 = vld [vmem:[#allocation2 + $0x20] sm:$0xff]  ;;  %v2845_v2 = vld [vmem:[#allocation2 + $0x28] sm:$0xff]  ;;  %p2224_p4 = por %p2223_p8, %p2222_p12 }
  0xee   : > { %p2218_p9 = pneg %p2217_p6 }
  0xf0   : > { %p2225_p11 = pnand %p2224_p4, %p2218_p9 }
  0xf1   : > { %1807 = vmatmul.mubr.msk.bf16.vlgmr.msra.gmra.mrb[4].mxu1 %vm507_vm0, %v1984_v7  ;;  %v528_v7 = vld [vmem:[%s2681_s10] sm:$0xf] }
  0xf2   : > { %1811 = vmatpush3.bf16.xpose.msra.mxu1 %v646_v8  ;;  %1812 = vmatprep.mubr.msk.bf16.mxu1 %vm2322_vm1, %v2321_v0  ;;  %v999_v8 = vsel %vm997_vm3, %v528_v7, 0 }
  0xf3   : > { %1816 = vmatprep.subr.bf16.mxu1 %v2321_v0  ;;  %1823 = vmatpush3.bf16.msra.mxu0 %v999_v8 }
  0xf4   : > { %1834 = vmatprep.subr.bf16.mxu0 %v2321_v0 }
  0xf9   : > { %1813 = vmatmul.mubr.msk.bf16.vlgmr.msra.gmra.mrb[8].mxu1 %vm507_vm0, %v1985_v10  ;;  %v2864_v10 = vld [vmem:[#allocation2 + $0x30] sm:$0xff] }
  0xfa   : > { %1817 = vmatpush3.bf16.xpose.msra.mxu1 %v698_v11  ;;  %1818 = vmatprep.mubr.msk.bf16.mxu1 %vm2322_vm1, %v2321_v0 }
  0xfb   : > { %1828 = vmatprep.subr.bf16.mxu1 %v2321_v0 }
 0x101   : > { %1819 = vmatmul.mubr.msk.bf16.vlgmr.msra.gmra.mrb[12].mxu1 %vm507_vm0, %v1986_v12  ;;  %v2868_v12 = vld [vmem:[#allocation2 + $0x38] sm:$0xff] }
 0x102   : > { %1830 = vmatprep.mubr.msk.bf16.mxu1 %vm2322_vm1, %v2321_v0 }
 0x1bc   : > { %v578_v14 = vpop.f32.mrb[0].mxu1 }
 0x1bd   : > { %v2771_v15 = vmul.f32 0.35355338, %v578_v14  ;;  %v1802_v16 = vpop.f32.mrb[1].mxu1 }
 0x1be   : > { %v581_v17 = vpop.f32.mrb[2].mxu1 }
 0x1bf   : > { %v2773_v18 = vmul.f32 0.35355338, %v581_v17  ;;  %v1803_v19 = vpop.f32.mrb[3].mxu1  ;;  %v757_v20 = vsel %vm507_vm0, %v2771_v15, -inf }
 0x1c0   : > { %758 = vmax.xlane.f32.xlu0 %v757_v20  ;;  %v529_v19 = vld [vmem:[%s2681_s10 + $0x4] sm:$0xf] }
 0x1c1   : > { %v760_v21 = vsel %vm507_vm0, %v2773_v18, -inf  ;;  %v1046_v20 = vsel %vm997_vm3, %v529_v19, 0 }
 0x1c2   : > { %1829 = vmatpush3.bf16.msra.mxu1 %v1046_v20 }
 0x1c3   : > { %1840 = vmatprep.subr.bf16.mxu1 %v2321_v0 }
 0x1c4   : > { %761 = vmax.xlane.f32.xlu0 %v760_v21  ;;  %v630_v22 = vpop.f32.mrb[4].mxu1 }
 0x1c5   : > { %v2779_v23 = vmul.f32 0.35355338, %v630_v22  ;;  %v1808_v24 = vpop.f32.mrb[5].mxu1 }
 0x1c6   : > { %v633_v25 = vpop.f32.mrb[6].mxu1 }
 0x1c7   : > { %v2781_v26 = vmul.f32 0.35355338, %v633_v25  ;;  %v763_v27 = vsel %vm507_vm0, %v2779_v23, -inf  ;;  %v1809_v28 = vpop.f32.mrb[7].mxu1 }
 0x1c8   : > { %764 = vmax.xlane.f32.xlu1 %v763_v27 }
 0x1c9   : > { %v766_v29 = vsel %vm507_vm0, %v2781_v26, -inf }
 0x1cc   : > { %767 = vmax.xlane.f32.xlu1 %v766_v29  ;;  %v682_v30 = vpop.f32.mrb[8].mxu1 }
 0x1cd   : > { %v2787_v31 = vmul.f32 0.35355338, %v682_v30  ;;  %v1814_v32 = vpop.f32.mrb[9].mxu1 }
 0x1ce   : > { %v685_v33 = vpop.f32.mrb[10].mxu1 }
 0x1cf   : > { %v769_v34 = vsel %vm507_vm0, %v2787_v31, -inf  ;;  %v2791_v35 = vmul.f32 0.35355338, %v685_v33  ;;  %v1815_v36 = vpop.f32.mrb[11].mxu1 }
 0x1d0   : > { %770 = vmax.xlane.f32.xlu0 %v769_v34 }
 0x1d1   : > { %v772_v38 = vsel %vm507_vm0, %v2791_v35, -inf }
 0x1d2   : > { %773 = vmax.xlane.f32.xlu1 %v772_v38 }
 0x1d4   : > { %v734_v39 = vpop.f32.mrb[12].mxu1 }
 0x1d5   : > { %v2795_v40 = vmul.f32 0.35355338, %v734_v39  ;;  %v1820_v41 = vpop.f32.mrb[13].mxu1 }
 0x1d6   : > { %v737_v42 = vpop.f32.mrb[14].mxu1 }
 0x1d7   : > { %v775_v43 = vsel %vm507_vm0, %v2795_v40, -inf  ;;  %v2799_v44 = vmul.f32 0.35355338, %v737_v42  ;;  %v1821_v45 = vpop.f32.mrb[15].mxu1 }
 0x1d8   : > { %776 = vmax.xlane.f32.xlu0 %v775_v43 }
 0x1d9   : > { %v778_v46 = vsel %vm507_vm0, %v2799_v44, -inf }
 0x1da   : > { %779 = vmax.xlane.f32.xlu1 %v778_v46 }
 0x24d   : > { %v759_v48 = vpop.xlane.xlu0 %758 }
 0x24e   : > { %v2806_v49 = vmax.f32 %v2803_v47, %v759_v48 }
 0x250   : > { %v789_v51 = vsub.f32 %v2803_v47, %v2806_v49  ;;  %1199 = vst.msk [vmem:[#allocation2] sm:$0xff] %vm490_vm2, %v2806_v49  ;;  %815 = vperm.xlu0 %1981, %v2806_v49  }
 0x251   : > { %v762_v52 = vpop.xlane.xlu0 %761 }
 0x252   : > { %v2816_v53 = vmax.f32 %v2808_v50, %v762_v52 }
 0x254   : > { %v790_v55 = vsub.f32 %v2808_v50, %v2816_v53  ;;  %1200 = vst.msk [vmem:[#allocation2 + $0x8] sm:$0xff] %vm490_vm2, %v2816_v53  ;;  %820 = vperm.xlu1 %1982, %v2816_v53   ;;  %v877_v53 = vld [vmem:[#allocation3] sm:$0xff] }
 0x255   : > { %v765_v56 = vpop.xlane.xlu1 %764 }
 0x256   : > { %v2826_v57 = vmax.f32 %v2818_v54, %v765_v56 }
 0x258   : > { %v791_v59 = vsub.f32 %v2818_v54, %v2826_v57  ;;  %1201 = vst.msk [vmem:[#allocation2 + $0x10] sm:$0xff] %vm490_vm2, %v2826_v57  ;;  %825 = vperm.xlu1 %1982, %v2826_v57  }
 0x259   : > { %v768_v60 = vpop.xlane.xlu1 %767 }
 0x25a   : > { %v2836_v61 = vmax.f32 %v2828_v58, %v768_v60 }
 0x25c   : > { %v792_v63 = vsub.f32 %v2828_v58, %v2836_v61  ;;  %1202 = vst.msk [vmem:[#allocation2 + $0x18] sm:$0xff] %vm490_vm2, %v2836_v61  ;;  %830 = vperm.xlu1 %1982, %v2836_v61   ;;  %v879_v61 = vld [vmem:[#allocation3 + $0x10] sm:$0xff] }
 0x25d   : > { %v771_v1 = vpop.xlane.xlu0 %770 }
 0x25e   : > { %v2848_v3 = vmax.f32 %v2838_v62, %v771_v1  ;;  %v803_v50 = vmul.f32 1.442695, %v792_v63 }
 0x25f   : > { %v774_v4 = vpop.xlane.xlu1 %773 }
 0x260   : > { %v793_v5 = vsub.f32 %v2838_v62, %v2848_v3  ;;  %1203 = vst.msk [vmem:[#allocation2 + $0x20] sm:$0xff] %vm490_vm2, %v2848_v3  ;;  %835 = vperm.xlu1 %1982, %v2848_v3   ;;  %v2856_v6 = vmax.f32 %v2845_v2, %v774_v4  ;;  %v531_v4 = vld [vmem:[%s2681_s10 + $0xc] sm:$0xf] }
 0x261   : > { %v1140_v19 = vsel %vm997_vm3, %v531_v4, 0 }
 0x262   : > { %v794_v9 = vsub.f32 %v2845_v2, %v2856_v6  ;;  %1204 = vst.msk [vmem:[#allocation2 + $0x28] sm:$0xff] %vm490_vm2, %v2856_v6  ;;  %v805_v47 = vmul.f32 1.442695, %v793_v5 }
 0x264   : > { %840 = vperm.xlu1 %1982, %v2856_v6   ;;  %v807_v54 = vmul.f32 1.442695, %v794_v9 }
 0x265   : > { %v777_v11 = vpop.xlane.xlu0 %776 }
 0x266   : > { %v2871_v13 = vmax.f32 %v2864_v10, %v777_v11 }
 0x267   : > { %v780_v14 = vpop.xlane.xlu1 %779 }
 0x268   : > { %v795_v16 = vsub.f32 %v2864_v10, %v2871_v13  ;;  %1205 = vst.msk [vmem:[#allocation2 + $0x30] sm:$0xff] %vm490_vm2, %v2871_v13  ;;  %845 = vperm.xlu1 %1982, %v2871_v13   ;;  %v2879_v17 = vmax.f32 %v2868_v12, %v780_v14  ;;  %v881_v13 = vld [vmem:[#allocation3 + $0x20] sm:$0xff] }
 0x26a   : > { %v796_v21 = vsub.f32 %v2868_v12, %v2879_v17  ;;  %1206 = vst.msk [vmem:[#allocation2 + $0x38] sm:$0xff] %vm490_vm2, %v2879_v17  ;;  %v809_v62 = vmul.f32 1.442695, %v795_v16  ;;  %v882_v12 = vld [vmem:[#allocation3 + $0x28] sm:$0xff] }
 0x26c   : > { %850 = vperm.xlu1 %1982, %v2879_v17   ;;  %v811_v6 = vmul.f32 1.442695, %v796_v21 }
 0x2cf   : > { %v816_v22 = vpop.permute.xlu0 %815 }
 0x2d0   : > { %v853_v24 = vsub.f32 %v2771_v15, %v816_v22 }
 0x2d2   : > { %v861_v25 = vmul.f32 1.442695, %v853_v24 }
 0x2d3   : > { %v821_v27 = vpop.permute.xlu1 %820 }
 0x2d4   : > { %1987 = vpow2.f32 %v861_v25  ;;  %v854_v28 = vsub.f32 %v2773_v18, %v821_v27  ;;  %v530_v18 = vld [vmem:[%s2681_s10 + $0x8] sm:$0xf] }
 0x2d5   : > { %v1093_v48 = vsel %vm997_vm3, %v530_v18, 0  ;;  %v880_v18 = vld [vmem:[#allocation3 + $0x18] sm:$0xff] }
 0x2d6   : > { %v863_v29 = vmul.f32 1.442695, %v854_v28 }
 0x2d7   : > { %v826_v30 = vpop.permute.xlu1 %825 }
 0x2d8   : > { %1989 = vpow2.f32 %v863_v29  ;;  %v855_v32 = vsub.f32 %v2779_v23, %v826_v30 }
 0x2da   : > { %v865_v33 = vmul.f32 1.442695, %v855_v32 }
 0x2db   : > { %v831_v34 = vpop.permute.xlu1 %830 }
 0x2dc   : > { %1991 = vpow2.f32 %v865_v33  ;;  %v856_v36 = vsub.f32 %v2781_v26, %v831_v34  ;;  %v799_v34 = vmul.f32 1.442695, %v790_v55  ;;  %v878_v55 = vld [vmem:[#allocation3 + $0x8] sm:$0xff] }
 0x2de   : > { %v1988_v37 = vpop.eup %1987  ;;  %v867_v38 = vmul.f32 1.442695, %v856_v36  ;;  %v797_v36 = vmul.f32 1.442695, %v789_v51 }
 0x2df   : > { %v836_v39 = vpop.permute.xlu1 %835  ;;  %v893_v15 = vsel %vm507_vm0, %v1988_v37, 0.0 }
 0x2e0   : > { %1993 = vpow2.f32 %v867_v38  ;;  %v857_v41 = vsub.f32 %v2787_v31, %v836_v39  ;;  %894 = vadd.xlane.f32.xlu1 %v893_v15  ;;  %v801_v39 = vmul.f32 1.442695, %v791_v59 }
 0x2e2   : > { %v1990_v42 = vpop.eup %1989  ;;  %v869_v43 = vmul.f32 1.442695, %v857_v41 }
 0x2e3   : > { %v841_v45 = vpop.permute.xlu1 %840  ;;  %v896_v23 = vsel %vm507_vm0, %v1990_v42, 0.0  ;;  %v990_v46 = vpack.c.bf16 %v1990_v42, %v1988_v37 }
 0x2e4   : > { %1995 = vpow2.f32 %v869_v43  ;;  %v858_v26 = vsub.f32 %v2791_v35, %v841_v45  ;;  %897 = vadd.xlane.f32.xlu0 %v896_v23 }
 0x2e5   : > { %1825 = vmatmul.mubr.msk.bf16.vlgmr.msra.gmra.mrb[0].mxu0 %vm507_vm0, %v990_v46 }
 0x2e6   : > { %v1992_v52 = vpop.eup %1991  ;;  %v871_v56 = vmul.f32 1.442695, %v858_v26  ;;  %1835 = vmatpush3.bf16.msra.mxu0 %v1093_v48  ;;  %1836 = vmatprep.mubr.msk.bf16.mxu0 %vm2322_vm1, %v2321_v0 }
 0x2e7   : > { %v846_v31 = vpop.permute.xlu1 %845  ;;  %v899_v60 = vsel %vm507_vm0, %v1992_v52, 0.0  ;;  %1846 = vmatprep.subr.bf16.mxu0 %v2321_v0 }
 0x2e8   : > { %1997 = vpow2.f32 %v871_v56  ;;  %v859_v1 = vsub.f32 %v2795_v40, %v846_v31  ;;  %900 = vadd.xlane.f32.xlu0 %v899_v60  ;;  %v883_v31 = vld [vmem:[#allocation3 + $0x30] sm:$0xff] }
 0x2ea   : > { %v1994_v35 = vpop.eup %1993  ;;  %v873_v7 = vmul.f32 1.442695, %v859_v1 }
 0x2eb   : > { %v851_v8 = vpop.permute.xlu1 %850  ;;  %v902_v11 = vsel %vm507_vm0, %v1994_v35, 0.0  ;;  %v991_v14 = vpack.c.bf16 %v1994_v35, %v1992_v52 }
 0x2ec   : > { %1999 = vpow2.f32 %v873_v7  ;;  %v860_v20 = vsub.f32 %v2799_v44, %v851_v8  ;;  %903 = vadd.xlane.f32.xlu1 %v902_v11  ;;  %v884_v8 = vld [vmem:[#allocation3 + $0x38] sm:$0xff] }
 0x2ed   : > { %1831 = vmatmul.mubr.msk.bf16.vlgmr.msra.gmra.mrb[16].mxu1 %vm507_vm0, %v991_v14  ;;  %v1294_v14 = vld [vmem:[%s2684_s21] sm:$0xf] }
 0x2ee   : > { %v1996_v22 = vpop.eup %1995  ;;  %v875_v24 = vmul.f32 1.442695, %v860_v20  ;;  %1841 = vmatpush3.bf16.msra.mxu1 %v1140_v19  ;;  %1842 = vmatprep.mubr.msk.bf16.mxu1 %vm2322_vm1, %v2321_v0  ;;  %v1299_v20 = vsel %vm997_vm3, %v1294_v14, 0 }
 0x2ef   : > { %v905_v40 = vsel %vm507_vm0, %v1996_v22, 0.0 }
 0x2f0   : > { %2001 = vpow2.f32 %v875_v24  ;;  %906 = vadd.xlane.f32.xlu0 %v905_v40 }
 0x2f1   : > { %2003 = vpow2.f32 %v799_v34 }
 0x2f2   : > { %v1998_v25 = vpop.eup %1997  ;;  %2005 = vpow2.f32 %v797_v36 }
 0x2f3   : > { %v908_v27 = vsel %vm507_vm0, %v1998_v25, 0.0  ;;  %v992_v28 = vpack.c.bf16 %v1998_v25, %v1996_v22  ;;  %2007 = vpow2.f32 %v801_v39 }
 0x2f4   : > { %909 = vadd.xlane.f32.xlu1 %v908_v27  ;;  %2009 = vpow2.f32 %v803_v50 }
 0x2f5   : > { %1837 = vmatmul.mubr.msk.bf16.vlgmr.msra.gmra.mrb[4].mxu0 %vm507_vm0, %v992_v28  ;;  %2011 = vpow2.f32 %v805_v47 }
 0x2f6   : > { %v2000_v44 = vpop.eup %1999  ;;  %1848 = vmatprep.mubr.msk.bf16.mxu0 %vm2322_vm1, %v2321_v0  ;;  %2013 = vpow2.f32 %v807_v54  ;;  %1847 = vmatpush3.bf16.msra.mxu0 %v1299_v20 }
 0x2f7   : > { %v911_v29 = vsel %vm507_vm0, %v2000_v44, 0.0  ;;  %2015 = vpow2.f32 %v809_v62  ;;  %1852 = vmatprep.subr.bf16.mxu0 %v2321_v0 }
 0x2f8   : > { %912 = vadd.xlane.f32.xlu0 %v911_v29  ;;  %2017 = vpow2.f32 %v811_v6  ;;  %v937_v6 = vld [vmem:[#allocation4 + $0x18] sm:$0xff] }
 0x2fa   : > { %v2002_v30 = vpop.eup %2001 }
 0x2fb   : > { %v914_v32 = vsel %vm507_vm0, %v2002_v30, 0.0  ;;  %v993_v33 = vpack.c.bf16 %v2002_v30, %v2000_v44  ;;  %v2004_v37 = vpop.eup %2003  ;;  %v934_v44 = vld [vmem:[#allocation4] sm:$0xff]  ;;  %v935_v30 = vld [vmem:[#allocation4 + $0x8] sm:$0xff] }
 0x2fc   : > { %915 = vadd.xlane.f32.xlu1 %v914_v32  ;;  %v2006_v38 = vpop.eup %2005  ;;  %v886_v57 = vmul.f32 %v2004_v37, %v878_v55 }
 0x2fd   : > { %1843 = vmatmul.mubr.msk.bf16.vlgmr.msra.gmra.mrb[20].mxu1 %vm507_vm0, %v993_v33  ;;  %v885_v49 = vmul.f32 %v2006_v38, %v877_v53  ;;  %v2008_v58 = vpop.eup %2007 }
 0x2fe   : > { %v887_v3 = vmul.f32 %v2008_v58, %v879_v61  ;;  %v2010_v5 = vpop.eup %2009 }
 0x2ff   : > { %v888_v42 = vmul.f32 %v2010_v5, %v880_v18  ;;  %v2012_v43 = vpop.eup %2011 }
 0x300   : > { %v889_v23 = vmul.f32 %v2012_v43, %v881_v13  ;;  %v2014_v46 = vpop.eup %2013  ;;  %v938_v13 = vld [vmem:[#allocation4 + $0x20] sm:$0xff] }
 0x301   : > { %v890_v26 = vmul.f32 %v2014_v46, %v882_v12  ;;  %v2016_v52 = vpop.eup %2015  ;;  %v939_v12 = vld [vmem:[#allocation4 + $0x28] sm:$0xff] }
 0x302   : > { %v891_v4 = vmul.f32 %v2016_v52, %v883_v31  ;;  %v2018_v35 = vpop.eup %2017 }
 0x303   : > { %v892_v22 = vmul.f32 %v2018_v35, %v884_v8 }
 0x30d   : > { %949 = vperm.xlu1 %1982, %v2004_v37  }
 0x30e   : > { %944 = vperm.xlu0 %1981, %v2006_v38  }
 0x36d   : > { %v895_v51 = vpop.xlane.xlu1 %894 }
 0x36e   : > { %v917_v15 = vadd.f32 %v895_v51, %v885_v49 }
 0x370   : > { %926 = vst.msk [vmem:[#allocation3] sm:$0xff] %vm490_vm2, %v917_v15 }
 0x371   : > { %v898_v59 = vpop.xlane.xlu0 %897 }
 0x372   : > { %v918_v63 = vadd.f32 %v898_v59, %v886_v57 }
 0x374   : > { %927 = vst.msk [vmem:[#allocation3 + $0x8] sm:$0xff] %vm490_vm2, %v918_v63 }
 0x375   : > { %v901_v41 = vpop.xlane.xlu0 %900 }
 0x376   : > { %v919_v2 = vadd.f32 %v901_v41, %v887_v3 }
 0x377   : > { %v1218_v9 = vld [vmem:[#allocation3] sm:$0xff] }
 0x378   : > { %928 = vst.msk [vmem:[#allocation3 + $0x10] sm:$0xff] %vm490_vm2, %v919_v2  ;;  %1228 = vperm.xlu1 %1982, %v1218_v9  }
 0x379   : > { %v904_v10 = vpop.xlane.xlu1 %903 }
 0x37a   : > { %v920_v16 = vadd.f32 %v904_v10, %v888_v42 }
 0x37b   : > { %v1219_v45 = vld [vmem:[#allocation3 + $0x8] sm:$0xff] }
 0x37c   : > { %929 = vst.msk [vmem:[#allocation3 + $0x18] sm:$0xff] %vm490_vm2, %v920_v16  ;;  %1233 = vperm.xlu0 %1981, %v1219_v45   ;;  %954 = vperm.xlu1 %1982, %v2008_v58  }
 0x37d   : > { %v907_v48 = vpop.xlane.xlu0 %906 }
 0x37e   : > { %v921_v17 = vadd.f32 %v907_v48, %v889_v23 }
 0x37f   : > { %v1220_v21 = vld [vmem:[#allocation3 + $0x10] sm:$0xff] }
 0x380   : > { %930 = vst.msk [vmem:[#allocation3 + $0x20] sm:$0xff] %vm490_vm2, %v921_v17  ;;  %959 = vperm.xlu0 %1981, %v2010_v5   ;;  %1238 = vperm.xlu1 %1982, %v1220_v21   ;;  %v936_v5 = vld [vmem:[#allocation4 + $0x10] sm:$0xff] }
 0x381   : > { %v910_v56 = vpop.xlane.xlu1 %909 }
 0x382   : > { %v922_v60 = vadd.f32 %v910_v56, %v890_v26  ;;  %v1757_v56 = vld [vmem:[%s2684_s21 + $0x4] sm:$0xf] }
 0x383   : > { %v1221_v1 = vld [vmem:[#allocation3 + $0x18] sm:$0xff]  ;;  %v1351_v8 = vsel %vm997_vm3, %v1757_v56, 0 }
 0x384   : > { %931 = vst.msk [vmem:[#allocation3 + $0x28] sm:$0xff] %vm490_vm2, %v922_v60  ;;  %1243 = vperm.xlu0 %1981, %v1221_v1   ;;  %964 = vperm.xlu1 %1982, %v2012_v43  }
 0x385   : > { %v913_v7 = vpop.xlane.xlu0 %912 }
 0x386   : > { %v923_v11 = vadd.f32 %v913_v7, %v891_v4 }
 0x387   : > { %v1222_v19 = vld [vmem:[#allocation3 + $0x20] sm:$0xff] }
 0x388   : > { %932 = vst.msk [vmem:[#allocation3 + $0x30] sm:$0xff] %vm490_vm2, %v923_v11  ;;  %969 = vperm.xlu0 %1981, %v2014_v46   ;;  %1248 = vperm.xlu1 %1982, %v1222_v19   ;;  %v940_v11 = vld [vmem:[#allocation4 + $0x30] sm:$0xff] }
 0x389   : > { %v916_v24 = vpop.xlane.xlu1 %915 }
 0x38a   : > { %v924_v40 = vadd.f32 %v916_v24, %v892_v22  ;;  %v941_v24 = vld [vmem:[#allocation4 + $0x38] sm:$0xff] }
 0x38b   : > { %v1223_v25 = vld [vmem:[#allocation3 + $0x28] sm:$0xff] }
 0x38c   : > { %933 = vst.msk [vmem:[#allocation3 + $0x38] sm:$0xff] %vm490_vm2, %v924_v40  ;;  %1253 = vperm.xlu0 %1981, %v1223_v25   ;;  %974 = vperm.xlu1 %1982, %v2016_v52  }
 0x38d   : > { %v945_v29 = vpop.permute.xlu0 %944  ;;  %v950_v32 = vpop.permute.xlu1 %949 }
 0x38e   : > { %v982_v33 = vmul.f32 %v945_v29, %v934_v44  ;;  %v983_v36 = vmul.f32 %v950_v32, %v935_v30 }
 0x38f   : > { %v1224_v27 = vld [vmem:[#allocation3 + $0x30] sm:$0xff] }
 0x390   : > { %979 = vperm.xlu0 %1981, %v2018_v35   ;;  %1258 = vperm.xlu1 %1982, %v1224_v27  }
 0x393   : > { %v1225_v28 = vld [vmem:[#allocation3 + $0x38] sm:$0xff] }
 0x394   : > { %1263 = vperm.xlu0 %1981, %v1225_v28  }
 0x3b8   : > { %v1035_v34 = vpop.f32.mrb[0].mxu0 }
 0x3b9   : > { %v1183_v37 = vadd.f32 %v1035_v34, %v982_v33  ;;  %v1826_v38 = vpop.f32.mrb[1].mxu0  ;;  %v1759_v34 = vld [vmem:[%s2684_s21 + $0x8] sm:$0xf] }
 0x3ba   : > { %v1038_v39 = vpop.f32.mrb[2].mxu0  ;;  %v1403_v38 = vsel %vm997_vm3, %v1759_v34, 0 }
 0x3bb   : > { %1191 = vst.msk [vmem:[#allocation4] sm:$0xff] %vm507_vm0, %v1183_v37  ;;  %v1184_v50 = vadd.f32 %v1038_v39, %v983_v36  ;;  %v1827_v53 = vpop.f32.mrb[3].mxu0 }
 0x3bd   : > { %1192 = vst.msk [vmem:[#allocation4 + $0x8] sm:$0xff] %vm507_vm0, %v1184_v50 }
 0x3c0   : > { %v1082_v47 = vpop.f32.mrb[16].mxu1 }
 0x3c1   : > { %v1832_v49 = vpop.f32.mrb[17].mxu1 }
 0x3c2   : > { %v1085_v51 = vpop.f32.mrb[18].mxu1  ;;  %v1210_v21 = vld [vmem:[#allocation4] sm:$0xff] }
 0x3c3   : > { %v1833_v55 = vpop.f32.mrb[19].mxu1 }
 0x3c4   : > { %v1211_v26 = vld [vmem:[#allocation4 + $0x8] sm:$0xff] }
 0x3c8   : > { %v1129_v15 = vpop.f32.mrb[4].mxu0 }
 0x3c9   : > { %v1838_v54 = vpop.f32.mrb[5].mxu0 }
 0x3ca   : > { %v1132_v57 = vpop.f32.mrb[6].mxu0 }
 0x3cb   : > { %v1839_v58 = vpop.f32.mrb[7].mxu0 }
 0x3d0   : > { %v1176_v59 = vpop.f32.mrb[20].mxu1 }
 0x3d1   : > { %v1844_v61 = vpop.f32.mrb[21].mxu1 }
 0x3d2   : > { %v1179_v63 = vpop.f32.mrb[22].mxu1 }
 0x3d3   : > { %v1845_v62 = vpop.f32.mrb[23].mxu1 }
 0x3f7   : > { %v1229_v3 = vpop.permute.xlu1 %1228 }
 0x3f8   : > { %2019 = vrcp.f32 %v1229_v3 }
 0x3fb   : > { %v1234_v41 = vpop.permute.xlu0 %1233  ;;  %v955_v18 = vpop.permute.xlu1 %954 }
 0x3fc   : > { %2021 = vrcp.f32 %v1234_v41  ;;  %v984_v2 = vmul.f32 %v955_v18, %v936_v5  ;;  %v1282_v18 = vld [vmem:[%s432_s19] sm:$0xff] }
 0x3fe   : > { %v1185_v9 = vadd.f32 %v1082_v47, %v984_v2  ;;  %v1755_v2 = vld [vmem:[%s423_s27] ss:$0 sm:$0xff] }
 0x3ff   : > { %v960_v42 = vpop.permute.xlu0 %959  ;;  %v1239_v43 = vpop.permute.xlu1 %1238 }
 0x400   : > { %1193 = vst.msk [vmem:[#allocation4 + $0x10] sm:$0xff] %vm507_vm0, %v1185_v9  ;;  %v985_v10 = vmul.f32 %v960_v42, %v937_v6  ;;  %v1283_v6 = vld [vmem:[%s432_s19 + $0x8] sm:$0xff]  ;;  %v1291_v9 = vadd.f32 %v1755_v2, %v1282_v18 }
 0x402   : > { %v1186_v16 = vadd.f32 %v1085_v51, %v985_v10  ;;  %v2020_v46 = vpop.eup %2019 }
 0x403   : > { %v1244_v45 = vpop.permute.xlu0 %1243  ;;  %v965_v23 = vpop.permute.xlu1 %964  ;;  %v1267_v31 = vmul.f32 %v2020_v46, %v1210_v21 }
 0x404   : > { %1194 = vst.msk [vmem:[#allocation4 + $0x18] sm:$0xff] %vm507_vm0, %v1186_v16  ;;  %2023 = vrcp.f32 %v1244_v45  ;;  %v986_v48 = vmul.f32 %v965_v23, %v938_v13 }
 0x405   : > { %2025 = vrcp.f32 %v1239_v43 }
 0x406   : > { %v2022_v17 = vpop.eup %2021  ;;  %v1187_v52 = vadd.f32 %v1129_v15, %v986_v48  ;;  %v1761_v15 = vld [vmem:[%s2684_s21 + $0xc] sm:$0xf] }
 0x407   : > { %v1269_v60 = vmul.f32 %v2022_v17, %v1211_v26  ;;  %v970_v1 = vpop.permute.xlu0 %969  ;;  %v1249_v4 = vpop.permute.xlu1 %1248  ;;  %v1212_v32 = vld [vmem:[#allocation4 + $0x10] sm:$0xff]  ;;  %v1455_v58 = vsel %vm997_vm3, %v1761_v15, 0 }
 0x408   : > { %1195 = vst.msk [vmem:[#allocation4 + $0x20] sm:$0xff] %vm507_vm0, %v1187_v52  ;;  %v987_v35 = vmul.f32 %v970_v1, %v939_v12 }
 0x409   : > { %v1293_v7 = vpack.c.bf16 %v1269_v60, %v1267_v31 }
 0x40a   : > { %v1188_v14 = vadd.f32 %v1132_v57, %v987_v35 }
 0x40b   : > { %v1254_v19 = vpop.permute.xlu0 %1253  ;;  %1849 = vmatmul.mubr.msk.bf16.vlgmr.msra.gmra.mrb[8].mxu0 %vm507_vm0, %v1293_v7  ;;  %v975_v20 = vpop.permute.xlu1 %974  ;;  %v1213_v44 = vld [vmem:[#allocation4 + $0x18] sm:$0xff] }
 0x40c   : > { %1196 = vst.msk [vmem:[#allocation4 + $0x28] sm:$0xff] %vm507_vm0, %v1188_v14  ;;  %1853 = vmatpush3.bf16.msra.mxu0 %v1351_v8  ;;  %v988_v22 = vmul.f32 %v975_v20, %v940_v11  ;;  %1854 = vmatprep.mubr.msk.bf16.mxu0 %vm2322_vm1, %v2321_v0  ;;  %2027 = vrcp.f32 %v1254_v19 }
 0x40d   : > { %1858 = vmatprep.subr.bf16.mxu0 %v2321_v0  ;;  %2029 = vrcp.f32 %v1249_v4 }
 0x40e   : > { %v2024_v40 = vpop.eup %2023  ;;  %v1189_v25 = vadd.f32 %v1176_v59, %v988_v22 }
 0x40f   : > { %v980_v27 = vpop.permute.xlu0 %979  ;;  %v2026_v28 = vpop.eup %2025  ;;  %v1273_v30 = vmul.f32 %v2024_v40, %v1213_v44  ;;  %v1214_v55 = vld [vmem:[#allocation4 + $0x20] sm:$0xff] }
 0x410   : > { %1197 = vst.msk [vmem:[#allocation4 + $0x30] sm:$0xff] %vm507_vm0, %v1189_v25  ;;  %v989_v29 = vmul.f32 %v980_v27, %v941_v24  ;;  %v1271_v36 = vmul.f32 %v2026_v28, %v1212_v32  ;;  %v1259_v53 = vpop.permute.xlu1 %1258 }
 0x412   : > { %v1190_v33 = vadd.f32 %v1179_v63, %v989_v29  ;;  %v1344_v37 = vpack.c.bf16 %v1273_v30, %v1271_v36 }
 0x413   : > { %v1264_v39 = vpop.permute.xlu0 %1263  ;;  %v1215_v49 = vld [vmem:[#allocation4 + $0x28] sm:$0xff] }
 0x414   : > { %1198 = vst.msk [vmem:[#allocation4 + $0x38] sm:$0xff] %vm507_vm0, %v1190_v33  ;;  %2031 = vrcp.f32 %v1264_v39 }
 0x415   : > { %2033 = vrcp.f32 %v1259_v53 }
 0x416   : > { %v2028_v50 = vpop.eup %2027 }
 0x417   : > { %1855 = vmatmul.mubr.msk.bf16.vlgmr.msra.gmra.mrb[8].mxu0 %vm507_vm0, %v1344_v37  ;;  %v2030_v47 = vpop.eup %2029  ;;  %v1277_v51 = vmul.f32 %v2028_v50, %v1215_v49  ;;  %v1216_v3 = vld [vmem:[#allocation4 + $0x30] sm:$0xff] }
 0x418   : > { %1859 = vmatpush3.bf16.msra.mxu0 %v1403_v38  ;;  %1860 = vmatprep.mubr.msk.bf16.mxu0 %vm2322_vm1, %v2321_v0  ;;  %v1275_v54 = vmul.f32 %v2030_v47, %v1214_v55 }
 0x419   : > { %1864 = vmatprep.subr.bf16.mxu0 %v2321_v0 }
 0x41a   : > { %v1396_v57 = vpack.c.bf16 %v1277_v51, %v1275_v54 }
 0x41b   : > { %v1217_v63 = vld [vmem:[#allocation4 + $0x38] sm:$0xff] }
 0x41e   : > { %v2032_v59 = vpop.eup %2031 }
 0x41f   : > { %v2034_v61 = vpop.eup %2033  ;;  %v1281_v62 = vmul.f32 %v2032_v59, %v1217_v63 }
 0x420   : > { %v1279_v5 = vmul.f32 %v2034_v61, %v1216_v3 }
 0x422   : > { %v1448_v41 = vpack.c.bf16 %v1281_v62, %v1279_v5 }
 0x423   : > { %1861 = vmatmul.mubr.msk.bf16.vlgmr.msra.gmra.mrb[8].mxu0 %vm507_vm0, %v1396_v57 }
 0x424   : > { %1865 = vmatpush3.bf16.msra.mxu0 %v1455_v58  ;;  %1866 = vmatprep.mubr.msk.bf16.mxu0 %vm2322_vm1, %v2321_v0  ;;  %v1292_v0 = vadd.f32 %v1755_v2, %v1283_v6 }
 0x42f   : > { %1867 = vmatmul.mubr.msk.bf16.vlgmr.msra.gmra.mrb[8].mxu0 %vm507_vm0, %v1448_v41 }
 0x502   : > { %v1491_v42 = vpop.f32.mrb[8].mxu0 }
 0x503   : > { %v1870_v43 = vadd.f32 %v1491_v42, %v1291_v9  ;;  %v1868_v10 = vpop.f32.mrb[9].mxu0 }
 0x504   : > { %v1494_v13 = vpop.f32.mrb[10].mxu0 }
 0x505   : > { %1501 = vst.msk [vmem:[%s484_s9] sm:$0xff] %vm1500_vm4, %v1870_v43  ;;  %v1871_v16 = vadd.f32 %v1494_v13, %v1292_v0  ;;  %v1869_v45 = vpop.f32.mrb[11].mxu0 }
 0x507   : > { %1502 = vst.msk [vmem:[%s484_s9 + $0x8] sm:$0xff] %vm1500_vm4, %v1871_v16 }
 0x508   : > { %2228 = shalt.err (!%p2225_p11)
}
 0x509   : > { %s2229_s11 = scalar_lea.hbm %s2994_s8, 256  ;;  %s2233_s13 = scalar_lea.hbm %s3098_s16, 512 }
 0x50a   : > { %p2230_p0 = scmp.ne.s32.totalorder %s2994_s8, %s2229_s11  ;;  %p2234_p5 = scmp.lt.u32.totalorder %s2994_s8, %s3098_s16 }
 0x50b   : > { %p2235_p2 = scmp.lt.u32.totalorder %s2233_s13, %s2229_s11  ;;  %p2237_p13 = scmp.lt.u32.totalorder %s2229_s11, %s2994_s8 }
 0x50c   : > { %p2231_p10 = pnand %p2230_p0, %p3099_p1 }
 0x50d   : > { %p2236_p7 = por %p2235_p2, %p2234_p5 }
 0x50e   : > { %p2232_p3 = pneg %p2231_p10 }
 0x50f   : > { %p2238_p6 = por %p2237_p13, %p2236_p7 }
 0x511   : > { %p2239_p9 = pnand %p2238_p6, %p2232_p3 }
 0x513   : > { %2242 = shalt.err (!%p2239_p9)
}
 0x514   : > { %s2326_s2 = smov 128   ;;  %s2327_s10 = smov 8  }
 0x515   : > { %1896 = dma.vmem_to_hbm [thread:$0]  (%p3099_p1), %s2989_s30, 256, %s2994_s8, %s1504_s24, %s2326_s2, %s2326_s2, %s2327_s10  }
 0x516 PF: > { %s3100_s28 = sld [smem:[#allocation22_spill]]  ;;  %s3101_s21 = sld [smem:[#allocation28_spill]] }
 0x517   : > { %s3102_s27 = sld [smem:[#allocation24_spill]] }
 0x51c   : > { %s1534_s3 = sand.u32 1, %s3100_s28   ;;  %p3103_p12 = scmp.ne.s32.totalorder %s3101_s21, 0 }
 0x51d   : > { %p3104_p8 = scmp.ge.s32.totalorder %s3102_s27, 2  ;;  %s1535_s19 = scalar_lea.sflag [#allocation7], %s1534_s3 }
 0x51f   : > { %p1918_p4 = pnand %p3104_p8, %p3103_p12 }
 0x521   : > { %2284 = dma.done.wait (!%p1918_p4), %s1535_s19, 256  }
 0x522   : > { %2286 = vsyncadd (!%p1918_p4), %s1535_s19, 4294967040  ;;  %s31_s26 = sadd.s32 1, %s3102_s27   ;;  %s3105_s9 = sld [smem:[#allocation23_spill]] }
 0x523   : > { %p28_p11 = scmp.ge.s32.totalorder %s31_s26, 4   ;;  %s3106_s23 = sld [smem:[#allocation27_spill]] }
 0x524   : > { %s3107_s29 = sld [smem:[#allocation25_spill]]  ;;  %s3108_s21 = smov %s2293_s22 }
 0x525   : > { %s3110_s24 = smov %s2305_s25  ;;  %30 = sbr.rel (!%p28_p11) target bundleno = 18 (0x12), region = 161 }
 0x528   : > { %s3109_s22 = smov %s3105_s9 }
 0x52a   : > { %s3111_s25 = smov %s3107_s29 }
 0x52c   :  { %1540 = vsyncpa [#allocation6], 1 }
 0x52d   :  { %1542 = vsyncpa [#allocation6 + $0x1], 1 }
 0x52e   :  { %1543 = vsyncpa [#allocation9], 1 }
 0x52f   :  { %1545 = vsyncpa [#allocation9 + $0x1], 1 }
 0x530   :  { %1546 = vsyncpa [#allocation12], 1 }
 0x531   :  { %1548 = vsyncpa [#allocation12 + $0x1], 1 }
 0x532   :  { %1549 = vsyncpa [#allocation15], 1 }
 0x533   :  { %1551 = vsyncpa [#allocation15 + $0x1], 1 }
 0x534   :  { %1552 = vsyncpa [#allocation7], 1 }
 0x535   :  { %1554 = vsyncpa [#allocation7 + $0x1], 1 }

</bundles_post_ra>
